<compile_context>
chip_gen: v7x
topology: tpu7x:2x2x1
jax: 0.10.0
libtpu: 0.0.40
codegen_flags: <defaults>
</compile_context>

<pallas_src>
import jax
import jax.numpy as jnp
from jax.experimental import pallas as pl
from jax.experimental.pallas import tpu as pltpu

# Logical and lane-padded feature sizes.
D_IN = 28 * 28                      # 784 (full-array K dim; no pad needed)
H1, H2, H3, D_OUT = 1200, 300, 100, 10
H1P, H2P, H3P, D_OUTP = 1280, 384, 128, 128


def teacher_mlp_kernel(x_ref,
                       w1_ref, b1_ref,
                       w2_ref, b2_ref,
                       w3_ref, b3_ref,
                       w4_ref, b4_ref,
                       o_ref):
    # fc1(relu(x)) -- x already bf16; bf16 MXU operands, f32 acc, f32 bias.
    h = jnp.maximum(x_ref[...], 0.0)
    h = jnp.dot(h, w1_ref[...], preferred_element_type=jnp.float32) + b1_ref[...]
    # fc2(relu(h))
    h = jnp.maximum(h, 0.0).astype(jnp.bfloat16)
    h = jnp.dot(h, w2_ref[...], preferred_element_type=jnp.float32) + b2_ref[...]
    # fc3(relu(h))
    h = jnp.maximum(h, 0.0).astype(jnp.bfloat16)
    h = jnp.dot(h, w3_ref[...], preferred_element_type=jnp.float32) + b3_ref[...]
    # fc4(relu(h))
    h = jnp.maximum(h, 0.0).astype(jnp.bfloat16)
    h = jnp.dot(h, w4_ref[...], preferred_element_type=jnp.float32) + b4_ref[...]
    o_ref[...] = h.astype(o_ref.dtype)


def init_linear_params(key, fan_in, fan_out, fan_in_pad, fan_out_pad):
    """PyTorch-style init U(-1/sqrt(fan_in), 1/sqrt(fan_in)).

    Weight returned as (fan_in_pad, fan_out_pad) bf16 (zero padding), bias as
    (1, fan_out_pad) f32 (zero padding). Stored (in, out) so kernel does x @ W.
    """
    kw, kb = jax.random.split(key)
    bound = 1.0 / jnp.sqrt(jnp.float32(fan_in))
    w = jax.random.uniform(kw, (fan_in, fan_out), jnp.float32, -bound, bound)
    b = jax.random.uniform(kb, (1, fan_out), jnp.float32, -bound, bound)
    w = jnp.pad(w, ((0, fan_in_pad - fan_in), (0, fan_out_pad - fan_out)))
    b = jnp.pad(b, ((0, 0), (0, fan_out_pad - fan_out)))
    return w.astype(jnp.bfloat16), b.astype(jnp.float32)


def make_teacher_params(key):
    k1, k2, k3, k4 = jax.random.split(key, 4)
    w1, b1 = init_linear_params(k1, D_IN, H1, D_IN, H1P)
    w2, b2 = init_linear_params(k2, H1, H2, H1P, H2P)
    w3, b3 = init_linear_params(k3, H2, H3, H2P, H3P)
    w4, b4 = init_linear_params(k4, H3, D_OUT, H3P, D_OUTP)
    return (w1, b1, w2, b2, w3, b3, w4, b4)


def _choose_tm(batch):
    # MXU-friendly batch tile. When batch >= 512, always produce >= 2 grid
    # steps so the "parallel" batch axis can shard across v7x's 2 TensorCores
    # (harmless ~0.35 us extra grid-step overhead on 1-TC v5e/v6e). bf16 x
    # keeps TM=1024 tiles comfortably inside v7x's 64 MiB VMEM.
    if batch >= 2048:
        return 1024
    if batch >= 1024:
        return 512
    if batch >= 512:
        return 256
    return max(8, ((batch + 7) // 8) * 8)


def _resident_spec(shape):
    # Weights/biases: constant index_map -> fetched once, VMEM-resident across
    # grid steps. Single-buffer them to free ~3 MiB of VMEM headroom (matters
    # most under v7x's 64 MiB budget).
    index_map = lambda i: (0, 0)
    try:
        return pl.BlockSpec(shape, index_map, pipeline_mode=pl.Buffered(1))
    except TypeError:  # fallback if this BlockSpec has no pipeline_mode kwarg
        return pl.BlockSpec(shape, index_map)


@jax.jit
def teacher_net_forward(x, params):
    w1, b1, w2, b2, w3, b3, w4, b4 = params
    # Glue: x.view(-1, 28*28); stream x as bf16 (relu∘cast == cast∘relu here).
    x2d = x.reshape(-1, D_IN).astype(jnp.bfloat16)
    batch = x2d.shape[0]

    tm = _choose_tm(batch)
    grid_m = pl.cdiv(batch, tm)
    b_pad = grid_m * tm
    if b_pad != batch:
        x2d = jnp.pad(x2d, ((0, b_pad - batch), (0, 0)))

    grid_spec = pltpu.PrefetchScalarGridSpec(
        num_scalar_prefetch=0,
        grid=(grid_m,),
        in_specs=[
            pl.BlockSpec((tm, D_IN), lambda i: (i, 0)),   # x tile, pipelined
            _resident_spec((D_IN, H1P)), _resident_spec((1, H1P)),
            _resident_spec((H1P, H2P)), _resident_spec((1, H2P)),
            _resident_spec((H2P, H3P)), _resident_spec((1, H3P)),
            _resident_spec((H3P, D_OUTP)), _resident_spec((1, D_OUTP)),
        ],
        out_specs=pl.BlockSpec((tm, D_OUTP), lambda i: (i, 0)),
    )

    flops = 2 * b_pad * (D_IN * H1P + H1P * H2P + H2P * H3P + H3P * D_OUTP)
    bytes_accessed = (
        b_pad * D_IN * 2                                   # x (bf16)
        + (D_IN * H1P + H1P * H2P + H2P * H3P + H3P * D_OUTP) * 2   # weights
        + (H1P + H2P + H3P + D_OUTP) * 4                   # biases (f32)
        + b_pad * D_OUTP * 4                               # out (f32)
    )

    out = pl.pallas_call(
        teacher_mlp_kernel,
        out_shape=jax.ShapeDtypeStruct((b_pad, D_OUTP), jnp.float32),
        grid_spec=grid_spec,
        compiler_params=pltpu.CompilerParams(
            dimension_semantics=("parallel",),      # shard batch tiles on v7x
            vmem_limit_bytes=48 * 1024 * 1024,      # headroom for TM=1024
        ),
        cost_estimate=pl.CostEstimate(
            flops=flops, transcendentals=0, bytes_accessed=bytes_accessed),
    )(x2d, w1, b1, w2, b2, w3, b3, w4, b4)

    return out[:batch, :D_OUT]


def reference_forward(x, params):
    """Pure-JAX reference mirroring the kernel math (bf16 operands, f32 acc)."""
    w1, b1, w2, b2, w3, b3, w4, b4 = params
    h = x.reshape(-1, D_IN).astype(jnp.bfloat16)
    for w, b in ((w1, b1), (w2, b2), (w3, b3), (w4, b4)):
        h = jnp.dot(jnp.maximum(h, 0.0).astype(jnp.bfloat16), w,
                    preferred_element_type=jnp.float32) + b
    return h[:, :D_OUT]


if __name__ == "__main__":
    key = jax.random.PRNGKey(0)
    k_params, k_input = jax.random.split(key)

    params = make_teacher_params(k_params)

    # MNIST-like NCHW input, small batch.
    x = jax.random.normal(k_input, (2, 1, 28, 28), jnp.float32)

    out = teacher_net_forward(x, params)
    out = jax.block_until_ready(out)

    ref = reference_forward(x, params)
    assert out.shape == (2, 10), out.shape
    assert jnp.allclose(out, ref, atol=1e-3, rtol=1e-3), "mismatch vs reference"

    print("KERNEL_OK")
</pallas_src>

<mosaic_0001>
module attributes {stable_mosaic.version = 11 : i64} {
  func.func @teacher_mlp_kernel(%arg0: i32, %arg1: memref<8x784xbf16, #tpu.memory_space<vmem>>, %arg2: memref<784x1280xbf16, #tpu.memory_space<vmem>>, %arg3: memref<1x1280xf32, #tpu.memory_space<vmem>>, %arg4: memref<1280x384xbf16, #tpu.memory_space<vmem>>, %arg5: memref<1x384xf32, #tpu.memory_space<vmem>>, %arg6: memref<384x128xbf16, #tpu.memory_space<vmem>>, %arg7: memref<1x128xf32, #tpu.memory_space<vmem>>, %arg8: memref<128x128xbf16, #tpu.memory_space<vmem>>, %arg9: memref<1x128xf32, #tpu.memory_space<vmem>>, %arg10: memref<8x128xf32, #tpu.memory_space<vmem>>) attributes {dimension_semantics = [#tpu.dimension_semantics<parallel>], iteration_bounds = array<i64: 1>, scalar_prefetch = 0 : i64, scratch_operands = 0 : i64, tpu.core_type = #tpu.core_type<tc>, window_params = [{transform_indices = @transform_0, window_bounds = array<i64: 8, 784>}, {pipeline_mode = #tpu.pipeline_mode<synchronous>, transform_indices = @transform_1, window_bounds = array<i64: 784, 1280>}, {pipeline_mode = #tpu.pipeline_mode<synchronous>, transform_indices = @transform_2, window_bounds = array<i64: 1, 1280>}, {pipeline_mode = #tpu.pipeline_mode<synchronous>, transform_indices = @transform_3, window_bounds = array<i64: 1280, 384>}, {pipeline_mode = #tpu.pipeline_mode<synchronous>, transform_indices = @transform_4, window_bounds = array<i64: 1, 384>}, {pipeline_mode = #tpu.pipeline_mode<synchronous>, transform_indices = @transform_5, window_bounds = array<i64: 384, 128>}, {pipeline_mode = #tpu.pipeline_mode<synchronous>, transform_indices = @transform_6, window_bounds = array<i64: 1, 128>}, {pipeline_mode = #tpu.pipeline_mode<synchronous>, transform_indices = @transform_7, window_bounds = array<i64: 128, 128>}, {pipeline_mode = #tpu.pipeline_mode<synchronous>, transform_indices = @transform_8, window_bounds = array<i64: 1, 128>}, {transform_indices = @transform_9, window_bounds = array<i64: 8, 128>}]} {
    %c0 = arith.constant 0 : index
    %c0_0 = arith.constant 0 : index
    %0 = vector.load %arg1[%c0, %c0_0] : memref<8x784xbf16, #tpu.memory_space<vmem>>, vector<8x784xbf16>
    %cst = arith.constant 0.000000e+00 : bf16
    %1 = vector.broadcast %cst : bf16 to vector<8x784xbf16>
    %2 = arith.maximumf %0, %1 : vector<8x784xbf16>
    %c0_1 = arith.constant 0 : index
    %c0_2 = arith.constant 0 : index
    %3 = vector.load %arg2[%c0_1, %c0_2] : memref<784x1280xbf16, #tpu.memory_space<vmem>>, vector<784x1280xbf16>
    %cst_3 = arith.constant dense<0.000000e+00> : vector<8x1280xf32>
    %4 = tpu.matmul %2, %3, %cst_3 {dimension_numbers = #tpu.dot_dimension_numbers<[1], [0], [0], [1], [0, 0, 1, 1], [], []>} : vector<8x784xbf16>, vector<784x1280xbf16>, vector<8x1280xf32> -> vector<8x1280xf32>
    %c0_4 = arith.constant 0 : index
    %c0_5 = arith.constant 0 : index
    %5 = vector.load %arg3[%c0_4, %c0_5] : memref<1x1280xf32, #tpu.memory_space<vmem>>, vector<1x1280xf32>
    %6 = vector.broadcast %5 : vector<1x1280xf32> to vector<8x1280xf32>
    %7 = arith.addf %4, %6 : vector<8x1280xf32>
    %cst_6 = arith.constant 0.000000e+00 : f32
    %8 = vector.broadcast %cst_6 : f32 to vector<8x1280xf32>
    %9 = arith.maximumf %7, %8 : vector<8x1280xf32>
    %10 = arith.truncf %9 : vector<8x1280xf32> to vector<8x1280xbf16>
    %c0_7 = arith.constant 0 : index
    %c0_8 = arith.constant 0 : index
    %11 = vector.load %arg4[%c0_7, %c0_8] : memref<1280x384xbf16, #tpu.memory_space<vmem>>, vector<1280x384xbf16>
    %cst_9 = arith.constant dense<0.000000e+00> : vector<8x384xf32>
    %12 = tpu.matmul %10, %11, %cst_9 {dimension_numbers = #tpu.dot_dimension_numbers<[1], [0], [0], [1], [0, 0, 1, 1], [], []>} : vector<8x1280xbf16>, vector<1280x384xbf16>, vector<8x384xf32> -> vector<8x384xf32>
    %c0_10 = arith.constant 0 : index
    %c0_11 = arith.constant 0 : index
    %13 = vector.load %arg5[%c0_10, %c0_11] : memref<1x384xf32, #tpu.memory_space<vmem>>, vector<1x384xf32>
    %14 = vector.broadcast %13 : vector<1x384xf32> to vector<8x384xf32>
    %15 = arith.addf %12, %14 : vector<8x384xf32>
    %cst_12 = arith.constant 0.000000e+00 : f32
    %16 = vector.broadcast %cst_12 : f32 to vector<8x384xf32>
    %17 = arith.maximumf %15, %16 : vector<8x384xf32>
    %18 = arith.truncf %17 : vector<8x384xf32> to vector<8x384xbf16>
    %c0_13 = arith.constant 0 : index
    %c0_14 = arith.constant 0 : index
    %19 = vector.load %arg6[%c0_13, %c0_14] : memref<384x128xbf16, #tpu.memory_space<vmem>>, vector<384x128xbf16>
    %cst_15 = arith.constant dense<0.000000e+00> : vector<8x128xf32>
    %20 = tpu.matmul %18, %19, %cst_15 {dimension_numbers = #tpu.dot_dimension_numbers<[1], [0], [0], [1], [0, 0, 1, 1], [], []>} : vector<8x384xbf16>, vector<384x128xbf16>, vector<8x128xf32> -> vector<8x128xf32>
    %c0_16 = arith.constant 0 : index
    %c0_17 = arith.constant 0 : index
    %21 = vector.load %arg7[%c0_16, %c0_17] : memref<1x128xf32, #tpu.memory_space<vmem>>, vector<1x128xf32>
    %22 = vector.broadcast %21 : vector<1x128xf32> to vector<8x128xf32>
    %23 = arith.addf %20, %22 : vector<8x128xf32>
    %cst_18 = arith.constant 0.000000e+00 : f32
    %24 = vector.broadcast %cst_18 : f32 to vector<8x128xf32>
    %25 = arith.maximumf %23, %24 : vector<8x128xf32>
    %26 = arith.truncf %25 : vector<8x128xf32> to vector<8x128xbf16>
    %c0_19 = arith.constant 0 : index
    %c0_20 = arith.constant 0 : index
    %27 = vector.load %arg8[%c0_19, %c0_20] : memref<128x128xbf16, #tpu.memory_space<vmem>>, vector<128x128xbf16>
    %cst_21 = arith.constant dense<0.000000e+00> : vector<8x128xf32>
    %28 = tpu.matmul %26, %27, %cst_21 {dimension_numbers = #tpu.dot_dimension_numbers<[1], [0], [0], [1], [0, 0, 1, 1], [], []>} : vector<8x128xbf16>, vector<128x128xbf16>, vector<8x128xf32> -> vector<8x128xf32>
    %c0_22 = arith.constant 0 : index
    %c0_23 = arith.constant 0 : index
    %29 = vector.load %arg9[%c0_22, %c0_23] : memref<1x128xf32, #tpu.memory_space<vmem>>, vector<1x128xf32>
    %30 = vector.broadcast %29 : vector<1x128xf32> to vector<8x128xf32>
    %31 = arith.addf %28, %30 : vector<8x128xf32>
    %c0_24 = arith.constant 0 : index
    %c0_25 = arith.constant 0 : index
    %32 = vector.load %arg10[%c0_24, %c0_25] : memref<8x128xf32, #tpu.memory_space<vmem>>, vector<8x128xf32>
    tpu.vector_store %arg10[%c0_24, %c0_25], %31 {strides = array<i32>} : memref<8x128xf32, #tpu.memory_space<vmem>>, vector<8x128xf32>,
    return
  }
  func.func @transform_0(%arg0: i32) -> (i32, i32) {
    %c0_i32 = arith.constant 0 : i32
    %c0_i32_0 = arith.constant 0 : i32
    return %arg0, %c0_i32 : i32, i32
  }
  func.func @transform_1(%arg0: i32) -> (i32, i32) {
    %c0_i32 = arith.constant 0 : i32
    %c0_i32_0 = arith.constant 0 : i32
    %c0_i32_1 = arith.constant 0 : i32
    return %c0_i32, %c0_i32_0 : i32, i32
  }
  func.func @transform_2(%arg0: i32) -> (i32, i32) {
    %c0_i32 = arith.constant 0 : i32
    %c0_i32_0 = arith.constant 0 : i32
    %c0_i32_1 = arith.constant 0 : i32
    return %c0_i32, %c0_i32_0 : i32, i32
  }
  func.func @transform_3(%arg0: i32) -> (i32, i32) {
    %c0_i32 = arith.constant 0 : i32
    %c0_i32_0 = arith.constant 0 : i32
    %c0_i32_1 = arith.constant 0 : i32
    return %c0_i32, %c0_i32_0 : i32, i32
  }
  func.func @transform_4(%arg0: i32) -> (i32, i32) {
    %c0_i32 = arith.constant 0 : i32
    %c0_i32_0 = arith.constant 0 : i32
    %c0_i32_1 = arith.constant 0 : i32
    return %c0_i32, %c0_i32_0 : i32, i32
  }
  func.func @transform_5(%arg0: i32) -> (i32, i32) {
    %c0_i32 = arith.constant 0 : i32
    %c0_i32_0 = arith.constant 0 : i32
    %c0_i32_1 = arith.constant 0 : i32
    return %c0_i32, %c0_i32_0 : i32, i32
  }
  func.func @transform_6(%arg0: i32) -> (i32, i32) {
    %c0_i32 = arith.constant 0 : i32
    %c0_i32_0 = arith.constant 0 : i32
    %c0_i32_1 = arith.constant 0 : i32
    return %c0_i32, %c0_i32_0 : i32, i32
  }
  func.func @transform_7(%arg0: i32) -> (i32, i32) {
    %c0_i32 = arith.constant 0 : i32
    %c0_i32_0 = arith.constant 0 : i32
    %c0_i32_1 = arith.constant 0 : i32
    return %c0_i32, %c0_i32_0 : i32, i32
  }
  func.func @transform_8(%arg0: i32) -> (i32, i32) {
    %c0_i32 = arith.constant 0 : i32
    %c0_i32_0 = arith.constant 0 : i32
    %c0_i32_1 = arith.constant 0 : i32
    return %c0_i32, %c0_i32_0 : i32, i32
  }
  func.func @transform_9(%arg0: i32) -> (i32, i32) {
    %c0_i32 = arith.constant 0 : i32
    %c0_i32_0 = arith.constant 0 : i32
    return %arg0, %c0_i32 : i32, i32
  }
}

</mosaic_0001>

<bundles_post_ra>
// kernel: teacher_net_forward.1
= control target key start
LH: loop header
LB: loop body
LE: loop exit
PB: predicated region body
PF: predicated region fallthrough
CT: control target
= control target key end

     0   :  { %14 = vsyncpa [#allocation3], 0  ;;  %s9148_s0 = inlined_call_operand.vmem [shape: bf16[8,784], index: 0, kind: input, shape index: {}]   ;;  %s9149_s1 = inlined_call_operand.hbm [shape: bf16[784,1280], index: 1, kind: input, shape index: {}]   ;;  %s9150_s2 = inlined_call_operand.hbm [shape: f32[1,1280], index: 2, kind: input, shape index: {}]   ;;  %s9151_s3 = inlined_call_operand.hbm [shape: bf16[1280,384], index: 3, kind: input, shape index: {}]   ;;  %s9152_s4 = inlined_call_operand.hbm [shape: f32[1,384], index: 4, kind: input, shape index: {}]   ;;  %s9153_s5 = inlined_call_operand.hbm [shape: bf16[384,128], index: 5, kind: input, shape index: {}]   ;;  %s9154_s6 = inlined_call_operand.hbm [shape: f32[1,128], index: 6, kind: input, shape index: {}]   ;;  %s9155_s7 = inlined_call_operand.hbm [shape: bf16[128,128], index: 7, kind: input, shape index: {}]   ;;  %s9156_s8 = inlined_call_operand.hbm [shape: f32[1,128], index: 8, kind: input, shape index: {}]   ;;  %s9157_s9 = inlined_call_operand.vmem [shape: f32[8,128], index: 9, kind: output, shape index: {}]  }
   0x1   :  { %15 = vsyncpa [#allocation5], 0 }
   0x2   :  { %16 = vsyncpa [#allocation8], 0 }
   0x3   :  { %17 = vsyncpa [#allocation11], 0 }
   0x4   :  { %18 = vsyncpa [#allocation14], 0  ;;  %s8777_s30 = smov [#allocation4]   ;;  %s8778_s11 = smov [#allocation7]  }
   0x5   :  { %s39_s10 = sshll.u32 %s8777_s30, 4  ;;  %s61_s12 = sshll.u32 %s8778_s11, 4  ;;  %s40_s10 = int_to_ptr.vmem [resolvable:$true] %s39_s10  ;;  %s62_s12 = int_to_ptr.vmem [resolvable:$true] %s61_s12 }
   0x6   :  { %s8591_s15 = scalar_lea.hbm %s9150_s2, 160 }
   0x7   :  { %p8592_p0 = scmp.ne.s32.totalorder %s9150_s2, %s8591_s15  ;;  %p8595_p1 = scmp.lt.u32.totalorder %s8591_s15, %s9150_s2 }
   0x9   :  { %p8597_p2 = pnand %p8595_p1, %p8592_p0 }
   0xb   :  { %8600 = shalt.err (!%p8597_p2)
}
   0xc   :  { %s8601_s20 = scalar_lea.vmem %s40_s10, 160  ;;  %p8606_p4 = scmp.lt.s32.totalorder %s40_s10, %s40_s10 }
   0xd   :  { %p8602_p3 = scmp.ne.s32.totalorder %s40_s10, %s8601_s20  ;;  %p8607_p5 = scmp.lt.s32.totalorder %s8601_s20, %s8601_s20 }
   0xf   :  { %p8608_p6 = por %p8607_p5, %p8606_p4 }
  0x11   :  { %p8609_p7 = pnand %p8608_p6, %p8602_p3 }
  0x13   :  { %8612 = shalt.err (!%p8609_p7)
}
  0x14   :  { %42 = dma.hbm_to_vmem [thread:$0]  %s9150_s2, 160, %s40_s10, [#allocation5]  }
  0x15   :  { %s8613_s25 = scalar_lea.hbm %s9152_s4, 48 }
  0x16   :  { %p8614_p8 = scmp.ne.s32.totalorder %s9152_s4, %s8613_s25  ;;  %p8617_p9 = scmp.lt.u32.totalorder %s8613_s25, %s9152_s4 }
  0x18   :  { %p8619_p10 = pnand %p8617_p9, %p8614_p8 }
  0x1a   :  { %8622 = shalt.err (!%p8619_p10)
}
  0x1b   :  { %s8623_s30 = scalar_lea.vmem %s62_s12, 48  ;;  %s8627_s11 = scalar_lea.vmem %s62_s12, 64 }
  0x1c   :  { %p8624_p11 = scmp.ne.s32.totalorder %s62_s12, %s8623_s30  ;;  %p8628_p12 = scmp.lt.s32.totalorder %s62_s12, %s62_s12 }
  0x1d   :  { %p8629_p13 = scmp.lt.s32.totalorder %s8627_s11, %s8623_s30 }
  0x1f   :  { %p8630_p0 = por %p8629_p13, %p8628_p12 }
  0x21   :  { %p8631_p1 = pnand %p8630_p0, %p8624_p11 }
  0x23   :  { %8634 = shalt.err (!%p8631_p1)
}
  0x24   :  { %64 = dma.hbm_to_vmem [thread:$0]  %s9152_s4, 48, %s62_s12, [#allocation8]  }
  0x25   :  { %s8779_s13 = smov [#allocation10]   ;;  %s8780_s15 = smov [#allocation2]  }
  0x26   :  { %s83_s14 = sshll.u32 %s8779_s13, 4  ;;  %s26_s16 = sshll.u32 %s8780_s15, 4  ;;  %s84_s14 = int_to_ptr.vmem [resolvable:$true] %s83_s14  ;;  %s8868_s16 = int_to_ptr.vmem [resolvable:$true] %s26_s16 }
  0x27   :  { %s8635_s19 = scalar_lea.hbm %s9154_s6, 16 }
  0x28   :  { %p8636_p2 = scmp.ne.s32.totalorder %s9154_s6, %s8635_s19  ;;  %p8639_p3 = scmp.lt.u32.totalorder %s8635_s19, %s9154_s6 }
  0x2a   :  { %p8641_p4 = pnand %p8639_p3, %p8636_p2 }
  0x2c   :  { %8644 = shalt.err (!%p8641_p4)
}
  0x2d   :  { %s8645_s4 = scalar_lea.vmem %s84_s14, 16  ;;  %s8649_s12 = scalar_lea.vmem %s84_s14, 32 }
  0x2e   :  { %p8646_p5 = scmp.ne.s32.totalorder %s84_s14, %s8645_s4  ;;  %p8650_p6 = scmp.lt.s32.totalorder %s84_s14, %s84_s14 }
  0x2f   :  { %p8651_p7 = scmp.lt.s32.totalorder %s8649_s12, %s8645_s4 }
  0x31   :  { %p8652_p8 = por %p8651_p7, %p8650_p6 }
  0x33   :  { %p8653_p9 = pnand %p8652_p8, %p8646_p5 }
  0x35   :  { %8656 = shalt.err (!%p8653_p9)
}
  0x36   :  { %86 = dma.hbm_to_vmem [thread:$0]  %s9154_s6, 16, %s84_s14, [#allocation11]  }
  0x37   :  { %s8657_s28 = scalar_lea.hbm %s9149_s1, 62720 }
  0x38   :  { %p8658_p10 = scmp.ne.s32.totalorder %s9149_s1, %s8657_s28  ;;  %p8661_p11 = scmp.lt.u32.totalorder %s8657_s28, %s9149_s1 }
  0x3a   :  { %p8663_p12 = pnand %p8661_p11, %p8658_p10 }
  0x3c   :  { %8666 = shalt.err (!%p8663_p12)
}
  0x3d   :  { %s8667_s10 = scalar_lea.vmem %s8868_s16, 62720  ;;  %p8672_p0 = scmp.lt.s32.totalorder %s8868_s16, %s8868_s16 }
  0x3e   :  { %p8668_p13 = scmp.ne.s32.totalorder %s8868_s16, %s8667_s10  ;;  %p8673_p1 = scmp.lt.s32.totalorder %s8667_s10, %s8667_s10 }
  0x40   :  { %p8674_p2 = por %p8673_p1, %p8672_p0 }
  0x42   :  { %p8675_p3 = pnand %p8674_p2, %p8668_p13 }
  0x44   :  { %8678 = shalt.err (!%p8675_p3)
}
  0x45   :  { %s8781_s6 = smov 640   ;;  %s8782_s13 = smov 40  }
  0x46   :  { %32 = dma.hbm_to_vmem [thread:$0]  %s9149_s1, 62720, %s8868_s16, [#allocation3], %s8781_s6, %s8781_s6, %s8782_s13  }
  0x47   :  { %s8783_s17 = smov [#allocation6]   ;;  %s8679_s21 = scalar_lea.hbm %s9151_s3, 30720 }
  0x48   :  { %s48_s18 = sshll.u32 %s8783_s17, 4  ;;  %p8680_p4 = scmp.ne.s32.totalorder %s9151_s3, %s8679_s21  ;;  %s49_s18 = int_to_ptr.vmem [resolvable:$true] %s48_s18 }
  0x49   :  { %p8683_p5 = scmp.lt.u32.totalorder %s8679_s21, %s9151_s3 }
  0x4b   :  { %p8685_p6 = pnand %p8683_p5, %p8680_p4 }
  0x4d   :  { %8688 = shalt.err (!%p8685_p6)
}
  0x4e   :  { %s8689_s24 = scalar_lea.vmem %s49_s18, 30720  ;;  %p8694_p8 = scmp.lt.s32.totalorder %s49_s18, %s49_s18 }
  0x4f   :  { %p8690_p7 = scmp.ne.s32.totalorder %s49_s18, %s8689_s24  ;;  %p8695_p9 = scmp.lt.s32.totalorder %s8689_s24, %s8689_s24 }
  0x51   :  { %p8696_p10 = por %p8695_p9, %p8694_p8 }
  0x53   :  { %p8697_p11 = pnand %p8696_p10, %p8690_p7 }
  0x55   :  { %8700 = shalt.err (!%p8697_p11)
}
  0x56   :  { %s8784_s1 = smov 192   ;;  %s8785_s16 = smov 12  }
  0x57   :  { %54 = dma.hbm_to_vmem [thread:$0]  %s9151_s3, 30720, %s49_s18, [#allocation5], %s8784_s1, %s8784_s1, %s8785_s16  }
  0x58   :  { %s8786_s27 = smov [#allocation9]   ;;  %s8701_s11 = scalar_lea.hbm %s9153_s5, 3072 }
  0x59   :  { %s70_s28 = sshll.u32 %s8786_s27, 4  ;;  %p8702_p12 = scmp.ne.s32.totalorder %s9153_s5, %s8701_s11  ;;  %s71_s28 = int_to_ptr.vmem [resolvable:$true] %s70_s28 }
  0x5a   :  { %p8705_p13 = scmp.lt.u32.totalorder %s8701_s11, %s9153_s5 }
  0x5c   :  { %p8707_p0 = pnand %p8705_p13, %p8702_p12 }
  0x5e   :  { %8710 = shalt.err (!%p8707_p0)
}
  0x5f   :  { %s8711_s14 = scalar_lea.vmem %s71_s28, 3072  ;;  %p8716_p2 = scmp.lt.s32.totalorder %s71_s28, %s71_s28 }
  0x60   :  { %p8712_p1 = scmp.ne.s32.totalorder %s71_s28, %s8711_s14  ;;  %p8717_p3 = scmp.lt.s32.totalorder %s8711_s14, %s8711_s14 }
  0x62   :  { %p8718_p4 = por %p8717_p3, %p8716_p2 }
  0x64   :  { %p8719_p5 = pnand %p8718_p4, %p8712_p1 }
  0x66   :  { %8722 = shalt.err (!%p8719_p5)
}
  0x67   :  { %s8787_s3 = smov 64   ;;  %s8788_s15 = smov 4  }
  0x68   :  { %76 = dma.hbm_to_vmem [thread:$0]  %s9153_s5, 3072, %s71_s28, [#allocation8], %s8787_s3, %s8787_s3, %s8788_s15  }
  0x69   :  { %s8789_s19 = smov [#allocation12]   ;;  %s8790_s21 = smov [#allocation13]  }
  0x6a   :  { %s92_s20 = sshll.u32 %s8789_s19, 4  ;;  %s105_s22 = sshll.u32 %s8790_s21, 4  ;;  %s93_s20 = int_to_ptr.vmem [resolvable:$true] %s92_s20  ;;  %s106_s22 = int_to_ptr.vmem [resolvable:$true] %s105_s22 }
  0x6b   :  { %s8723_s12 = scalar_lea.hbm %s9155_s7, 1024 }
  0x6c   :  { %p8724_p6 = scmp.ne.s32.totalorder %s9155_s7, %s8723_s12  ;;  %p8727_p7 = scmp.lt.u32.totalorder %s8723_s12, %s9155_s7 }
  0x6e   :  { %p8729_p8 = pnand %p8727_p7, %p8724_p6 }
  0x70   :  { %8732 = shalt.err (!%p8729_p8)
}
  0x71   :  { %s8733_s5 = scalar_lea.vmem %s93_s20, 1024  ;;  %p8738_p10 = scmp.lt.s32.totalorder %s93_s20, %s93_s20 }
  0x72   :  { %p8734_p9 = scmp.ne.s32.totalorder %s93_s20, %s8733_s5  ;;  %p8739_p11 = scmp.lt.s32.totalorder %s8733_s5, %s8733_s5 }
  0x74   :  { %p8740_p12 = por %p8739_p11, %p8738_p10 }
  0x76   :  { %p8741_p13 = pnand %p8740_p12, %p8734_p9 }
  0x78   :  { %8744 = shalt.err (!%p8741_p13)
}
  0x79   :  { %98 = dma.hbm_to_vmem [thread:$0]  %s9155_s7, 1024, %s93_s20, [#allocation11], %s8787_s3, %s8787_s3, %s8788_s15  }
  0x7a   :  { %s8745_s30 = scalar_lea.hbm %s9156_s8, 16 }
  0x7b   :  { %p8746_p0 = scmp.ne.s32.totalorder %s9156_s8, %s8745_s30  ;;  %p8749_p1 = scmp.lt.u32.totalorder %s8745_s30, %s9156_s8 }
  0x7d   :  { %p8751_p2 = pnand %p8749_p1, %p8746_p0 }
  0x7f   :  { %8754 = shalt.err (!%p8751_p2)
}
  0x80   :  { %s8755_s13 = scalar_lea.vmem %s106_s22, 16  ;;  %s8759_s14 = scalar_lea.vmem %s106_s22, 32 }
  0x81   :  { %p8756_p3 = scmp.ne.s32.totalorder %s106_s22, %s8755_s13  ;;  %p8760_p4 = scmp.lt.s32.totalorder %s106_s22, %s106_s22 }
  0x82   :  { %p8761_p5 = scmp.lt.s32.totalorder %s8759_s14, %s8755_s13 }
  0x84   :  { %p8762_p6 = por %p8761_p5, %p8760_p4 }
  0x86   :  { %p8763_p7 = pnand %p8762_p6, %p8756_p3 }
  0x88   :  { %8766 = shalt.err (!%p8763_p7)
}
  0x89   :  { %108 = dma.hbm_to_vmem [thread:$0]  %s9156_s8, 16, %s106_s22, [#allocation14]  }
  0x8a   :  { %8767 = dma.done.wait [#allocation3], 62720  }
  0x8b   :  { %8768 = vsyncadd [#allocation3], 4294904576 }
  0x8c   :  { %8769 = dma.done.wait [#allocation5], 30880  }
  0x8d   :  { %8770 = vsyncadd [#allocation5], 4294936416 }
  0x8e   :  { %8771 = dma.done.wait [#allocation8], 3120  }
  0x8f   :  { %8772 = vsyncadd [#allocation8], 4294964176 }
  0x90   :  { %8773 = dma.done.wait [#allocation11], 1040  }
  0x91   :  { %8774 = vsyncadd [#allocation11], 4294966256 }
  0x92   :  { %8775 = dma.done.wait [#allocation14], 16  }
  0x93   :  { %8776 = vsyncadd [#allocation14], 4294967280  ;;  %v8791_v0 = vmov 0   ;;  %v7503_v1 = vld [vmem:[#allocation2 + $0x4] ss:$40 sps:$4 sm:$0xff]   ;;  %vm3160_vm0 = vcmask 130048  }
  0x94   :  { %3319 = vmatprep.mubr.bf16.mxu1 %v8791_v0  ;;  %v7505_v2 = vld [vmem:[#allocation2 + $0xf04] ss:$40 sps:$4 sm:$0xff]   ;;  %3164 = vmatprep.subr.bf16.mxu0 %v7503_v1  ;;  %v7507_v3 = vld [vmem:[#allocation2] ss:$40 sps:$4 sm:$0xff]   ;;  %v7509_v5 = vld [vmem:[#allocation2 + $0x54] ss:$40 sps:$4 sm:$0xff]  }
  0x95   :  { %v7508_v4 = vld [vmem:[#allocation2 + $0xf00] ss:$40 sps:$4 sm:$0xff]   ;;  %3287 = vmatprep.subr.bf16.mxu1 %v7505_v2  ;;  %3165 = vmatpush1.bf16.msra.mxu0 %v7507_v3  ;;  %v7513_v6 = vld [vmem:[#allocation2 + $0xc] ss:$40 sps:$4 sm:$0xff]   ;;  %v7514_v7 = vld [vmem:[#allocation2 + $0x50] ss:$40 sps:$4 sm:$0xff]  }
  0x96   :  { %3288 = vmatpush1.bf16.msra.mxu1 %v7508_v4  ;;  %3166 = vmatprep.subr.bf16.mxu0 %v7509_v5  ;;  %v137_v8 = vld [vmem:[%s9148_s0 + $0x18] sm:$0xf]  ;;  %v7515_v10 = vld [vmem:[#allocation2 + $0xa4] ss:$40 sps:$4 sm:$0xff]   ;;  %v7511_v11 = vld [vmem:[#allocation2 + $0x8] ss:$40 sps:$4 sm:$0xff]  }
  0x97   :  { %3328 = vmatprep.subr.bf16.mxu1 %v7513_v6  ;;  %v141_v9 = vmax.bf16 %v8791_v0, %v137_v8  ;;  %v7519_v12 = vld [vmem:[#allocation2 + $0x5c] ss:$40 sps:$4 sm:$0xff]   ;;  %v7520_v14 = vld [vmem:[#allocation2 + $0xa0] ss:$40 sps:$4 sm:$0xff]   ;;  %v7525_v17 = vld [vmem:[#allocation2 + $0xac] ss:$40 sps:$4 sm:$0xff]  }
  0x98   :  { %v7521_v15 = vld [vmem:[#allocation2 + $0xf4] ss:$40 sps:$4 sm:$0xff]   ;;  %v7517_v16 = vld [vmem:[#allocation2 + $0x58] ss:$40 sps:$4 sm:$0xff]   ;;  %v7527_v19 = vld [vmem:[#allocation2 + $0x144] ss:$40 sps:$4 sm:$0xff]  }
  0x99   :  { %3167 = vmatpush1.bf16.msra.mxu0 %v7514_v7  ;;  %v8952_v13 = vcombine.low %v141_v9, %v141_v9  ;;  %v7526_v18 = vld [vmem:[#allocation2 + $0xf0] ss:$40 sps:$4 sm:$0xff]   ;;  %v7531_v21 = vld [vmem:[#allocation2 + $0xfc] ss:$40 sps:$4 sm:$0xff]   ;;  %v7532_v22 = vld [vmem:[#allocation2 + $0x140] ss:$40 sps:$4 sm:$0xff]  }
  0x9a   :  { %3168 = vmatprep.subr.bf16.mxu0 %v7515_v10  ;;  %v7523_v20 = vld [vmem:[#allocation2 + $0xa8] ss:$40 sps:$4 sm:$0xff]   ;;  %v7533_v23 = vld [vmem:[#allocation2 + $0x194] ss:$40 sps:$4 sm:$0xff]   ;;  %v7529_v24 = vld [vmem:[#allocation2 + $0xf8] ss:$40 sps:$4 sm:$0xff]  }
  0x9b   :  { %6931 = vmatmul.mubr.msk.bf16.vlgmr.msra.gmra.mrb[0].mxu1 %vm3160_vm0, %v8952_v13  ;;  %v7537_v25 = vld [vmem:[#allocation2 + $0x14c] ss:$40 sps:$4 sm:$0xff]   ;;  %v7538_v26 = vld [vmem:[#allocation2 + $0x190] ss:$40 sps:$4 sm:$0xff]   ;;  %v7543_v29 = vld [vmem:[#allocation2 + $0x19c] ss:$40 sps:$4 sm:$0xff]  }
  0x9c   :  { %3329 = vmatpush1.bf16.msra.mxu1 %v7511_v11  ;;  %v7539_v27 = vld [vmem:[#allocation2 + $0x1e4] ss:$40 sps:$4 sm:$0xff]   ;;  %v7535_v28 = vld [vmem:[#allocation2 + $0x148] ss:$40 sps:$4 sm:$0xff]   ;;  %v7545_v31 = vld [vmem:[#allocation2 + $0x234] ss:$40 sps:$4 sm:$0xff]  }
  0x9d   :  { %3330 = vmatprep.subr.bf16.mxu1 %v7519_v12  ;;  %3169 = vmatpush1.bf16.msra.mxu0 %v7520_v14  ;;  %v7544_v30 = vld [vmem:[#allocation2 + $0x1e0] ss:$40 sps:$4 sm:$0xff]   ;;  %v7549_v33 = vld [vmem:[#allocation2 + $0x1ec] ss:$40 sps:$4 sm:$0xff]   ;;  %v7550_v34 = vld [vmem:[#allocation2 + $0x230] ss:$40 sps:$4 sm:$0xff]  }
  0x9e   :  { %3170 = vmatprep.subr.bf16.mxu0 %v7521_v15  ;;  %v7541_v32 = vld [vmem:[#allocation2 + $0x198] ss:$40 sps:$4 sm:$0xff]   ;;  %v7551_v35 = vld [vmem:[#allocation2 + $0x284] ss:$40 sps:$4 sm:$0xff]   ;;  %v7547_v36 = vld [vmem:[#allocation2 + $0x1e8] ss:$40 sps:$4 sm:$0xff]  }
  0x9f   :  { %v7555_v37 = vld [vmem:[#allocation2 + $0x23c] ss:$40 sps:$4 sm:$0xff]   ;;  %v7556_v38 = vld [vmem:[#allocation2 + $0x280] ss:$40 sps:$4 sm:$0xff]   ;;  %v7561_v41 = vld [vmem:[#allocation2 + $0x28c] ss:$40 sps:$4 sm:$0xff]  }
  0xa0   :  { %3331 = vmatpush1.bf16.msra.mxu1 %v7517_v16  ;;  %v7557_v39 = vld [vmem:[#allocation2 + $0x2d4] ss:$40 sps:$4 sm:$0xff]   ;;  %v7553_v40 = vld [vmem:[#allocation2 + $0x238] ss:$40 sps:$4 sm:$0xff]   ;;  %v7563_v43 = vld [vmem:[#allocation2 + $0x324] ss:$40 sps:$4 sm:$0xff]  }
  0xa1   :  { %3332 = vmatprep.subr.bf16.mxu1 %v7525_v17  ;;  %3171 = vmatpush1.bf16.msra.mxu0 %v7526_v18  ;;  %v7562_v42 = vld [vmem:[#allocation2 + $0x2d0] ss:$40 sps:$4 sm:$0xff]   ;;  %v7567_v45 = vld [vmem:[#allocation2 + $0x2dc] ss:$40 sps:$4 sm:$0xff]   ;;  %v7568_v46 = vld [vmem:[#allocation2 + $0x320] ss:$40 sps:$4 sm:$0xff]  }
  0xa2   :  { %3172 = vmatprep.subr.bf16.mxu0 %v7527_v19  ;;  %v7559_v44 = vld [vmem:[#allocation2 + $0x288] ss:$40 sps:$4 sm:$0xff]   ;;  %v7569_v47 = vld [vmem:[#allocation2 + $0x374] ss:$40 sps:$4 sm:$0xff]   ;;  %v7565_v48 = vld [vmem:[#allocation2 + $0x2d8] ss:$40 sps:$4 sm:$0xff]  }
  0xa3   :  { %v134_v49 = vld [vmem:[%s9148_s0] sm:$0xff]  ;;  %v7573_v50 = vld [vmem:[#allocation2 + $0x32c] ss:$40 sps:$4 sm:$0xff]   ;;  %v7574_v51 = vld [vmem:[#allocation2 + $0x370] ss:$40 sps:$4 sm:$0xff]   ;;  %vm8793_vm1 = vmmov 0  }
  0xa4   :  { %3333 = vmatpush1.bf16.msra.mxu1 %v7523_v20  ;;  %v138_v52 = vmax.bf16 %v8791_v0, %v134_v49  ;;  %v7575_v53 = vld [vmem:[#allocation2 + $0x3c4] ss:$40 sps:$4 sm:$0xff]   ;;  %v7571_v55 = vld [vmem:[#allocation2 + $0x328] ss:$40 sps:$4 sm:$0xff]   ;;  %v7581_v58 = vld [vmem:[#allocation2 + $0x414] ss:$40 sps:$4 sm:$0xff]  }
  0xa5   :  { %3334 = vmatprep.subr.bf16.mxu1 %v7531_v21  ;;  %3173 = vmatpush1.bf16.msra.mxu0 %v7532_v22  ;;  %v7579_v56 = vld [vmem:[#allocation2 + $0x37c] ss:$40 sps:$4 sm:$0xff]   ;;  %v7580_v57 = vld [vmem:[#allocation2 + $0x3c0] ss:$40 sps:$4 sm:$0xff]   ;;  %v7585_v60 = vld [vmem:[#allocation2 + $0x3cc] ss:$40 sps:$4 sm:$0xff]  }
  0xa6   :  { %3174 = vmatprep.subr.bf16.mxu0 %v7533_v23  ;;  %v8960_v54 = vcombine.high %v138_v52, %v138_v52  ;;  %v7577_v59 = vld [vmem:[#allocation2 + $0x378] ss:$40 sps:$4 sm:$0xff]   ;;  %v7587_v62 = vld [vmem:[#allocation2 + $0x464] ss:$40 sps:$4 sm:$0xff]   ;;  %v7583_v63 = vld [vmem:[#allocation2 + $0x3c8] ss:$40 sps:$4 sm:$0xff]   ;;  %v8964_v9 = vcombine.low %v138_v52, %v138_v52 }
  0xa7   :  { %v7586_v61 = vld [vmem:[#allocation2 + $0x410] ss:$40 sps:$4 sm:$0xff]   ;;  %v7591_v1 = vld [vmem:[#allocation2 + $0x41c] ss:$40 sps:$4 sm:$0xff]   ;;  %v7592_v2 = vld [vmem:[#allocation2 + $0x460] ss:$40 sps:$4 sm:$0xff]  }
  0xa8   :  { %3335 = vmatpush1.bf16.msra.mxu1 %v7529_v24  ;;  %3196 = vmatprep.mubr.bf16.mxu0 %v8960_v54  ;;  %v7593_v3 = vld [vmem:[#allocation2 + $0x4b4] ss:$40 sps:$4 sm:$0xff]   ;;  %v7589_v4 = vld [vmem:[#allocation2 + $0x418] ss:$40 sps:$4 sm:$0xff]   ;;  %v7601_v7 = vld [vmem:[#allocation2 + $0x504] ss:$40 sps:$4 sm:$0xff]  }
  0xa9   :  { %3336 = vmatprep.subr.bf16.mxu1 %v7537_v25  ;;  %3175 = vmatpush1.bf16.msra.mxu0 %v7538_v26  ;;  %v7597_v5 = vld [vmem:[#allocation2 + $0x46c] ss:$40 sps:$4 sm:$0xff]   ;;  %v7598_v6 = vld [vmem:[#allocation2 + $0x4b0] ss:$40 sps:$4 sm:$0xff]   ;;  %v7599_v10 = vld [vmem:[#allocation2 + $0x500] ss:$40 sps:$4 sm:$0xff]  }
  0xaa   :  { %3176 = vmatprep.subr.bf16.mxu0 %v7539_v27  ;;  %3360 = vmatprep.mubr.bf16.mxu1 %v8960_v54  ;;  %v7595_v8 = vld [vmem:[#allocation2 + $0x468] ss:$40 sps:$4 sm:$0xff]   ;;  %v7604_v11 = vld [vmem:[#allocation2 + $0x4bc] ss:$40 sps:$4 sm:$0xff]   ;;  %v7602_v14 = vld [vmem:[#allocation2 + $0x4b8] ss:$40 sps:$4 sm:$0xff]  }
  0xab   :  { %v7607_v12 = vld [vmem:[#allocation2 + $0x554] ss:$40 sps:$4 sm:$0xff]   ;;  %v7605_v15 = vld [vmem:[#allocation2 + $0x550] ss:$40 sps:$4 sm:$0xff]   ;;  %v7613_v17 = vld [vmem:[#allocation2 + $0x5a4] ss:$40 sps:$4 sm:$0xff]  }
  0xac   :  { %3337 = vmatpush1.bf16.msra.mxu1 %v7535_v28  ;;  %v7610_v16 = vld [vmem:[#allocation2 + $0x50c] ss:$40 sps:$4 sm:$0xff]   ;;  %v7608_v18 = vld [vmem:[#allocation2 + $0x508] ss:$40 sps:$4 sm:$0xff]   ;;  %v7616_v20 = vld [vmem:[#allocation2 + $0x55c] ss:$40 sps:$4 sm:$0xff]  }
  0xad   :  { %3338 = vmatprep.subr.bf16.mxu1 %v7543_v29  ;;  %3177 = vmatpush1.bf16.msra.mxu0 %v7544_v30  ;;  %v7611_v19 = vld [vmem:[#allocation2 + $0x5a0] ss:$40 sps:$4 sm:$0xff]   ;;  %v7619_v21 = vld [vmem:[#allocation2 + $0x5f4] ss:$40 sps:$4 sm:$0xff]   ;;  %v7617_v23 = vld [vmem:[#allocation2 + $0x5f0] ss:$40 sps:$4 sm:$0xff]  }
  0xae   :  { %3178 = vmatprep.subr.bf16.mxu0 %v7545_v31  ;;  %v7614_v22 = vld [vmem:[#allocation2 + $0x558] ss:$40 sps:$4 sm:$0xff]   ;;  %v7622_v24 = vld [vmem:[#allocation2 + $0x5ac] ss:$40 sps:$4 sm:$0xff]   ;;  %v7620_v26 = vld [vmem:[#allocation2 + $0x5a8] ss:$40 sps:$4 sm:$0xff]  }
  0xaf   :  { %v7625_v25 = vld [vmem:[#allocation2 + $0x644] ss:$40 sps:$4 sm:$0xff]   ;;  %v7623_v27 = vld [vmem:[#allocation2 + $0x640] ss:$40 sps:$4 sm:$0xff]   ;;  %v7631_v29 = vld [vmem:[#allocation2 + $0x694] ss:$40 sps:$4 sm:$0xff]  }
  0xb0   :  { %3339 = vmatpush1.bf16.msra.mxu1 %v7541_v32  ;;  %v7628_v28 = vld [vmem:[#allocation2 + $0x5fc] ss:$40 sps:$4 sm:$0xff]   ;;  %v7626_v30 = vld [vmem:[#allocation2 + $0x5f8] ss:$40 sps:$4 sm:$0xff]   ;;  %v7634_v32 = vld [vmem:[#allocation2 + $0x64c] ss:$40 sps:$4 sm:$0xff]  }
  0xb1   :  { %3340 = vmatprep.subr.bf16.mxu1 %v7549_v33  ;;  %3179 = vmatpush1.bf16.msra.mxu0 %v7550_v34  ;;  %v7629_v31 = vld [vmem:[#allocation2 + $0x690] ss:$40 sps:$4 sm:$0xff]   ;;  %v7637_v33 = vld [vmem:[#allocation2 + $0x6e4] ss:$40 sps:$4 sm:$0xff]  }
  0xb2   :  { %3180 = vmatprep.subr.bf16.mxu0 %v7551_v35  ;;  %v135_v34 = vld [vmem:[%s9148_s0 + $0x8] sm:$0xff]  ;;  %v7650_v49 = vld [vmem:[#allocation2 + $0x738] ss:$40 sps:$4 sm:$0xff]  }
  0xb3   :  { %v7632_v35 = vld [vmem:[#allocation2 + $0x648] ss:$40 sps:$4 sm:$0xff]   ;;  %v7661_v52 = vld [vmem:[#allocation2 + $0x824] ss:$40 sps:$4 sm:$0xff]  }
  0xb4   :  { %3341 = vmatpush1.bf16.msra.mxu1 %v7547_v36  ;;  %v8972_v36 = vmax.bf16 %v8791_v0, %v135_v34  ;;  %v7713_v34 = vld [vmem:[#allocation2 + $0xaf0] ss:$40 sps:$4 sm:$0xff]  }
  0xb5   :  { %3342 = vmatprep.subr.bf16.mxu1 %v7555_v37  ;;  %3181 = vmatpush1.bf16.msra.mxu0 %v7556_v38  ;;  %v7635_v37 = vld [vmem:[#allocation2 + $0x6e0] ss:$40 sps:$4 sm:$0xff]   ;;  %v7640_v38 = vld [vmem:[#allocation2 + $0x69c] ss:$40 sps:$4 sm:$0xff]  }
  0xb6   :  { %3182 = vmatprep.subr.bf16.mxu0 %v7557_v39  ;;  %v7643_v39 = vld [vmem:[#allocation2 + $0x734] ss:$40 sps:$4 sm:$0xff]  }
  0xb8   :  { %3343 = vmatpush1.bf16.msra.mxu1 %v7553_v40  ;;  %v8976_v40 = vcombine.high %v8972_v36, %v8972_v36 }
  0xb9   :  { %3344 = vmatprep.subr.bf16.mxu1 %v7561_v41  ;;  %3183 = vmatpush1.bf16.msra.mxu0 %v7562_v42  ;;  %v7638_v41 = vld [vmem:[#allocation2 + $0x698] ss:$40 sps:$4 sm:$0xff]  }
  0xba   :  { %3184 = vmatprep.subr.bf16.mxu0 %v7563_v43  ;;  %v7641_v42 = vld [vmem:[#allocation2 + $0x730] ss:$40 sps:$4 sm:$0xff]   ;;  %v7646_v43 = vld [vmem:[#allocation2 + $0x6ec] ss:$40 sps:$4 sm:$0xff]  }
  0xbc   :  { %3345 = vmatpush1.bf16.msra.mxu1 %v7559_v44  ;;  %v7649_v44 = vld [vmem:[#allocation2 + $0x784] ss:$40 sps:$4 sm:$0xff]  }
  0xbd   :  { %3346 = vmatprep.subr.bf16.mxu1 %v7567_v45  ;;  %3185 = vmatpush1.bf16.msra.mxu0 %v7568_v46  ;;  %v7644_v45 = vld [vmem:[#allocation2 + $0x6e8] ss:$40 sps:$4 sm:$0xff]  }
  0xbe   :  { %3186 = vmatprep.subr.bf16.mxu0 %v7569_v47  ;;  %v7647_v46 = vld [vmem:[#allocation2 + $0x780] ss:$40 sps:$4 sm:$0xff]   ;;  %v7652_v47 = vld [vmem:[#allocation2 + $0x73c] ss:$40 sps:$4 sm:$0xff]  }
  0xc0   :  { %3347 = vmatpush1.bf16.msra.mxu1 %v7565_v48  ;;  %v7655_v48 = vld [vmem:[#allocation2 + $0x7d4] ss:$40 sps:$4 sm:$0xff]  }
  0xc1   :  { %3348 = vmatprep.subr.bf16.mxu1 %v7573_v50  ;;  %3187 = vmatpush1.bf16.msra.mxu0 %v7574_v51  ;;  %v7653_v50 = vld [vmem:[#allocation2 + $0x7d0] ss:$40 sps:$4 sm:$0xff]   ;;  %v7658_v51 = vld [vmem:[#allocation2 + $0x78c] ss:$40 sps:$4 sm:$0xff]  }
  0xc2   :  { %3188 = vmatprep.subr.bf16.mxu0 %v7575_v53  ;;  %v7656_v53 = vld [vmem:[#allocation2 + $0x788] ss:$40 sps:$4 sm:$0xff]  }
  0xc4   :  { %3349 = vmatpush1.bf16.msra.mxu1 %v7571_v55  ;;  %v7659_v55 = vld [vmem:[#allocation2 + $0x820] ss:$40 sps:$4 sm:$0xff]  }
  0xc5   :  { %3350 = vmatprep.subr.bf16.mxu1 %v7579_v56  ;;  %3189 = vmatpush1.bf16.msra.mxu0 %v7580_v57  ;;  %v7664_v56 = vld [vmem:[#allocation2 + $0x7dc] ss:$40 sps:$4 sm:$0xff]  }
  0xc6   :  { %3190 = vmatprep.subr.bf16.mxu0 %v7581_v58  ;;  %v7667_v57 = vld [vmem:[#allocation2 + $0x874] ss:$40 sps:$4 sm:$0xff]   ;;  %v7662_v58 = vld [vmem:[#allocation2 + $0x7d8] ss:$40 sps:$4 sm:$0xff]  }
  0xc8   :  { %3351 = vmatpush1.bf16.msra.mxu1 %v7577_v59  ;;  %v7665_v59 = vld [vmem:[#allocation2 + $0x870] ss:$40 sps:$4 sm:$0xff]  }
  0xc9   :  { %3352 = vmatprep.subr.bf16.mxu1 %v7585_v60  ;;  %3191 = vmatpush1.bf16.msra.mxu0 %v7586_v61  ;;  %v7670_v60 = vld [vmem:[#allocation2 + $0x82c] ss:$40 sps:$4 sm:$0xff]  }
  0xca   :  { %3192 = vmatprep.subr.bf16.mxu0 %v7587_v62  ;;  %v7673_v61 = vld [vmem:[#allocation2 + $0x8c4] ss:$40 sps:$4 sm:$0xff]   ;;  %v7668_v62 = vld [vmem:[#allocation2 + $0x828] ss:$40 sps:$4 sm:$0xff]  }
  0xcc   :  { %3353 = vmatpush1.bf16.msra.mxu1 %v7583_v63  ;;  %v7671_v63 = vld [vmem:[#allocation2 + $0x8c0] ss:$40 sps:$4 sm:$0xff]  }
  0xcd   :  { %3354 = vmatprep.subr.bf16.mxu1 %v7591_v1  ;;  %3193 = vmatpush1.bf16.msra.mxu0 %v7592_v2  ;;  %v7676_v1 = vld [vmem:[#allocation2 + $0x87c] ss:$40 sps:$4 sm:$0xff]  }
  0xce   :  { %3194 = vmatprep.subr.bf16.mxu0 %v7593_v3  ;;  %v7679_v2 = vld [vmem:[#allocation2 + $0x914] ss:$40 sps:$4 sm:$0xff]   ;;  %v7674_v3 = vld [vmem:[#allocation2 + $0x878] ss:$40 sps:$4 sm:$0xff]  }
  0xd0   :  { %3355 = vmatpush1.bf16.msra.mxu1 %v7589_v4  ;;  %v7677_v4 = vld [vmem:[#allocation2 + $0x910] ss:$40 sps:$4 sm:$0xff]  }
  0xd1   :  { %3356 = vmatprep.subr.bf16.mxu1 %v7597_v5  ;;  %3195 = vmatpush1.bf16.msra.mxu0 %v7598_v6  ;;  %v7682_v5 = vld [vmem:[#allocation2 + $0x8cc] ss:$40 sps:$4 sm:$0xff]  }
  0xd2   :  { %3205 = vmatprep.subr.bf16.mxu0 %v7601_v7  ;;  %v7685_v6 = vld [vmem:[#allocation2 + $0x964] ss:$40 sps:$4 sm:$0xff]   ;;  %v7680_v7 = vld [vmem:[#allocation2 + $0x8c8] ss:$40 sps:$4 sm:$0xff]  }
  0xd4   :  { %3357 = vmatpush1.bf16.msra.mxu1 %v7595_v8  ;;  %3197 = vmatmul.mubr.bf16.vlgmr.msra.gmra.mrb[0].mxu0 %v8964_v9  ;;  %v7683_v8 = vld [vmem:[#allocation2 + $0x960] ss:$40 sps:$4 sm:$0xff]  }
  0xd5   :  { %3358 = vmatprep.subr.bf16.mxu1 %v7604_v11  ;;  %3206 = vmatpush1.bf16.msra.mxu0 %v7599_v10  ;;  %v7688_v10 = vld [vmem:[#allocation2 + $0x91c] ss:$40 sps:$4 sm:$0xff]  }
  0xd6   :  { %3207 = vmatprep.subr.bf16.mxu0 %v7607_v12  ;;  %3237 = vmatprep.mubr.bf16.mxu0 %v8976_v40  ;;  %v7691_v11 = vld [vmem:[#allocation2 + $0x9b4] ss:$40 sps:$4 sm:$0xff]   ;;  %v7686_v12 = vld [vmem:[#allocation2 + $0x918] ss:$40 sps:$4 sm:$0xff]  }
  0xd8   :  { %3359 = vmatpush1.bf16.msra.mxu1 %v7602_v14  ;;  %v7689_v14 = vld [vmem:[#allocation2 + $0x9b0] ss:$40 sps:$4 sm:$0xff]  }
  0xd9   :  { %3369 = vmatprep.subr.bf16.mxu1 %v7610_v16  ;;  %3208 = vmatpush1.bf16.msra.mxu0 %v7605_v15  ;;  %v7694_v15 = vld [vmem:[#allocation2 + $0x96c] ss:$40 sps:$4 sm:$0xff]  }
  0xda   :  { %3209 = vmatprep.subr.bf16.mxu0 %v7613_v17  ;;  %v7697_v16 = vld [vmem:[#allocation2 + $0xa04] ss:$40 sps:$4 sm:$0xff]   ;;  %v7692_v17 = vld [vmem:[#allocation2 + $0x968] ss:$40 sps:$4 sm:$0xff]  }
  0xdb   :  { %3361 = vmatmul.mubr.bf16.vlgmr.msra.gmra.mrb[4].mxu1 %v8964_v9 }
  0xdc   :  { %3370 = vmatpush1.bf16.msra.mxu1 %v7608_v18  ;;  %3401 = vmatprep.mubr.bf16.mxu1 %v8976_v40  ;;  %v7695_v18 = vld [vmem:[#allocation2 + $0xa00] ss:$40 sps:$4 sm:$0xff]  }
  0xdd   :  { %3371 = vmatprep.subr.bf16.mxu1 %v7616_v20  ;;  %3210 = vmatpush1.bf16.msra.mxu0 %v7611_v19  ;;  %v8982_v19 = vcombine.low %v8972_v36, %v8972_v36  ;;  %v7700_v20 = vld [vmem:[#allocation2 + $0x9bc] ss:$40 sps:$4 sm:$0xff]  }
  0xde   :  { %3211 = vmatprep.subr.bf16.mxu0 %v7619_v21  ;;  %v7703_v21 = vld [vmem:[#allocation2 + $0xa54] ss:$40 sps:$4 sm:$0xff]   ;;  %v7721_v36 = vld [vmem:[#allocation2 + $0xb44] ss:$40 sps:$4 sm:$0xff]  }
  0xe0   :  { %3372 = vmatpush1.bf16.msra.mxu1 %v7614_v22  ;;  %v136_v22 = vld [vmem:[%s9148_s0 + $0x10] sm:$0xff] }
  0xe1   :  { %3373 = vmatprep.subr.bf16.mxu1 %v7622_v24  ;;  %3212 = vmatpush1.bf16.msra.mxu0 %v7617_v23  ;;  %v8988_v23 = vmax.bf16 %v8791_v0, %v136_v22  ;;  %v7698_v24 = vld [vmem:[#allocation2 + $0x9b8] ss:$40 sps:$4 sm:$0xff]   ;;  %v7787_v22 = vld [vmem:[#allocation2 + $0xeb4] ss:$40 sps:$4 sm:$0xff]  }
  0xe2   :  { %3213 = vmatprep.subr.bf16.mxu0 %v7625_v25  ;;  %v7701_v25 = vld [vmem:[#allocation2 + $0xa50] ss:$40 sps:$4 sm:$0xff]  }
  0xe4   :  { %3374 = vmatpush1.bf16.msra.mxu1 %v7620_v26  ;;  %v7706_v26 = vld [vmem:[#allocation2 + $0xa0c] ss:$40 sps:$4 sm:$0xff]  }
  0xe5   :  { %3375 = vmatprep.subr.bf16.mxu1 %v7628_v28  ;;  %3214 = vmatpush1.bf16.msra.mxu0 %v7623_v27  ;;  %v8993_v27 = vcombine.high %v8988_v23, %v8988_v23  ;;  %v7709_v28 = vld [vmem:[#allocation2 + $0xaa4] ss:$40 sps:$4 sm:$0xff]  }
  0xe6   :  { %3215 = vmatprep.subr.bf16.mxu0 %v7631_v29  ;;  %v7704_v29 = vld [vmem:[#allocation2 + $0xa08] ss:$40 sps:$4 sm:$0xff]  }
  0xe8   :  { %3376 = vmatpush1.bf16.msra.mxu1 %v7626_v30  ;;  %v7707_v30 = vld [vmem:[#allocation2 + $0xaa0] ss:$40 sps:$4 sm:$0xff]  }
  0xe9   :  { %3377 = vmatprep.subr.bf16.mxu1 %v7634_v32  ;;  %3216 = vmatpush1.bf16.msra.mxu0 %v7629_v31  ;;  %v7712_v31 = vld [vmem:[#allocation2 + $0xa5c] ss:$40 sps:$4 sm:$0xff]  }
  0xea   :  { %3217 = vmatprep.subr.bf16.mxu0 %v7637_v33  ;;  %v7715_v32 = vld [vmem:[#allocation2 + $0xaf4] ss:$40 sps:$4 sm:$0xff]   ;;  %v7710_v33 = vld [vmem:[#allocation2 + $0xa58] ss:$40 sps:$4 sm:$0xff]  }
  0xec   :  { %3378 = vmatpush1.bf16.msra.mxu1 %v7632_v35  ;;  %v7718_v35 = vld [vmem:[#allocation2 + $0xaac] ss:$40 sps:$4 sm:$0xff]  }
  0xed   :  { %3379 = vmatprep.subr.bf16.mxu1 %v7640_v38  ;;  %3218 = vmatpush1.bf16.msra.mxu0 %v7635_v37  ;;  %v7716_v37 = vld [vmem:[#allocation2 + $0xaa8] ss:$40 sps:$4 sm:$0xff]  }
  0xee   :  { %3219 = vmatprep.subr.bf16.mxu0 %v7643_v39  ;;  %v7719_v38 = vld [vmem:[#allocation2 + $0xb40] ss:$40 sps:$4 sm:$0xff]   ;;  %v7724_v39 = vld [vmem:[#allocation2 + $0xafc] ss:$40 sps:$4 sm:$0xff]  }
  0xf0   :  { %3380 = vmatpush1.bf16.msra.mxu1 %v7638_v41  ;;  %v7727_v41 = vld [vmem:[#allocation2 + $0xb94] ss:$40 sps:$4 sm:$0xff]  }
  0xf1   :  { %3381 = vmatprep.subr.bf16.mxu1 %v7646_v43  ;;  %3220 = vmatpush1.bf16.msra.mxu0 %v7641_v42  ;;  %v7722_v42 = vld [vmem:[#allocation2 + $0xaf8] ss:$40 sps:$4 sm:$0xff]  }
  0xf2   :  { %3221 = vmatprep.subr.bf16.mxu0 %v7649_v44  ;;  %v7725_v43 = vld [vmem:[#allocation2 + $0xb90] ss:$40 sps:$4 sm:$0xff]   ;;  %v7730_v44 = vld [vmem:[#allocation2 + $0xb4c] ss:$40 sps:$4 sm:$0xff]  }
  0xf4   :  { %3382 = vmatpush1.bf16.msra.mxu1 %v7644_v45  ;;  %v7733_v45 = vld [vmem:[#allocation2 + $0xbe4] ss:$40 sps:$4 sm:$0xff]  }
  0xf5   :  { %3383 = vmatprep.subr.bf16.mxu1 %v7652_v47  ;;  %3222 = vmatpush1.bf16.msra.mxu0 %v7647_v46  ;;  %v7728_v46 = vld [vmem:[#allocation2 + $0xb48] ss:$40 sps:$4 sm:$0xff]  }
  0xf6   :  { %3223 = vmatprep.subr.bf16.mxu0 %v7655_v48  ;;  %v7731_v47 = vld [vmem:[#allocation2 + $0xbe0] ss:$40 sps:$4 sm:$0xff]   ;;  %v7736_v48 = vld [vmem:[#allocation2 + $0xb9c] ss:$40 sps:$4 sm:$0xff]  }
  0xf8   :  { %3384 = vmatpush1.bf16.msra.mxu1 %v7650_v49  ;;  %v7739_v49 = vld [vmem:[#allocation2 + $0xc34] ss:$40 sps:$4 sm:$0xff]  }
  0xf9   :  { %3385 = vmatprep.subr.bf16.mxu1 %v7658_v51  ;;  %3224 = vmatpush1.bf16.msra.mxu0 %v7653_v50  ;;  %v7734_v50 = vld [vmem:[#allocation2 + $0xb98] ss:$40 sps:$4 sm:$0xff]  }
  0xfa   :  { %3225 = vmatprep.subr.bf16.mxu0 %v7661_v52  ;;  %v7737_v51 = vld [vmem:[#allocation2 + $0xc30] ss:$40 sps:$4 sm:$0xff]   ;;  %v7742_v52 = vld [vmem:[#allocation2 + $0xbec] ss:$40 sps:$4 sm:$0xff]  }
  0xfc   :  { %3386 = vmatpush1.bf16.msra.mxu1 %v7656_v53  ;;  %v7745_v53 = vld [vmem:[#allocation2 + $0xc84] ss:$40 sps:$4 sm:$0xff]  }
  0xfd   :  { %3387 = vmatprep.subr.bf16.mxu1 %v7664_v56  ;;  %3226 = vmatpush1.bf16.msra.mxu0 %v7659_v55  ;;  %v7740_v55 = vld [vmem:[#allocation2 + $0xbe8] ss:$40 sps:$4 sm:$0xff]  }
  0xfe   :  { %3227 = vmatprep.subr.bf16.mxu0 %v7667_v57  ;;  %v7743_v56 = vld [vmem:[#allocation2 + $0xc80] ss:$40 sps:$4 sm:$0xff]   ;;  %v7748_v57 = vld [vmem:[#allocation2 + $0xc3c] ss:$40 sps:$4 sm:$0xff]  }
 0x100   :  { %3388 = vmatpush1.bf16.msra.mxu1 %v7662_v58  ;;  %v7751_v58 = vld [vmem:[#allocation2 + $0xcd4] ss:$40 sps:$4 sm:$0xff]  }
 0x101   :  { %3389 = vmatprep.subr.bf16.mxu1 %v7670_v60  ;;  %3228 = vmatpush1.bf16.msra.mxu0 %v7665_v59  ;;  %v7746_v59 = vld [vmem:[#allocation2 + $0xc38] ss:$40 sps:$4 sm:$0xff]  }
 0x102   :  { %3229 = vmatprep.subr.bf16.mxu0 %v7673_v61  ;;  %v7749_v60 = vld [vmem:[#allocation2 + $0xcd0] ss:$40 sps:$4 sm:$0xff]   ;;  %v7754_v61 = vld [vmem:[#allocation2 + $0xc8c] ss:$40 sps:$4 sm:$0xff]  }
 0x104   :  { %3390 = vmatpush1.bf16.msra.mxu1 %v7668_v62  ;;  %v7757_v62 = vld [vmem:[#allocation2 + $0xd24] ss:$40 sps:$4 sm:$0xff]  }
 0x105   :  { %3391 = vmatprep.subr.bf16.mxu1 %v7676_v1  ;;  %3230 = vmatpush1.bf16.msra.mxu0 %v7671_v63  ;;  %v7752_v63 = vld [vmem:[#allocation2 + $0xc88] ss:$40 sps:$4 sm:$0xff]  }
 0x106   :  { %3231 = vmatprep.subr.bf16.mxu0 %v7679_v2  ;;  %v7755_v1 = vld [vmem:[#allocation2 + $0xd20] ss:$40 sps:$4 sm:$0xff]   ;;  %v7760_v2 = vld [vmem:[#allocation2 + $0xcdc] ss:$40 sps:$4 sm:$0xff]  }
 0x108   :  { %3392 = vmatpush1.bf16.msra.mxu1 %v7674_v3  ;;  %v7763_v3 = vld [vmem:[#allocation2 + $0xd74] ss:$40 sps:$4 sm:$0xff]  }
 0x109   :  { %3393 = vmatprep.subr.bf16.mxu1 %v7682_v5  ;;  %3232 = vmatpush1.bf16.msra.mxu0 %v7677_v4  ;;  %v7758_v4 = vld [vmem:[#allocation2 + $0xcd8] ss:$40 sps:$4 sm:$0xff]  }
 0x10a   :  { %3233 = vmatprep.subr.bf16.mxu0 %v7685_v6  ;;  %v7761_v5 = vld [vmem:[#allocation2 + $0xd70] ss:$40 sps:$4 sm:$0xff]   ;;  %v7766_v6 = vld [vmem:[#allocation2 + $0xd2c] ss:$40 sps:$4 sm:$0xff]  }
 0x10c   :  { %3394 = vmatpush1.bf16.msra.mxu1 %v7680_v7  ;;  %v7769_v7 = vld [vmem:[#allocation2 + $0xdc4] ss:$40 sps:$4 sm:$0xff]  }
 0x10d   :  { %3395 = vmatprep.subr.bf16.mxu1 %v7688_v10  ;;  %3234 = vmatpush1.bf16.msra.mxu0 %v7683_v8  ;;  %v7764_v8 = vld [vmem:[#allocation2 + $0xd28] ss:$40 sps:$4 sm:$0xff]  }
 0x10e   :  { %3235 = vmatprep.subr.bf16.mxu0 %v7691_v11  ;;  %v7767_v10 = vld [vmem:[#allocation2 + $0xdc0] ss:$40 sps:$4 sm:$0xff]   ;;  %v7772_v11 = vld [vmem:[#allocation2 + $0xd7c] ss:$40 sps:$4 sm:$0xff]  }
 0x110   :  { %3396 = vmatpush1.bf16.msra.mxu1 %v7686_v12  ;;  %v7775_v12 = vld [vmem:[#allocation2 + $0xe14] ss:$40 sps:$4 sm:$0xff]  }
 0x111   :  { %3397 = vmatprep.subr.bf16.mxu1 %v7694_v15  ;;  %3236 = vmatpush1.bf16.msra.mxu0 %v7689_v14  ;;  %v7770_v14 = vld [vmem:[#allocation2 + $0xd78] ss:$40 sps:$4 sm:$0xff]  }
 0x112   :  { %3246 = vmatprep.subr.bf16.mxu0 %v7697_v16  ;;  %v7773_v15 = vld [vmem:[#allocation2 + $0xe10] ss:$40 sps:$4 sm:$0xff]   ;;  %v7778_v16 = vld [vmem:[#allocation2 + $0xdcc] ss:$40 sps:$4 sm:$0xff]  }
 0x114   :  { %3398 = vmatpush1.bf16.msra.mxu1 %v7692_v17  ;;  %3238 = vmatmul.mubr.bf16.vlgmr.msra.gmra.mrb[0].mxu0 %v8982_v19  ;;  %v7781_v17 = vld [vmem:[#allocation2 + $0xe64] ss:$40 sps:$4 sm:$0xff]  }
 0x115   :  { %3399 = vmatprep.subr.bf16.mxu1 %v7700_v20  ;;  %3247 = vmatpush1.bf16.msra.mxu0 %v7695_v18  ;;  %v7776_v18 = vld [vmem:[#allocation2 + $0xdc8] ss:$40 sps:$4 sm:$0xff]  }
 0x116   :  { %3248 = vmatprep.subr.bf16.mxu0 %v7703_v21  ;;  %3278 = vmatprep.mubr.bf16.mxu0 %v8993_v27  ;;  %v7779_v20 = vld [vmem:[#allocation2 + $0xe60] ss:$40 sps:$4 sm:$0xff]   ;;  %v7784_v21 = vld [vmem:[#allocation2 + $0xe1c] ss:$40 sps:$4 sm:$0xff]  }
 0x118   :  { %3400 = vmatpush1.bf16.msra.mxu1 %v7698_v24  ;;  %v7782_v24 = vld [vmem:[#allocation2 + $0xe18] ss:$40 sps:$4 sm:$0xff]  }
 0x119   :  { %3410 = vmatprep.subr.bf16.mxu1 %v7706_v26  ;;  %3249 = vmatpush1.bf16.msra.mxu0 %v7701_v25  ;;  %v7785_v25 = vld [vmem:[#allocation2 + $0xeb0] ss:$40 sps:$4 sm:$0xff]   ;;  %v7790_v26 = vld [vmem:[#allocation2 + $0xe6c] ss:$40 sps:$4 sm:$0xff]  }
 0x11a   :  { %3250 = vmatprep.subr.bf16.mxu0 %v7709_v28  ;;  %v7796_v28 = vld [vmem:[#allocation2 + $0x14] ss:$40 sps:$4 sm:$0xff]  }
 0x11b   :  { %3402 = vmatmul.mubr.bf16.vlgmr.msra.gmra.mrb[4].mxu1 %v8982_v19 }
 0x11c   :  { %3411 = vmatpush1.bf16.msra.mxu1 %v7704_v29  ;;  %3442 = vmatprep.mubr.bf16.mxu1 %v8993_v27  ;;  %v7788_v29 = vld [vmem:[#allocation2 + $0xe68] ss:$40 sps:$4 sm:$0xff]  }
 0x11d   :  { %3412 = vmatprep.subr.bf16.mxu1 %v7712_v31  ;;  %3251 = vmatpush1.bf16.msra.mxu0 %v7707_v30  ;;  %v9000_v30 = vcombine.low %v8988_v23, %v8988_v23  ;;  %v7793_v31 = vld [vmem:[#allocation2 + $0xebc] ss:$40 sps:$4 sm:$0xff]   ;;  %v7800_v23 = vld [vmem:[#allocation2 + $0xb0] ss:$40 sps:$4 sm:$0xff]  }
 0x11e   :  { %3252 = vmatprep.subr.bf16.mxu0 %v7715_v32  ;;  %v7794_v32 = vld [vmem:[#allocation2 + $0x10] ss:$40 sps:$4 sm:$0xff]  }
 0x120   :  { %3413 = vmatpush1.bf16.msra.mxu1 %v7710_v33  ;;  %v7799_v33 = vld [vmem:[#allocation2 + $0x64] ss:$40 sps:$4 sm:$0xff]  }
 0x121   :  { %3414 = vmatprep.subr.bf16.mxu1 %v7718_v35  ;;  %3253 = vmatpush1.bf16.msra.mxu0 %v7713_v34  ;;  %v7791_v34 = vld [vmem:[#allocation2 + $0xeb8] ss:$40 sps:$4 sm:$0xff]  }
 0x122   :  { %3254 = vmatprep.subr.bf16.mxu0 %v7721_v36  ;;  %v7797_v35 = vld [vmem:[#allocation2 + $0x60] ss:$40 sps:$4 sm:$0xff]   ;;  %v7805_v36 = vld [vmem:[#allocation2 + $0xf0c] ss:$40 sps:$4 sm:$0xff]  }
 0x124   :  { %3415 = vmatpush1.bf16.msra.mxu1 %v7716_v37  ;;  %v7802_v37 = vld [vmem:[#allocation2 + $0xb4] ss:$40 sps:$4 sm:$0xff]  }
 0x125   :  { %3416 = vmatprep.subr.bf16.mxu1 %v7724_v39  ;;  %3255 = vmatpush1.bf16.msra.mxu0 %v7719_v38  ;;  %v7803_v38 = vld [vmem:[#allocation2 + $0xf08] ss:$40 sps:$4 sm:$0xff]   ;;  %v7811_v39 = vld [vmem:[#allocation2 + $0x1c] ss:$40 sps:$4 sm:$0xff]  }
 0x126   :  { %3256 = vmatprep.subr.bf16.mxu0 %v7727_v41  ;;  %v7808_v41 = vld [vmem:[#allocation2 + $0x104] ss:$40 sps:$4 sm:$0xff]  }
 0x128   :  { %3417 = vmatpush1.bf16.msra.mxu1 %v7722_v42  ;;  %v7806_v42 = vld [vmem:[#allocation2 + $0x100] ss:$40 sps:$4 sm:$0xff]  }
 0x129   :  { %3418 = vmatprep.subr.bf16.mxu1 %v7730_v44  ;;  %3257 = vmatpush1.bf16.msra.mxu0 %v7725_v43  ;;  %v7814_v43 = vld [vmem:[#allocation2 + $0x154] ss:$40 sps:$4 sm:$0xff]   ;;  %v7812_v44 = vld [vmem:[#allocation2 + $0x150] ss:$40 sps:$4 sm:$0xff]  }
 0x12a   :  { %3258 = vmatprep.subr.bf16.mxu0 %v7733_v45  ;;  %v7820_v45 = vld [vmem:[#allocation2 + $0x1a4] ss:$40 sps:$4 sm:$0xff]  }
 0x12c   :  { %3419 = vmatpush1.bf16.msra.mxu1 %v7728_v46  ;;  %v7809_v46 = vld [vmem:[#allocation2 + $0x18] ss:$40 sps:$4 sm:$0xff]  }
 0x12d   :  { %3420 = vmatprep.subr.bf16.mxu1 %v7736_v48  ;;  %3259 = vmatpush1.bf16.msra.mxu0 %v7731_v47  ;;  %v7817_v47 = vld [vmem:[#allocation2 + $0x6c] ss:$40 sps:$4 sm:$0xff]   ;;  %v7818_v48 = vld [vmem:[#allocation2 + $0x1a0] ss:$40 sps:$4 sm:$0xff]  }
 0x12e   :  { %3260 = vmatprep.subr.bf16.mxu0 %v7739_v49  ;;  %v7826_v49 = vld [vmem:[#allocation2 + $0x1f4] ss:$40 sps:$4 sm:$0xff]  }
 0x130   :  { %3421 = vmatpush1.bf16.msra.mxu1 %v7734_v50  ;;  %v7815_v50 = vld [vmem:[#allocation2 + $0x68] ss:$40 sps:$4 sm:$0xff]  }
 0x131   :  { %3422 = vmatprep.subr.bf16.mxu1 %v7742_v52  ;;  %3261 = vmatpush1.bf16.msra.mxu0 %v7737_v51  ;;  %v7823_v51 = vld [vmem:[#allocation2 + $0xbc] ss:$40 sps:$4 sm:$0xff]   ;;  %v7824_v52 = vld [vmem:[#allocation2 + $0x1f0] ss:$40 sps:$4 sm:$0xff]  }
 0x132   :  { %3262 = vmatprep.subr.bf16.mxu0 %v7745_v53  ;;  %v7832_v53 = vld [vmem:[#allocation2 + $0x244] ss:$40 sps:$4 sm:$0xff]  }
 0x134   :  { %3423 = vmatpush1.bf16.msra.mxu1 %v7740_v55  ;;  %v7821_v55 = vld [vmem:[#allocation2 + $0xb8] ss:$40 sps:$4 sm:$0xff]  }
 0x135   :  { %3424 = vmatprep.subr.bf16.mxu1 %v7748_v57  ;;  %3263 = vmatpush1.bf16.msra.mxu0 %v7743_v56  ;;  %v7829_v56 = vld [vmem:[#allocation2 + $0x10c] ss:$40 sps:$4 sm:$0xff]   ;;  %v7830_v57 = vld [vmem:[#allocation2 + $0x240] ss:$40 sps:$4 sm:$0xff]  }
 0x136   :  { %3264 = vmatprep.subr.bf16.mxu0 %v7751_v58  ;;  %v7838_v58 = vld [vmem:[#allocation2 + $0x294] ss:$40 sps:$4 sm:$0xff]  }
 0x138   :  { %3425 = vmatpush1.bf16.msra.mxu1 %v7746_v59 }
 0x139   :  { %3426 = vmatprep.subr.bf16.mxu1 %v7754_v61  ;;  %3265 = vmatpush1.bf16.msra.mxu0 %v7749_v60  ;;  %v7827_v61 = vld [vmem:[#allocation2 + $0x108] ss:$40 sps:$4 sm:$0xff]  }
 0x13a   :  { %3266 = vmatprep.subr.bf16.mxu0 %v7757_v62  ;;  %v7835_v62 = vld [vmem:[#allocation2 + $0x15c] ss:$40 sps:$4 sm:$0xff]  }
 0x13c   :  { %3427 = vmatpush1.bf16.msra.mxu1 %v7752_v63 }
 0x13d   :  { %3428 = vmatprep.subr.bf16.mxu1 %v7760_v2  ;;  %3267 = vmatpush1.bf16.msra.mxu0 %v7755_v1  ;;  %v7836_v1 = vld [vmem:[#allocation2 + $0x290] ss:$40 sps:$4 sm:$0xff]  }
 0x13e   :  { %3268 = vmatprep.subr.bf16.mxu0 %v7763_v3  ;;  %v7844_v3 = vld [vmem:[#allocation2 + $0x2e4] ss:$40 sps:$4 sm:$0xff]  }
 0x140   :  { %3429 = vmatpush1.bf16.msra.mxu1 %v7758_v4  ;;  %v7833_v4 = vld [vmem:[#allocation2 + $0x158] ss:$40 sps:$4 sm:$0xff]  }
 0x141   :  { %3430 = vmatprep.subr.bf16.mxu1 %v7766_v6  ;;  %3269 = vmatpush1.bf16.msra.mxu0 %v7761_v5  ;;  %v7841_v5 = vld [vmem:[#allocation2 + $0x1ac] ss:$40 sps:$4 sm:$0xff]   ;;  %v7842_v6 = vld [vmem:[#allocation2 + $0x2e0] ss:$40 sps:$4 sm:$0xff]  }
 0x142   :  { %3270 = vmatprep.subr.bf16.mxu0 %v7769_v7  ;;  %v7850_v7 = vld [vmem:[#allocation2 + $0x334] ss:$40 sps:$4 sm:$0xff]  }
 0x144   :  { %3431 = vmatpush1.bf16.msra.mxu1 %v7764_v8  ;;  %v7839_v8 = vld [vmem:[#allocation2 + $0x1a8] ss:$40 sps:$4 sm:$0xff]  }
 0x145   :  { %3432 = vmatprep.subr.bf16.mxu1 %v7772_v11  ;;  %3271 = vmatpush1.bf16.msra.mxu0 %v7767_v10  ;;  %v7847_v10 = vld [vmem:[#allocation2 + $0x1fc] ss:$40 sps:$4 sm:$0xff]   ;;  %v7848_v11 = vld [vmem:[#allocation2 + $0x330] ss:$40 sps:$4 sm:$0xff]  }
 0x146   :  { %3272 = vmatprep.subr.bf16.mxu0 %v7775_v12  ;;  %v7856_v12 = vld [vmem:[#allocation2 + $0x384] ss:$40 sps:$4 sm:$0xff]  }
 0x148   :  { %3433 = vmatpush1.bf16.msra.mxu1 %v7770_v14  ;;  %v7845_v14 = vld [vmem:[#allocation2 + $0x1f8] ss:$40 sps:$4 sm:$0xff]  }
 0x149   :  { %3434 = vmatprep.subr.bf16.mxu1 %v7778_v16  ;;  %3273 = vmatpush1.bf16.msra.mxu0 %v7773_v15  ;;  %v7853_v15 = vld [vmem:[#allocation2 + $0x24c] ss:$40 sps:$4 sm:$0xff]   ;;  %v7854_v16 = vld [vmem:[#allocation2 + $0x380] ss:$40 sps:$4 sm:$0xff]  }
 0x14a   :  { %3274 = vmatprep.subr.bf16.mxu0 %v7781_v17  ;;  %v7862_v17 = vld [vmem:[#allocation2 + $0x3d4] ss:$40 sps:$4 sm:$0xff]  }
 0x14c   :  { %3435 = vmatpush1.bf16.msra.mxu1 %v7776_v18  ;;  %v7851_v18 = vld [vmem:[#allocation2 + $0x248] ss:$40 sps:$4 sm:$0xff]  }
 0x14d   :  { %3436 = vmatprep.subr.bf16.mxu1 %v7784_v21  ;;  %3275 = vmatpush1.bf16.msra.mxu0 %v7779_v20  ;;  %v7859_v20 = vld [vmem:[#allocation2 + $0x29c] ss:$40 sps:$4 sm:$0xff]   ;;  %v7860_v21 = vld [vmem:[#allocation2 + $0x3d0] ss:$40 sps:$4 sm:$0xff]  }
 0x14e   :  { %3276 = vmatprep.subr.bf16.mxu0 %v7787_v22  ;;  %v7868_v22 = vld [vmem:[#allocation2 + $0x424] ss:$40 sps:$4 sm:$0xff]  }
 0x150   :  { %3437 = vmatpush1.bf16.msra.mxu1 %v7782_v24  ;;  %v7857_v24 = vld [vmem:[#allocation2 + $0x298] ss:$40 sps:$4 sm:$0xff]  }
 0x151   :  { %3438 = vmatprep.subr.bf16.mxu1 %v7790_v26  ;;  %3277 = vmatpush1.bf16.msra.mxu0 %v7785_v25  ;;  %v7865_v25 = vld [vmem:[#allocation2 + $0x2ec] ss:$40 sps:$4 sm:$0xff]   ;;  %v7866_v26 = vld [vmem:[#allocation2 + $0x420] ss:$40 sps:$4 sm:$0xff]  }
 0x152   :  { %3492 = vmatprep.subr.bf16.mxu0 %v7796_v28  ;;  %v7874_v28 = vld [vmem:[#allocation2 + $0x474] ss:$40 sps:$4 sm:$0xff]  }
 0x154   :  { %3439 = vmatpush1.bf16.msra.mxu1 %v7788_v29  ;;  %3279 = vmatmul.mubr.bf16.vlgmr.msra.gmra.mrb[0].mxu0 %v9000_v30  ;;  %v7863_v29 = vld [vmem:[#allocation2 + $0x2e8] ss:$40 sps:$4 sm:$0xff]  }
 0x155   :  { %3440 = vmatprep.subr.bf16.mxu1 %v7793_v31  ;;  %3493 = vmatpush1.bf16.msra.mxu0 %v7794_v32  ;;  %v7871_v31 = vld [vmem:[#allocation2 + $0x33c] ss:$40 sps:$4 sm:$0xff]   ;;  %v7872_v32 = vld [vmem:[#allocation2 + $0x470] ss:$40 sps:$4 sm:$0xff]  }
 0x156   :  { %3494 = vmatprep.subr.bf16.mxu0 %v7799_v33  ;;  %3524 = vmatprep.mubr.bf16.mxu0 %v8960_v54  ;;  %v7880_v33 = vld [vmem:[#allocation2 + $0x4c4] ss:$40 sps:$4 sm:$0xff]  }
 0x158   :  { %3441 = vmatpush1.bf16.msra.mxu1 %v7791_v34  ;;  %v7869_v34 = vld [vmem:[#allocation2 + $0x338] ss:$40 sps:$4 sm:$0xff]  }
 0x159   :  { %3495 = vmatpush1.bf16.msra.mxu0 %v7797_v35  ;;  %3451 = vmatprep.subr.bf16.mxu1 %v7805_v36  ;;  %v7877_v35 = vld [vmem:[#allocation2 + $0x38c] ss:$40 sps:$4 sm:$0xff]   ;;  %v7878_v36 = vld [vmem:[#allocation2 + $0x4c0] ss:$40 sps:$4 sm:$0xff]  }
 0x15a   :  { %3496 = vmatprep.subr.bf16.mxu0 %v7802_v37  ;;  %v7886_v37 = vld [vmem:[#allocation2 + $0x514] ss:$40 sps:$4 sm:$0xff]  }
 0x15b   :  { %3443 = vmatmul.mubr.bf16.vlgmr.msra.gmra.mrb[4].mxu1 %v9000_v30 }
 0x15c   :  { %3452 = vmatpush1.bf16.msra.mxu1 %v7803_v38  ;;  %3483 = vmatprep.mubr.bf16.mxu1 %v8791_v0  ;;  %v7883_v38 = vld [vmem:[#allocation2 + $0x3dc] ss:$40 sps:$4 sm:$0xff]  }
 0x15d   :  { %3497 = vmatpush1.bf16.msra.mxu0 %v7800_v23  ;;  %3656 = vmatprep.subr.bf16.mxu1 %v7811_v39  ;;  %v7875_v23 = vld [vmem:[#allocation2 + $0x388] ss:$40 sps:$4 sm:$0xff]  }
 0x15e   :  { %3498 = vmatprep.subr.bf16.mxu0 %v7808_v41  ;;  %v7884_v39 = vld [vmem:[#allocation2 + $0x510] ss:$40 sps:$4 sm:$0xff]   ;;  %v7892_v41 = vld [vmem:[#allocation2 + $0x564] ss:$40 sps:$4 sm:$0xff]  }
 0x161   :  { %3499 = vmatpush1.bf16.msra.mxu0 %v7806_v42  ;;  %v7881_v42 = vld [vmem:[#allocation2 + $0x3d8] ss:$40 sps:$4 sm:$0xff]  }
 0x162   :  { %3500 = vmatprep.subr.bf16.mxu0 %v7814_v43  ;;  %v7889_v43 = vld [vmem:[#allocation2 + $0x42c] ss:$40 sps:$4 sm:$0xff]  }
 0x165   :  { %3501 = vmatpush1.bf16.msra.mxu0 %v7812_v44  ;;  %v7890_v44 = vld [vmem:[#allocation2 + $0x560] ss:$40 sps:$4 sm:$0xff]  }
 0x166   :  { %3502 = vmatprep.subr.bf16.mxu0 %v7820_v45  ;;  %v7898_v45 = vld [vmem:[#allocation2 + $0x5b4] ss:$40 sps:$4 sm:$0xff]  }
 0x167   :  { %6932 = vmatmul.mubr.msk.bf16.vlgmr.msra.gmra.mrb[4].mxu1 %vm3160_vm0, %v8952_v13 }
 0x168   :  { %3657 = vmatpush1.bf16.msra.mxu1 %v7809_v46  ;;  %3688 = vmatprep.mubr.bf16.mxu1 %v8960_v54  ;;  %v7887_v46 = vld [vmem:[#allocation2 + $0x428] ss:$40 sps:$4 sm:$0xff]  }
 0x169   :  { %3658 = vmatprep.subr.bf16.mxu1 %v7817_v47  ;;  %3503 = vmatpush1.bf16.msra.mxu0 %v7818_v48  ;;  %v7895_v47 = vld [vmem:[#allocation2 + $0x47c] ss:$40 sps:$4 sm:$0xff]   ;;  %v7896_v48 = vld [vmem:[#allocation2 + $0x5b0] ss:$40 sps:$4 sm:$0xff]  }
 0x16a   :  { %3504 = vmatprep.subr.bf16.mxu0 %v7826_v49  ;;  %v7904_v49 = vld [vmem:[#allocation2 + $0x604] ss:$40 sps:$4 sm:$0xff]  }
 0x16c   :  { %3659 = vmatpush1.bf16.msra.mxu1 %v7815_v50  ;;  %v7893_v50 = vld [vmem:[#allocation2 + $0x478] ss:$40 sps:$4 sm:$0xff]  }
 0x16d   :  { %3660 = vmatprep.subr.bf16.mxu1 %v7823_v51  ;;  %3505 = vmatpush1.bf16.msra.mxu0 %v7824_v52  ;;  %v7901_v51 = vld [vmem:[#allocation2 + $0x4cc] ss:$40 sps:$4 sm:$0xff]   ;;  %v7902_v52 = vld [vmem:[#allocation2 + $0x600] ss:$40 sps:$4 sm:$0xff]  }
 0x16e   :  { %3506 = vmatprep.subr.bf16.mxu0 %v7832_v53  ;;  %v9009_v59 = vpop.f32.mrb[0].mxu1  ;;  %v7910_v53 = vld [vmem:[#allocation2 + $0x654] ss:$40 sps:$4 sm:$0xff]  }
 0x16f   :  { %v9011_v60 = vpop.f32.mrb[1].mxu1 }
 0x170   :  { %3661 = vmatpush1.bf16.msra.mxu1 %v7821_v55  ;;  %v3325_v63 = vpop.f32.mrb[2].mxu1  ;;  %v7899_v55 = vld [vmem:[#allocation2 + $0x4c8] ss:$40 sps:$4 sm:$0xff]  }
 0x171   :  { %3662 = vmatprep.subr.bf16.mxu1 %v7829_v56  ;;  %3507 = vmatpush1.bf16.msra.mxu0 %v7830_v57  ;;  %v3326_v2 = vpop.f32.mrb[3].mxu1  ;;  %v7907_v56 = vld [vmem:[#allocation2 + $0x51c] ss:$40 sps:$4 sm:$0xff]   ;;  %v7908_v57 = vld [vmem:[#allocation2 + $0x650] ss:$40 sps:$4 sm:$0xff]  }
 0x172   :  { %3508 = vmatprep.subr.bf16.mxu0 %v7838_v58  ;;  %v7916_v58 = vld [vmem:[#allocation2 + $0x6a4] ss:$40 sps:$4 sm:$0xff]   ;;  %v7914_v63 = vld [vmem:[#allocation2 + $0x6a0] ss:$40 sps:$4 sm:$0xff]   ;;  %v7922_v2 = vld [vmem:[#allocation2 + $0x6f4] ss:$40 sps:$4 sm:$0xff]  }
 0x174   :  { %3663 = vmatpush1.bf16.msra.mxu1 %v7827_v61  ;;  %v7905_v61 = vld [vmem:[#allocation2 + $0x518] ss:$40 sps:$4 sm:$0xff]  }
 0x175   :  { %3664 = vmatprep.subr.bf16.mxu1 %v7835_v62  ;;  %3509 = vmatpush1.bf16.msra.mxu0 %v7836_v1  ;;  %v7913_v62 = vld [vmem:[#allocation2 + $0x56c] ss:$40 sps:$4 sm:$0xff]   ;;  %v7911_v1 = vld [vmem:[#allocation2 + $0x568] ss:$40 sps:$4 sm:$0xff]  }
 0x176   :  { %3510 = vmatprep.subr.bf16.mxu0 %v7844_v3  ;;  %v7919_v3 = vld [vmem:[#allocation2 + $0x5bc] ss:$40 sps:$4 sm:$0xff]  }
 0x178   :  { %3665 = vmatpush1.bf16.msra.mxu1 %v7833_v4  ;;  %v7920_v4 = vld [vmem:[#allocation2 + $0x6f0] ss:$40 sps:$4 sm:$0xff]  }
 0x179   :  { %3666 = vmatprep.subr.bf16.mxu1 %v7841_v5  ;;  %3511 = vmatpush1.bf16.msra.mxu0 %v7842_v6  ;;  %v7928_v5 = vld [vmem:[#allocation2 + $0x744] ss:$40 sps:$4 sm:$0xff]   ;;  %v7917_v6 = vld [vmem:[#allocation2 + $0x5b8] ss:$40 sps:$4 sm:$0xff]  }
 0x17a   :  { %3512 = vmatprep.subr.bf16.mxu0 %v7850_v7  ;;  %v7925_v7 = vld [vmem:[#allocation2 + $0x60c] ss:$40 sps:$4 sm:$0xff]  }
 0x17c   :  { %3667 = vmatpush1.bf16.msra.mxu1 %v7839_v8  ;;  %v7926_v8 = vld [vmem:[#allocation2 + $0x740] ss:$40 sps:$4 sm:$0xff]  }
 0x17d   :  { %3668 = vmatprep.subr.bf16.mxu1 %v7847_v10  ;;  %3513 = vmatpush1.bf16.msra.mxu0 %v7848_v11  ;;  %v7934_v10 = vld [vmem:[#allocation2 + $0x794] ss:$40 sps:$4 sm:$0xff]   ;;  %v7923_v11 = vld [vmem:[#allocation2 + $0x608] ss:$40 sps:$4 sm:$0xff]  }
 0x17e   :  { %3514 = vmatprep.subr.bf16.mxu0 %v7856_v12  ;;  %v7931_v12 = vld [vmem:[#allocation2 + $0x65c] ss:$40 sps:$4 sm:$0xff]  }
 0x180   :  { %3669 = vmatpush1.bf16.msra.mxu1 %v7845_v14  ;;  %v7932_v14 = vld [vmem:[#allocation2 + $0x790] ss:$40 sps:$4 sm:$0xff]  }
 0x181   :  { %3670 = vmatprep.subr.bf16.mxu1 %v7853_v15  ;;  %3515 = vmatpush1.bf16.msra.mxu0 %v7854_v16  ;;  %v7940_v15 = vld [vmem:[#allocation2 + $0x7e4] ss:$40 sps:$4 sm:$0xff]   ;;  %v7929_v16 = vld [vmem:[#allocation2 + $0x658] ss:$40 sps:$4 sm:$0xff]  }
 0x182   :  { %3516 = vmatprep.subr.bf16.mxu0 %v7862_v17  ;;  %v7937_v17 = vld [vmem:[#allocation2 + $0x6ac] ss:$40 sps:$4 sm:$0xff]  }
 0x184   :  { %3671 = vmatpush1.bf16.msra.mxu1 %v7851_v18  ;;  %v7938_v18 = vld [vmem:[#allocation2 + $0x7e0] ss:$40 sps:$4 sm:$0xff]  }
 0x185   :  { %3672 = vmatprep.subr.bf16.mxu1 %v7859_v20  ;;  %3517 = vmatpush1.bf16.msra.mxu0 %v7860_v21  ;;  %v7946_v20 = vld [vmem:[#allocation2 + $0x834] ss:$40 sps:$4 sm:$0xff]   ;;  %v7935_v21 = vld [vmem:[#allocation2 + $0x6a8] ss:$40 sps:$4 sm:$0xff]  }
 0x186   :  { %3518 = vmatprep.subr.bf16.mxu0 %v7868_v22  ;;  %v7943_v22 = vld [vmem:[#allocation2 + $0x6fc] ss:$40 sps:$4 sm:$0xff]  }
 0x188   :  { %3673 = vmatpush1.bf16.msra.mxu1 %v7857_v24  ;;  %v7944_v24 = vld [vmem:[#allocation2 + $0x830] ss:$40 sps:$4 sm:$0xff]  }
 0x189   :  { %3674 = vmatprep.subr.bf16.mxu1 %v7865_v25  ;;  %3519 = vmatpush1.bf16.msra.mxu0 %v7866_v26  ;;  %v7941_v25 = vld [vmem:[#allocation2 + $0x6f8] ss:$40 sps:$4 sm:$0xff]   ;;  %v7952_v26 = vld [vmem:[#allocation2 + $0x884] ss:$40 sps:$4 sm:$0xff]  }
 0x18a   :  { %3520 = vmatprep.subr.bf16.mxu0 %v7874_v28  ;;  %v7949_v28 = vld [vmem:[#allocation2 + $0x74c] ss:$40 sps:$4 sm:$0xff]  }
 0x18c   :  { %3675 = vmatpush1.bf16.msra.mxu1 %v7863_v29  ;;  %v7950_v29 = vld [vmem:[#allocation2 + $0x880] ss:$40 sps:$4 sm:$0xff]  }
 0x18d   :  { %3676 = vmatprep.subr.bf16.mxu1 %v7871_v31  ;;  %3521 = vmatpush1.bf16.msra.mxu0 %v7872_v32  ;;  %v7958_v31 = vld [vmem:[#allocation2 + $0x8d4] ss:$40 sps:$4 sm:$0xff]   ;;  %v7947_v32 = vld [vmem:[#allocation2 + $0x748] ss:$40 sps:$4 sm:$0xff]  }
 0x18e   :  { %3522 = vmatprep.subr.bf16.mxu0 %v7880_v33  ;;  %v7955_v33 = vld [vmem:[#allocation2 + $0x79c] ss:$40 sps:$4 sm:$0xff]  }
 0x190   :  { %3677 = vmatpush1.bf16.msra.mxu1 %v7869_v34  ;;  %v7956_v34 = vld [vmem:[#allocation2 + $0x8d0] ss:$40 sps:$4 sm:$0xff]  }
 0x191   :  { %3678 = vmatprep.subr.bf16.mxu1 %v7877_v35  ;;  %3523 = vmatpush1.bf16.msra.mxu0 %v7878_v36  ;;  %v7964_v35 = vld [vmem:[#allocation2 + $0x924] ss:$40 sps:$4 sm:$0xff]   ;;  %v7953_v36 = vld [vmem:[#allocation2 + $0x798] ss:$40 sps:$4 sm:$0xff]  }
 0x192   :  { %3533 = vmatprep.subr.bf16.mxu0 %v7886_v37  ;;  %v7961_v37 = vld [vmem:[#allocation2 + $0x7ec] ss:$40 sps:$4 sm:$0xff]  }
 0x194   :  { %3679 = vmatpush1.bf16.msra.mxu1 %v7875_v23  ;;  %3525 = vmatmul.mubr.bf16.vlgmr.msra.gmra.mrb[4].mxu0 %v8964_v9  ;;  %v7962_v23 = vld [vmem:[#allocation2 + $0x920] ss:$40 sps:$4 sm:$0xff]  }
 0x195   :  { %3680 = vmatprep.subr.bf16.mxu1 %v7883_v38  ;;  %3534 = vmatpush1.bf16.msra.mxu0 %v7884_v39  ;;  %v7970_v38 = vld [vmem:[#allocation2 + $0x974] ss:$40 sps:$4 sm:$0xff]   ;;  %v7959_v39 = vld [vmem:[#allocation2 + $0x7e8] ss:$40 sps:$4 sm:$0xff]  }
 0x196   :  { %3535 = vmatprep.subr.bf16.mxu0 %v7892_v41  ;;  %3565 = vmatprep.mubr.bf16.mxu0 %v8976_v40  ;;  %v7967_v41 = vld [vmem:[#allocation2 + $0x83c] ss:$40 sps:$4 sm:$0xff]  }
 0x198   :  { %3681 = vmatpush1.bf16.msra.mxu1 %v7881_v42  ;;  %v7968_v42 = vld [vmem:[#allocation2 + $0x970] ss:$40 sps:$4 sm:$0xff]  }
 0x199   :  { %3682 = vmatprep.subr.bf16.mxu1 %v7889_v43  ;;  %3536 = vmatpush1.bf16.msra.mxu0 %v7890_v44  ;;  %v7976_v43 = vld [vmem:[#allocation2 + $0x9c4] ss:$40 sps:$4 sm:$0xff]   ;;  %v7965_v44 = vld [vmem:[#allocation2 + $0x838] ss:$40 sps:$4 sm:$0xff]  }
 0x19a   :  { %3537 = vmatprep.subr.bf16.mxu0 %v7898_v45  ;;  %v7973_v45 = vld [vmem:[#allocation2 + $0x88c] ss:$40 sps:$4 sm:$0xff]  }
 0x19c   :  { %3683 = vmatpush1.bf16.msra.mxu1 %v7887_v46  ;;  %v7974_v46 = vld [vmem:[#allocation2 + $0x9c0] ss:$40 sps:$4 sm:$0xff]  }
 0x19d   :  { %3684 = vmatprep.subr.bf16.mxu1 %v7895_v47  ;;  %3538 = vmatpush1.bf16.msra.mxu0 %v7896_v48  ;;  %v7982_v47 = vld [vmem:[#allocation2 + $0xa14] ss:$40 sps:$4 sm:$0xff]   ;;  %v7971_v48 = vld [vmem:[#allocation2 + $0x888] ss:$40 sps:$4 sm:$0xff]  }
 0x19e   :  { %3539 = vmatprep.subr.bf16.mxu0 %v7904_v49  ;;  %v7979_v49 = vld [vmem:[#allocation2 + $0x8dc] ss:$40 sps:$4 sm:$0xff]  }
 0x1a0   :  { %3685 = vmatpush1.bf16.msra.mxu1 %v7893_v50  ;;  %v7980_v50 = vld [vmem:[#allocation2 + $0xa10] ss:$40 sps:$4 sm:$0xff]  }
 0x1a1   :  { %3686 = vmatprep.subr.bf16.mxu1 %v7901_v51  ;;  %3540 = vmatpush1.bf16.msra.mxu0 %v7902_v52  ;;  %v7988_v51 = vld [vmem:[#allocation2 + $0xa64] ss:$40 sps:$4 sm:$0xff]   ;;  %v7977_v52 = vld [vmem:[#allocation2 + $0x8d8] ss:$40 sps:$4 sm:$0xff]  }
 0x1a2   :  { %3541 = vmatprep.subr.bf16.mxu0 %v7910_v53  ;;  %v7985_v53 = vld [vmem:[#allocation2 + $0x92c] ss:$40 sps:$4 sm:$0xff]  }
 0x1a4   :  { %3687 = vmatpush1.bf16.msra.mxu1 %v7899_v55  ;;  %v7986_v55 = vld [vmem:[#allocation2 + $0xa60] ss:$40 sps:$4 sm:$0xff]  }
 0x1a5   :  { %3697 = vmatprep.subr.bf16.mxu1 %v7907_v56  ;;  %3542 = vmatpush1.bf16.msra.mxu0 %v7908_v57  ;;  %v7994_v56 = vld [vmem:[#allocation2 + $0xab4] ss:$40 sps:$4 sm:$0xff]   ;;  %v7983_v57 = vld [vmem:[#allocation2 + $0x928] ss:$40 sps:$4 sm:$0xff]  }
 0x1a6   :  { %3543 = vmatprep.subr.bf16.mxu0 %v7916_v58  ;;  %v7991_v58 = vld [vmem:[#allocation2 + $0x97c] ss:$40 sps:$4 sm:$0xff]  }
 0x1a7   :  { %3689 = vmatmul.mubr.bf16.vlgmr.msra.gmra.mrb[8].mxu1 %v8964_v9 }
 0x1a8   :  { %3698 = vmatpush1.bf16.msra.mxu1 %v7905_v61  ;;  %3729 = vmatprep.mubr.bf16.mxu1 %v8976_v40  ;;  %v7992_v61 = vld [vmem:[#allocation2 + $0xab0] ss:$40 sps:$4 sm:$0xff]  }
 0x1a9   :  { %3699 = vmatprep.subr.bf16.mxu1 %v7913_v62  ;;  %3544 = vmatpush1.bf16.msra.mxu0 %v7914_v63  ;;  %v8000_v62 = vld [vmem:[#allocation2 + $0xb04] ss:$40 sps:$4 sm:$0xff]   ;;  %v7989_v63 = vld [vmem:[#allocation2 + $0x978] ss:$40 sps:$4 sm:$0xff]  }
 0x1aa   :  { %3545 = vmatprep.subr.bf16.mxu0 %v7922_v2  ;;  %v7998_v2 = vld [vmem:[#allocation2 + $0xb00] ss:$40 sps:$4 sm:$0xff]  }
 0x1ac   :  { %3700 = vmatpush1.bf16.msra.mxu1 %v7911_v1  ;;  %v7997_v1 = vld [vmem:[#allocation2 + $0x9cc] ss:$40 sps:$4 sm:$0xff]  }
 0x1ad   :  { %3701 = vmatprep.subr.bf16.mxu1 %v7919_v3  ;;  %3546 = vmatpush1.bf16.msra.mxu0 %v7920_v4  ;;  %v8006_v3 = vld [vmem:[#allocation2 + $0xb54] ss:$40 sps:$4 sm:$0xff]   ;;  %v7995_v4 = vld [vmem:[#allocation2 + $0x9c8] ss:$40 sps:$4 sm:$0xff]  }
 0x1ae   :  { %3547 = vmatprep.subr.bf16.mxu0 %v7928_v5  ;;  %v8003_v5 = vld [vmem:[#allocation2 + $0xa1c] ss:$40 sps:$4 sm:$0xff]  }
 0x1b0   :  { %3702 = vmatpush1.bf16.msra.mxu1 %v7917_v6  ;;  %v8004_v6 = vld [vmem:[#allocation2 + $0xb50] ss:$40 sps:$4 sm:$0xff]  }
 0x1b1   :  { %3703 = vmatprep.subr.bf16.mxu1 %v7925_v7  ;;  %3548 = vmatpush1.bf16.msra.mxu0 %v7926_v8  ;;  %v8012_v7 = vld [vmem:[#allocation2 + $0xba4] ss:$40 sps:$4 sm:$0xff]   ;;  %v8001_v8 = vld [vmem:[#allocation2 + $0xa18] ss:$40 sps:$4 sm:$0xff]  }
 0x1b2   :  { %3549 = vmatprep.subr.bf16.mxu0 %v7934_v10  ;;  %v8009_v10 = vld [vmem:[#allocation2 + $0xa6c] ss:$40 sps:$4 sm:$0xff]  }
 0x1b4   :  { %3704 = vmatpush1.bf16.msra.mxu1 %v7923_v11  ;;  %v8010_v11 = vld [vmem:[#allocation2 + $0xba0] ss:$40 sps:$4 sm:$0xff]  }
 0x1b5   :  { %3705 = vmatprep.subr.bf16.mxu1 %v7931_v12  ;;  %3550 = vmatpush1.bf16.msra.mxu0 %v7932_v14  ;;  %v8018_v12 = vld [vmem:[#allocation2 + $0xbf4] ss:$40 sps:$4 sm:$0xff]   ;;  %v8007_v14 = vld [vmem:[#allocation2 + $0xa68] ss:$40 sps:$4 sm:$0xff]  }
 0x1b6   :  { %3551 = vmatprep.subr.bf16.mxu0 %v7940_v15  ;;  %v8015_v15 = vld [vmem:[#allocation2 + $0xabc] ss:$40 sps:$4 sm:$0xff]  }
 0x1b8   :  { %3706 = vmatpush1.bf16.msra.mxu1 %v7929_v16  ;;  %v8016_v16 = vld [vmem:[#allocation2 + $0xbf0] ss:$40 sps:$4 sm:$0xff]  }
 0x1b9   :  { %3707 = vmatprep.subr.bf16.mxu1 %v7937_v17  ;;  %3552 = vmatpush1.bf16.msra.mxu0 %v7938_v18  ;;  %v8024_v17 = vld [vmem:[#allocation2 + $0xc44] ss:$40 sps:$4 sm:$0xff]   ;;  %v8013_v18 = vld [vmem:[#allocation2 + $0xab8] ss:$40 sps:$4 sm:$0xff]  }
 0x1ba   :  { %3553 = vmatprep.subr.bf16.mxu0 %v7946_v20  ;;  %v8021_v20 = vld [vmem:[#allocation2 + $0xb0c] ss:$40 sps:$4 sm:$0xff]  }
 0x1bc   :  { %3708 = vmatpush1.bf16.msra.mxu1 %v7935_v21  ;;  %v8022_v21 = vld [vmem:[#allocation2 + $0xc40] ss:$40 sps:$4 sm:$0xff]  }
 0x1bd   :  { %3709 = vmatprep.subr.bf16.mxu1 %v7943_v22  ;;  %3554 = vmatpush1.bf16.msra.mxu0 %v7944_v24  ;;  %v8030_v22 = vld [vmem:[#allocation2 + $0xc94] ss:$40 sps:$4 sm:$0xff]   ;;  %v8019_v24 = vld [vmem:[#allocation2 + $0xb08] ss:$40 sps:$4 sm:$0xff]  }
 0x1be   :  { %3555 = vmatprep.subr.bf16.mxu0 %v7952_v26  ;;  %v8028_v26 = vld [vmem:[#allocation2 + $0xc90] ss:$40 sps:$4 sm:$0xff]  }
 0x1c0   :  { %3710 = vmatpush1.bf16.msra.mxu1 %v7941_v25  ;;  %v8027_v25 = vld [vmem:[#allocation2 + $0xb5c] ss:$40 sps:$4 sm:$0xff]  }
 0x1c1   :  { %3711 = vmatprep.subr.bf16.mxu1 %v7949_v28  ;;  %3556 = vmatpush1.bf16.msra.mxu0 %v7950_v29  ;;  %v8036_v28 = vld [vmem:[#allocation2 + $0xce4] ss:$40 sps:$4 sm:$0xff]   ;;  %v8025_v29 = vld [vmem:[#allocation2 + $0xb58] ss:$40 sps:$4 sm:$0xff]  }
 0x1c2   :  { %3557 = vmatprep.subr.bf16.mxu0 %v7958_v31  ;;  %v8033_v31 = vld [vmem:[#allocation2 + $0xbac] ss:$40 sps:$4 sm:$0xff]  }
 0x1c4   :  { %3712 = vmatpush1.bf16.msra.mxu1 %v7947_v32  ;;  %v8034_v32 = vld [vmem:[#allocation2 + $0xce0] ss:$40 sps:$4 sm:$0xff]  }
 0x1c5   :  { %3713 = vmatprep.subr.bf16.mxu1 %v7955_v33  ;;  %3558 = vmatpush1.bf16.msra.mxu0 %v7956_v34  ;;  %v8042_v33 = vld [vmem:[#allocation2 + $0xd34] ss:$40 sps:$4 sm:$0xff]   ;;  %v8031_v34 = vld [vmem:[#allocation2 + $0xba8] ss:$40 sps:$4 sm:$0xff]  }
 0x1c6   :  { %3559 = vmatprep.subr.bf16.mxu0 %v7964_v35  ;;  %v8039_v35 = vld [vmem:[#allocation2 + $0xbfc] ss:$40 sps:$4 sm:$0xff]  }
 0x1c8   :  { %3714 = vmatpush1.bf16.msra.mxu1 %v7953_v36  ;;  %v8040_v36 = vld [vmem:[#allocation2 + $0xd30] ss:$40 sps:$4 sm:$0xff]  }
 0x1c9   :  { %3715 = vmatprep.subr.bf16.mxu1 %v7961_v37  ;;  %3560 = vmatpush1.bf16.msra.mxu0 %v7962_v23  ;;  %v8048_v37 = vld [vmem:[#allocation2 + $0xd84] ss:$40 sps:$4 sm:$0xff]   ;;  %v8037_v23 = vld [vmem:[#allocation2 + $0xbf8] ss:$40 sps:$4 sm:$0xff]  }
 0x1ca   :  { %3561 = vmatprep.subr.bf16.mxu0 %v7970_v38  ;;  %v8045_v38 = vld [vmem:[#allocation2 + $0xc4c] ss:$40 sps:$4 sm:$0xff]  }
 0x1cc   :  { %3716 = vmatpush1.bf16.msra.mxu1 %v7959_v39  ;;  %v8046_v39 = vld [vmem:[#allocation2 + $0xd80] ss:$40 sps:$4 sm:$0xff]  }
 0x1cd   :  { %3717 = vmatprep.subr.bf16.mxu1 %v7967_v41  ;;  %3562 = vmatpush1.bf16.msra.mxu0 %v7968_v42  ;;  %v8054_v41 = vld [vmem:[#allocation2 + $0xdd4] ss:$40 sps:$4 sm:$0xff]   ;;  %v8043_v42 = vld [vmem:[#allocation2 + $0xc48] ss:$40 sps:$4 sm:$0xff]  }
 0x1ce   :  { %3563 = vmatprep.subr.bf16.mxu0 %v7976_v43  ;;  %v8051_v43 = vld [vmem:[#allocation2 + $0xc9c] ss:$40 sps:$4 sm:$0xff]  }
 0x1d0   :  { %3718 = vmatpush1.bf16.msra.mxu1 %v7965_v44  ;;  %v8052_v44 = vld [vmem:[#allocation2 + $0xdd0] ss:$40 sps:$4 sm:$0xff]  }
 0x1d1   :  { %3719 = vmatprep.subr.bf16.mxu1 %v7973_v45  ;;  %3564 = vmatpush1.bf16.msra.mxu0 %v7974_v46  ;;  %v8060_v45 = vld [vmem:[#allocation2 + $0xe24] ss:$40 sps:$4 sm:$0xff]   ;;  %v8049_v46 = vld [vmem:[#allocation2 + $0xc98] ss:$40 sps:$4 sm:$0xff]  }
 0x1d2   :  { %3574 = vmatprep.subr.bf16.mxu0 %v7982_v47  ;;  %v8057_v47 = vld [vmem:[#allocation2 + $0xcec] ss:$40 sps:$4 sm:$0xff]  }
 0x1d4   :  { %3720 = vmatpush1.bf16.msra.mxu1 %v7971_v48  ;;  %3566 = vmatmul.mubr.bf16.vlgmr.msra.gmra.mrb[4].mxu0 %v8982_v19  ;;  %v8058_v48 = vld [vmem:[#allocation2 + $0xe20] ss:$40 sps:$4 sm:$0xff]  }
 0x1d5   :  { %3721 = vmatprep.subr.bf16.mxu1 %v7979_v49  ;;  %3575 = vmatpush1.bf16.msra.mxu0 %v7980_v50  ;;  %v8066_v49 = vld [vmem:[#allocation2 + $0xe74] ss:$40 sps:$4 sm:$0xff]   ;;  %v8055_v50 = vld [vmem:[#allocation2 + $0xce8] ss:$40 sps:$4 sm:$0xff]  }
 0x1d6   :  { %3576 = vmatprep.subr.bf16.mxu0 %v7988_v51  ;;  %3606 = vmatprep.mubr.bf16.mxu0 %v8993_v27  ;;  %v8063_v51 = vld [vmem:[#allocation2 + $0xd3c] ss:$40 sps:$4 sm:$0xff]  }
 0x1d8   :  { %3722 = vmatpush1.bf16.msra.mxu1 %v7977_v52  ;;  %v8064_v52 = vld [vmem:[#allocation2 + $0xe70] ss:$40 sps:$4 sm:$0xff]  }
 0x1d9   :  { %3723 = vmatprep.subr.bf16.mxu1 %v7985_v53  ;;  %3577 = vmatpush1.bf16.msra.mxu0 %v7986_v55  ;;  %v8072_v53 = vld [vmem:[#allocation2 + $0xec4] ss:$40 sps:$4 sm:$0xff]   ;;  %v8061_v55 = vld [vmem:[#allocation2 + $0xd38] ss:$40 sps:$4 sm:$0xff]  }
 0x1da   :  { %3578 = vmatprep.subr.bf16.mxu0 %v7994_v56  ;;  %v8069_v56 = vld [vmem:[#allocation2 + $0xd8c] ss:$40 sps:$4 sm:$0xff]  }
 0x1dc   :  { %3724 = vmatpush1.bf16.msra.mxu1 %v7983_v57  ;;  %v8070_v57 = vld [vmem:[#allocation2 + $0xec0] ss:$40 sps:$4 sm:$0xff]  }
 0x1dd   :  { %3725 = vmatprep.subr.bf16.mxu1 %v7991_v58  ;;  %3579 = vmatpush1.bf16.msra.mxu0 %v7992_v61  ;;  %v8078_v58 = vld [vmem:[#allocation2 + $0xf14] ss:$40 sps:$4 sm:$0xff]   ;;  %v8067_v61 = vld [vmem:[#allocation2 + $0xd88] ss:$40 sps:$4 sm:$0xff]  }
 0x1de   :  { %3580 = vmatprep.subr.bf16.mxu0 %v8000_v62  ;;  %v8075_v62 = vld [vmem:[#allocation2 + $0xddc] ss:$40 sps:$4 sm:$0xff]  }
 0x1e0   :  { %3726 = vmatpush1.bf16.msra.mxu1 %v7989_v63  ;;  %v8076_v63 = vld [vmem:[#allocation2 + $0xf10] ss:$40 sps:$4 sm:$0xff]  }
 0x1e1   :  { %3727 = vmatprep.subr.bf16.mxu1 %v7997_v1  ;;  %3581 = vmatpush1.bf16.msra.mxu0 %v7998_v2  ;;  %v8090_v1 = vld [vmem:[#allocation2 + $0x24] ss:$40 sps:$4 sm:$0xff]   ;;  %v8073_v2 = vld [vmem:[#allocation2 + $0xdd8] ss:$40 sps:$4 sm:$0xff]  }
 0x1e2   :  { %3582 = vmatprep.subr.bf16.mxu0 %v8006_v3  ;;  %v8081_v3 = vld [vmem:[#allocation2 + $0xe2c] ss:$40 sps:$4 sm:$0xff]  }
 0x1e4   :  { %3728 = vmatpush1.bf16.msra.mxu1 %v7995_v4  ;;  %v8079_v4 = vld [vmem:[#allocation2 + $0xe28] ss:$40 sps:$4 sm:$0xff]  }
 0x1e5   :  { %3738 = vmatprep.subr.bf16.mxu1 %v8003_v5  ;;  %3583 = vmatpush1.bf16.msra.mxu0 %v8004_v6  ;;  %v636_v5 = vlaneseq  ;;  %v8084_v6 = vld [vmem:[#allocation2 + $0xe7c] ss:$40 sps:$4 sm:$0xff]  }
 0x1e6   :  { %3584 = vmatprep.subr.bf16.mxu0 %v8012_v7  ;;  %v8082_v7 = vld [vmem:[#allocation2 + $0xe78] ss:$40 sps:$4 sm:$0xff]  }
 0x1e7   :  { %3730 = vmatmul.mubr.bf16.vlgmr.msra.gmra.mrb[8].mxu1 %v8982_v19 }
 0x1e8   :  { %3739 = vmatpush1.bf16.msra.mxu1 %v8001_v8  ;;  %3770 = vmatprep.mubr.bf16.mxu1 %v8993_v27  ;;  %v8087_v8 = vld [vmem:[#allocation2 + $0xecc] ss:$40 sps:$4 sm:$0xff]  }
 0x1e9   :  { %3740 = vmatprep.subr.bf16.mxu1 %v8009_v10  ;;  %3585 = vmatpush1.bf16.msra.mxu0 %v8010_v11  ;;  %v9023_v10 = vshrl.u32 %v636_v5, 7  ;;  %v8088_v11 = vld [vmem:[#allocation2 + $0x20] ss:$40 sps:$4 sm:$0xff]  }
 0x1ea   :  { %3586 = vmatprep.subr.bf16.mxu0 %v8018_v12  ;;  %v8093_v12 = vld [vmem:[#allocation2 + $0x74] ss:$40 sps:$4 sm:$0xff]  }
 0x1eb   :  { %v8133_v5 = vld [vmem:[#allocation6 + $0x78] ss:$12 sps:$4 sm:$0xff]  }
 0x1ec   :  { %3741 = vmatpush1.bf16.msra.mxu1 %v8007_v14  ;;  %v8085_v14 = vld [vmem:[#allocation2 + $0xec8] ss:$40 sps:$4 sm:$0xff]  }
 0x1ed   :  { %3742 = vmatprep.subr.bf16.mxu1 %v8015_v15  ;;  %3587 = vmatpush1.bf16.msra.mxu0 %v8016_v16  ;;  %v8091_v15 = vld [vmem:[#allocation2 + $0x70] ss:$40 sps:$4 sm:$0xff]   ;;  %v9028_v16 = vsub.s32 0, %v9023_v10 }
 0x1ee   :  { %3588 = vmatprep.subr.bf16.mxu0 %v8024_v17  ;;  %v8096_v17 = vld [vmem:[#allocation2 + $0xc4] ss:$40 sps:$4 sm:$0xff]  }
 0x1f0   :  { %3743 = vmatpush1.bf16.msra.mxu1 %v8013_v18  ;;  %v9030_v18 = vld [vmem:[#allocation4] sm:$0xff] }
 0x1f1   :  { %3744 = vmatprep.subr.bf16.mxu1 %v8021_v20  ;;  %3589 = vmatpush1.bf16.msra.mxu0 %v8022_v21  ;;  %v9033_v20 = vsub.s32 1, %v9023_v10  ;;  %v8099_v21 = vld [vmem:[#allocation2 + $0xf1c] ss:$40 sps:$4 sm:$0xff]  }
 0x1f2   :  { %3590 = vmatprep.subr.bf16.mxu0 %v8030_v22  ;;  %v639_v22 = vrot.slane %v9030_v18, %v9028_v16 }
 0x1f4   :  { %3745 = vmatpush1.bf16.msra.mxu1 %v8019_v24  ;;  %v8094_v24 = vld [vmem:[#allocation2 + $0xc0] ss:$40 sps:$4 sm:$0xff]  }
 0x1f5   :  { %3746 = vmatprep.subr.bf16.mxu1 %v8027_v25  ;;  %3591 = vmatpush1.bf16.msra.mxu0 %v8028_v26  ;;  %v8097_v25 = vld [vmem:[#allocation2 + $0xf18] ss:$40 sps:$4 sm:$0xff]   ;;  %v643_v26 = vrot.slane %v9030_v18, %v9033_v20 }
 0x1f6   :  { %3592 = vmatprep.subr.bf16.mxu0 %v8036_v28  ;;  %v8102_v28 = vld [vmem:[#allocation2 + $0x114] ss:$40 sps:$4 sm:$0xff]  }
 0x1f8   :  { %3747 = vmatpush1.bf16.msra.mxu1 %v8025_v29  ;;  %v8105_v29 = vld [vmem:[#allocation6 + $0x4] ss:$12 sps:$4 sm:$0xff]  }
 0x1f9   :  { %3748 = vmatprep.subr.bf16.mxu1 %v8033_v31  ;;  %3593 = vmatpush1.bf16.msra.mxu0 %v8034_v32 }
 0x1fa   :  { %3594 = vmatprep.subr.bf16.mxu0 %v8042_v33 }
 0x1fc   :  { %3749 = vmatpush1.bf16.msra.mxu1 %v8031_v34 }
 0x1fd   :  { %3750 = vmatprep.subr.bf16.mxu1 %v8039_v35  ;;  %3595 = vmatpush1.bf16.msra.mxu0 %v8040_v36  ;;  %v8100_v35 = vld [vmem:[#allocation2 + $0x110] ss:$40 sps:$4 sm:$0xff]   ;;  %v8108_v36 = vld [vmem:[#allocation2 + $0x164] ss:$40 sps:$4 sm:$0xff]  }
 0x1fe   :  { %3596 = vmatprep.subr.bf16.mxu0 %v8048_v37 }
 0x200   :  { %3751 = vmatpush1.bf16.msra.mxu1 %v8037_v23 }
 0x201   :  { %3752 = vmatprep.subr.bf16.mxu1 %v8045_v38  ;;  %3597 = vmatpush1.bf16.msra.mxu0 %v8046_v39 }
 0x202   :  { %3598 = vmatprep.subr.bf16.mxu0 %v8054_v41  ;;  %v8106_v41 = vld [vmem:[#allocation2 + $0x160] ss:$40 sps:$4 sm:$0xff]  }
 0x204   :  { %3753 = vmatpush1.bf16.msra.mxu1 %v8043_v42  ;;  %v8114_v42 = vld [vmem:[#allocation2 + $0x1b4] ss:$40 sps:$4 sm:$0xff]  }
 0x205   :  { %3754 = vmatprep.subr.bf16.mxu1 %v8051_v43  ;;  %3599 = vmatpush1.bf16.msra.mxu0 %v8052_v44  ;;  %v8103_v43 = vld [vmem:[#allocation6] ss:$12 sps:$4 sm:$0xff]   ;;  %v8111_v44 = vld [vmem:[#allocation6 + $0x1c] ss:$12 sps:$4 sm:$0xff]  }
 0x206   :  { %3600 = vmatprep.subr.bf16.mxu0 %v8060_v45  ;;  %v8112_v45 = vld [vmem:[#allocation2 + $0x1b0] ss:$40 sps:$4 sm:$0xff]  }
 0x208   :  { %3755 = vmatpush1.bf16.msra.mxu1 %v8049_v46 }
 0x209   :  { %3756 = vmatprep.subr.bf16.mxu1 %v8057_v47  ;;  %3601 = vmatpush1.bf16.msra.mxu0 %v8058_v48  ;;  %v8120_v47 = vld [vmem:[#allocation2 + $0x204] ss:$40 sps:$4 sm:$0xff]  }
 0x20a   :  { %3602 = vmatprep.subr.bf16.mxu0 %v8066_v49  ;;  %v8117_v48 = vld [vmem:[#allocation6 + $0x34] ss:$12 sps:$4 sm:$0xff]  }
 0x20b   :  { %v8126_v49 = vld [vmem:[#allocation2 + $0x254] ss:$40 sps:$4 sm:$0xff]  }
 0x20c   :  { %3757 = vmatpush1.bf16.msra.mxu1 %v8055_v50  ;;  %v8115_v50 = vld [vmem:[#allocation6 + $0x30] ss:$12 sps:$4 sm:$0xff]  }
 0x20d   :  { %3758 = vmatprep.subr.bf16.mxu1 %v8063_v51  ;;  %3603 = vmatpush1.bf16.msra.mxu0 %v8064_v52  ;;  %v8123_v51 = vld [vmem:[#allocation6 + $0x4c] ss:$12 sps:$4 sm:$0xff]  }
 0x20e   :  { %3604 = vmatprep.subr.bf16.mxu0 %v8072_v53  ;;  %v8124_v52 = vld [vmem:[#allocation2 + $0x250] ss:$40 sps:$4 sm:$0xff]  }
 0x210   :  { %3759 = vmatpush1.bf16.msra.mxu1 %v8061_v55  ;;  %v8121_v55 = vld [vmem:[#allocation6 + $0x48] ss:$12 sps:$4 sm:$0xff]  }
 0x211   :  { %3760 = vmatprep.subr.bf16.mxu1 %v8069_v56  ;;  %3605 = vmatpush1.bf16.msra.mxu0 %v8070_v57  ;;  %v8132_v56 = vld [vmem:[#allocation2 + $0x2a4] ss:$40 sps:$4 sm:$0xff]  }
 0x212   :  { %3615 = vmatprep.subr.bf16.mxu0 %v8078_v58 }
 0x214   :  { %3761 = vmatpush1.bf16.msra.mxu1 %v8067_v61  ;;  %3607 = vmatmul.mubr.bf16.vlgmr.msra.gmra.mrb[4].mxu0 %v9000_v30 }
 0x215   :  { %3762 = vmatprep.subr.bf16.mxu1 %v8075_v62  ;;  %3616 = vmatpush1.bf16.msra.mxu0 %v8076_v63  ;;  %v8129_v62 = vld [vmem:[#allocation6 + $0x64] ss:$12 sps:$4 sm:$0xff]  }
 0x216   :  { %3647 = vmatprep.mubr.bf16.mxu0 %v8791_v0  ;;  %3820 = vmatprep.subr.bf16.mxu0 %v8090_v1  ;;  %v8130_v63 = vld [vmem:[#allocation2 + $0x2a0] ss:$40 sps:$4 sm:$0xff]  }
 0x217   :  { %v8127_v1 = vld [vmem:[#allocation6 + $0x60] ss:$12 sps:$4 sm:$0xff]  }
 0x218   :  { %3763 = vmatpush1.bf16.msra.mxu1 %v8073_v2  ;;  %v8138_v2 = vld [vmem:[#allocation2 + $0x2f4] ss:$40 sps:$4 sm:$0xff]  }
 0x219   :  { %3764 = vmatprep.subr.bf16.mxu1 %v8081_v3  ;;  %v8135_v3 = vld [vmem:[#allocation6 + $0x7c] ss:$12 sps:$4 sm:$0xff]  }
 0x21c   :  { %3765 = vmatpush1.bf16.msra.mxu1 %v8079_v4  ;;  %v8136_v4 = vld [vmem:[#allocation2 + $0x2f0] ss:$40 sps:$4 sm:$0xff]  }
 0x21d   :  { %3766 = vmatprep.subr.bf16.mxu1 %v8084_v6  ;;  %v8144_v6 = vld [vmem:[#allocation2 + $0x344] ss:$40 sps:$4 sm:$0xff]  }
 0x220   :  { %3767 = vmatpush1.bf16.msra.mxu1 %v8082_v7  ;;  %6933 = vmatmul.mubr.msk.bf16.vlgmr.msra.gmra.mrb[4].mxu0 %vm3160_vm0, %v8952_v13  ;;  %v8141_v7 = vld [vmem:[#allocation6 + $0x94] ss:$12 sps:$4 sm:$0xff]  }
 0x221   :  { %3768 = vmatprep.subr.bf16.mxu1 %v8087_v8  ;;  %3821 = vmatpush1.bf16.msra.mxu0 %v8088_v11  ;;  %v8142_v8 = vld [vmem:[#allocation2 + $0x340] ss:$40 sps:$4 sm:$0xff]  }
 0x222   :  { %3822 = vmatprep.subr.bf16.mxu0 %v8093_v12  ;;  %3852 = vmatprep.mubr.bf16.mxu0 %v8960_v54  ;;  %v8139_v11 = vld [vmem:[#allocation6 + $0x90] ss:$12 sps:$4 sm:$0xff]  }
 0x223   :  { %v8150_v12 = vld [vmem:[#allocation2 + $0x394] ss:$40 sps:$4 sm:$0xff]  }
 0x224   :  { %3769 = vmatpush1.bf16.msra.mxu1 %v8085_v14  ;;  %v8147_v14 = vld [vmem:[#allocation6 + $0xac] ss:$12 sps:$4 sm:$0xff]  }
 0x225   :  { %3823 = vmatpush1.bf16.msra.mxu0 %v8091_v15  ;;  %3779 = vmatprep.subr.bf16.mxu1 %v8099_v21  ;;  %v8148_v15 = vld [vmem:[#allocation2 + $0x390] ss:$40 sps:$4 sm:$0xff]   ;;  %v8156_v21 = vld [vmem:[#allocation2 + $0x3e4] ss:$40 sps:$4 sm:$0xff]  }
 0x226   :  { %3824 = vmatprep.subr.bf16.mxu0 %v8096_v17  ;;  %v8145_v17 = vld [vmem:[#allocation6 + $0xa8] ss:$12 sps:$4 sm:$0xff]  }
 0x227   :  { %3771 = vmatmul.mubr.bf16.vlgmr.msra.gmra.mrb[8].mxu1 %v9000_v30  ;;  %v3280_v31 = vpop.f32.mrb[0].mxu0 }
 0x228   :  { %v7400_v32 = vadd.f32 %v3280_v31, %v639_v22  ;;  %v3282_v33 = vpop.f32.mrb[1].mxu0  ;;  %3780 = vmatpush1.bf16.msra.mxu1 %v8097_v25  ;;  %3811 = vmatprep.mubr.bf16.mxu1 %v8791_v0  ;;  %v8153_v22 = vld [vmem:[#allocation6 + $0xc4] ss:$12 sps:$4 sm:$0xff]   ;;  %v8151_v25 = vld [vmem:[#allocation6 + $0xc0] ss:$12 sps:$4 sm:$0xff]  }
 0x229   :  { %v7402_v54 = vadd.f32 %v3282_v33, %v643_v26  ;;  %3825 = vmatpush1.bf16.msra.mxu0 %v8094_v24  ;;  %v3284_v34 = vpop.f32.mrb[2].mxu0  ;;  %5621 = vmatprep.subr.bf16.mxu1 %v8105_v29  ;;  %v8154_v24 = vld [vmem:[#allocation2 + $0x3e0] ss:$40 sps:$4 sm:$0xff]   ;;  %v8162_v26 = vld [vmem:[#allocation2 + $0x434] ss:$40 sps:$4 sm:$0xff]  }
 0x22a   :  { %v9043_v37 = vadd.f32 %v7400_v32, %v9009_v59  ;;  %v3285_v23 = vpop.f32.mrb[3].mxu0  ;;  %3826 = vmatprep.subr.bf16.mxu0 %v8102_v28  ;;  %v8109_v59 = vld [vmem:[#allocation6 + $0x18] ss:$12 sps:$4 sm:$0xff]   ;;  %v8159_v28 = vld [vmem:[#allocation6 + $0xdc] ss:$12 sps:$4 sm:$0xff]  }
 0x22b   :  { %v7403_v38 = vadd.f32 %v7402_v54, %v9011_v60  ;;  %v8118_v60 = vld [vmem:[#allocation2 + $0x200] ss:$40 sps:$4 sm:$0xff]   ;;  %v8160_v29 = vld [vmem:[#allocation2 + $0x430] ss:$40 sps:$4 sm:$0xff]   ;;  %v8168_v32 = vld [vmem:[#allocation2 + $0x484] ss:$40 sps:$4 sm:$0xff]  }
 0x22c   :  { %v8157_v31 = vld [vmem:[#allocation6 + $0xd8] ss:$12 sps:$4 sm:$0xff]   ;;  %v8165_v33 = vld [vmem:[#allocation6 + $0xf4] ss:$12 sps:$4 sm:$0xff]   ;;  %v8163_v34 = vld [vmem:[#allocation6 + $0xf0] ss:$12 sps:$4 sm:$0xff]  }
 0x22d   :  { %v3985_v39 = vmax.f32 %v7403_v38, 0.0  ;;  %3827 = vmatpush1.bf16.msra.mxu0 %v8100_v35  ;;  %v8166_v54 = vld [vmem:[#allocation2 + $0x480] ss:$40 sps:$4 sm:$0xff]   ;;  %v8174_v35 = vld [vmem:[#allocation2 + $0x4d4] ss:$40 sps:$4 sm:$0xff]  }
 0x22e   :  { %3828 = vmatprep.subr.bf16.mxu0 %v8108_v36  ;;  %v8171_v36 = vld [vmem:[#allocation6 + $0x10c] ss:$12 sps:$4 sm:$0xff]   ;;  %v8169_v38 = vld [vmem:[#allocation6 + $0x108] ss:$12 sps:$4 sm:$0xff]  }
 0x22f   :  { %v9046_v46 = vpack.c.bf16 %v3985_v39, %v3985_v39  ;;  %v8172_v23 = vld [vmem:[#allocation2 + $0x4d0] ss:$40 sps:$4 sm:$0xff]   ;;  %v8180_v39 = vld [vmem:[#allocation2 + $0x524] ss:$40 sps:$4 sm:$0xff]  }
 0x231   :  { %3829 = vmatpush1.bf16.msra.mxu0 %v8106_v41  ;;  %v8177_v41 = vld [vmem:[#allocation6 + $0x124] ss:$12 sps:$4 sm:$0xff]  }
 0x232   :  { %3830 = vmatprep.subr.bf16.mxu0 %v8114_v42  ;;  %v8178_v42 = vld [vmem:[#allocation2 + $0x520] ss:$40 sps:$4 sm:$0xff]  }
 0x233   :  { %6934 = vmatmul.mubr.msk.bf16.vlgmr.msra.gmra.mrb[8].mxu1 %vm3160_vm0, %v8952_v13 }
 0x234   :  { %5622 = vmatpush1.bf16.msra.mxu1 %v8103_v43  ;;  %5653 = vmatprep.mubr.bf16.mxu1 %v9046_v46  ;;  %v8186_v43 = vld [vmem:[#allocation2 + $0x574] ss:$40 sps:$4 sm:$0xff]  }
 0x235   :  { %5623 = vmatprep.subr.bf16.mxu1 %v8111_v44  ;;  %3831 = vmatpush1.bf16.msra.mxu0 %v8112_v45  ;;  %v8175_v44 = vld [vmem:[#allocation6 + $0x120] ss:$12 sps:$4 sm:$0xff]   ;;  %v8183_v45 = vld [vmem:[#allocation6 + $0x13c] ss:$12 sps:$4 sm:$0xff]  }
 0x236   :  { %3832 = vmatprep.subr.bf16.mxu0 %v8120_v47  ;;  %v8184_v47 = vld [vmem:[#allocation2 + $0x570] ss:$40 sps:$4 sm:$0xff]  }
 0x238   :  { %5624 = vmatpush1.bf16.msra.mxu1 %v8109_v59  ;;  %v650_v59 = vsub.s32 3, %v9023_v10 }
 0x239   :  { %5625 = vmatprep.subr.bf16.mxu1 %v8117_v48  ;;  %3833 = vmatpush1.bf16.msra.mxu0 %v8118_v60  ;;  %v8181_v48 = vld [vmem:[#allocation6 + $0x138] ss:$12 sps:$4 sm:$0xff]   ;;  %v8192_v60 = vld [vmem:[#allocation2 + $0x5c4] ss:$40 sps:$4 sm:$0xff]  }
 0x23a   :  { %v9051_v53 = vpop.f32.mrb[4].mxu1  ;;  %3834 = vmatprep.subr.bf16.mxu0 %v8126_v49  ;;  %v8189_v49 = vld [vmem:[#allocation6 + $0x154] ss:$12 sps:$4 sm:$0xff]  }
 0x23b   :  { %v9053_v57 = vpop.f32.mrb[5].mxu1 }
 0x23c   :  { %5626 = vmatpush1.bf16.msra.mxu1 %v8115_v50  ;;  %v3489_v58 = vpop.f32.mrb[6].mxu1  ;;  %v8190_v50 = vld [vmem:[#allocation2 + $0x5c0] ss:$40 sps:$4 sm:$0xff]  }
 0x23d   :  { %v3490_v61 = vpop.f32.mrb[7].mxu1  ;;  %5627 = vmatprep.subr.bf16.mxu1 %v8123_v51  ;;  %3835 = vmatpush1.bf16.msra.mxu0 %v8124_v52  ;;  %v8198_v51 = vld [vmem:[#allocation2 + $0x614] ss:$40 sps:$4 sm:$0xff]   ;;  %v651_v52 = vrot.slane %v9030_v18, %v650_v59  ;;  %v8204_v58 = vld [vmem:[#allocation2 + $0x664] ss:$40 sps:$4 sm:$0xff]  }
 0x23e   :  { %3836 = vmatprep.subr.bf16.mxu0 %v8132_v56  ;;  %v8196_v56 = vld [vmem:[#allocation2 + $0x610] ss:$40 sps:$4 sm:$0xff]  }
 0x23f   :  { %v7405_v61 = vadd.f32 %v9053_v57, %v651_v52  ;;  %v8208_v57 = vld [vmem:[#allocation2 + $0x6b0] ss:$40 sps:$4 sm:$0xff]   ;;  %v8270_v52 = vld [vmem:[#allocation2 + $0x9d4] ss:$40 sps:$4 sm:$0xff]  }
 0x240   :  { %5628 = vmatpush1.bf16.msra.mxu1 %v8121_v55  ;;  %v8195_v55 = vld [vmem:[#allocation6 + $0x16c] ss:$12 sps:$4 sm:$0xff]   ;;  %v8255_v59 = vld [vmem:[#allocation6 + $0x25c] ss:$12 sps:$4 sm:$0xff]  }
 0x241   :  { %5629 = vmatprep.subr.bf16.mxu1 %v8129_v62  ;;  %3837 = vmatpush1.bf16.msra.mxu0 %v8130_v63  ;;  %v8201_v62 = vld [vmem:[#allocation6 + $0x184] ss:$12 sps:$4 sm:$0xff]  }
 0x242   :  { %3838 = vmatprep.subr.bf16.mxu0 %v8138_v2  ;;  %v8202_v63 = vld [vmem:[#allocation2 + $0x660] ss:$40 sps:$4 sm:$0xff]   ;;  %v3987_v2 = vmax.f32 %v7405_v61, 0.0 }
 0x243   :  { %v8265_v61 = vld [vmem:[#allocation6 + $0x288] ss:$12 sps:$4 sm:$0xff]  }
 0x244   :  { %5630 = vmatpush1.bf16.msra.mxu1 %v8127_v1  ;;  %v3984_v1 = vmax.f32 %v9043_v37, 0.0  ;;  %v8213_v37 = vld [vmem:[#allocation6 + $0x1b4] ss:$12 sps:$4 sm:$0xff]  }
 0x245   :  { %5631 = vmatprep.subr.bf16.mxu1 %v8135_v3  ;;  %3839 = vmatpush1.bf16.msra.mxu0 %v8136_v4  ;;  %v8199_v3 = vld [vmem:[#allocation6 + $0x180] ss:$12 sps:$4 sm:$0xff]  }
 0x246   :  { %3840 = vmatprep.subr.bf16.mxu0 %v8144_v6  ;;  %v8210_v4 = vld [vmem:[#allocation2 + $0x6b4] ss:$40 sps:$4 sm:$0xff]   ;;  %v9061_v6 = vpack.c.bf16 %v3984_v1, %v3984_v1 }
 0x247   :  { %v8271_v1 = vld [vmem:[#allocation6 + $0x2a0] ss:$12 sps:$4 sm:$0xff]  }
 0x248   :  { %5632 = vmatpush1.bf16.msra.mxu1 %v8133_v5  ;;  %v8207_v5 = vld [vmem:[#allocation6 + $0x19c] ss:$12 sps:$4 sm:$0xff]  }
 0x249   :  { %5633 = vmatprep.subr.bf16.mxu1 %v8141_v7  ;;  %3841 = vmatpush1.bf16.msra.mxu0 %v8142_v8  ;;  %v9063_v7 = vpack.c.bf16 %v3987_v2, %v3987_v2  ;;  %v8205_v8 = vld [vmem:[#allocation6 + $0x198] ss:$12 sps:$4 sm:$0xff]   ;;  %v646_v2 = vsub.s32 2, %v9023_v10 }
 0x24a   :  { %3842 = vmatprep.subr.bf16.mxu0 %v8150_v12  ;;  %v8214_v12 = vld [vmem:[#allocation2 + $0x700] ss:$40 sps:$4 sm:$0xff]  }
 0x24c   :  { %5634 = vmatpush1.bf16.msra.mxu1 %v8139_v11  ;;  %v8216_v11 = vld [vmem:[#allocation2 + $0x704] ss:$40 sps:$4 sm:$0xff]  }
 0x24d   :  { %5635 = vmatprep.subr.bf16.mxu1 %v8147_v14  ;;  %3843 = vmatpush1.bf16.msra.mxu0 %v8148_v15  ;;  %v8222_v14 = vld [vmem:[#allocation2 + $0x754] ss:$40 sps:$4 sm:$0xff]  }
 0x24e   :  { %3844 = vmatprep.subr.bf16.mxu0 %v8156_v21  ;;  %v8211_v15 = vld [vmem:[#allocation6 + $0x1b0] ss:$12 sps:$4 sm:$0xff]  }
 0x24f   :  { %v8220_v21 = vld [vmem:[#allocation2 + $0x750] ss:$40 sps:$4 sm:$0xff]  }
 0x250   :  { %5636 = vmatpush1.bf16.msra.mxu1 %v8145_v17  ;;  %v8219_v17 = vld [vmem:[#allocation6 + $0x1cc] ss:$12 sps:$4 sm:$0xff]  }
 0x251   :  { %5637 = vmatprep.subr.bf16.mxu1 %v8153_v22  ;;  %3845 = vmatpush1.bf16.msra.mxu0 %v8154_v24  ;;  %v8228_v22 = vld [vmem:[#allocation2 + $0x7a4] ss:$40 sps:$4 sm:$0xff]  }
 0x252   :  { %3846 = vmatprep.subr.bf16.mxu0 %v8162_v26  ;;  %v8217_v24 = vld [vmem:[#allocation6 + $0x1c8] ss:$12 sps:$4 sm:$0xff]  }
 0x253   :  { %v8226_v26 = vld [vmem:[#allocation2 + $0x7a0] ss:$40 sps:$4 sm:$0xff]  }
 0x254   :  { %5638 = vmatpush1.bf16.msra.mxu1 %v8151_v25  ;;  %v8225_v25 = vld [vmem:[#allocation6 + $0x1e4] ss:$12 sps:$4 sm:$0xff]  }
 0x255   :  { %5639 = vmatprep.subr.bf16.mxu1 %v8159_v28  ;;  %3847 = vmatpush1.bf16.msra.mxu0 %v8160_v29  ;;  %v8234_v28 = vld [vmem:[#allocation2 + $0x7f4] ss:$40 sps:$4 sm:$0xff]  }
 0x256   :  { %3848 = vmatprep.subr.bf16.mxu0 %v8168_v32  ;;  %v8223_v29 = vld [vmem:[#allocation6 + $0x1e0] ss:$12 sps:$4 sm:$0xff]  }
 0x257   :  { %v8232_v32 = vld [vmem:[#allocation2 + $0x7f0] ss:$40 sps:$4 sm:$0xff]  }
 0x258   :  { %5640 = vmatpush1.bf16.msra.mxu1 %v8157_v31  ;;  %v8231_v31 = vld [vmem:[#allocation6 + $0x1fc] ss:$12 sps:$4 sm:$0xff]  }
 0x259   :  { %5641 = vmatprep.subr.bf16.mxu1 %v8165_v33  ;;  %3849 = vmatpush1.bf16.msra.mxu0 %v8166_v54  ;;  %v8240_v33 = vld [vmem:[#allocation2 + $0x844] ss:$40 sps:$4 sm:$0xff]   ;;  %v8229_v54 = vld [vmem:[#allocation6 + $0x1f8] ss:$12 sps:$4 sm:$0xff]  }
 0x25a   :  { %3850 = vmatprep.subr.bf16.mxu0 %v8174_v35  ;;  %v8238_v35 = vld [vmem:[#allocation2 + $0x840] ss:$40 sps:$4 sm:$0xff]  }
 0x25c   :  { %5642 = vmatpush1.bf16.msra.mxu1 %v8163_v34  ;;  %v8237_v34 = vld [vmem:[#allocation6 + $0x214] ss:$12 sps:$4 sm:$0xff]  }
 0x25d   :  { %5643 = vmatprep.subr.bf16.mxu1 %v8171_v36  ;;  %3851 = vmatpush1.bf16.msra.mxu0 %v8172_v23  ;;  %v8246_v36 = vld [vmem:[#allocation2 + $0x894] ss:$40 sps:$4 sm:$0xff]  }
 0x25e   :  { %3861 = vmatprep.subr.bf16.mxu0 %v8180_v39  ;;  %v8235_v23 = vld [vmem:[#allocation6 + $0x210] ss:$12 sps:$4 sm:$0xff]  }
 0x25f   :  { %v8244_v39 = vld [vmem:[#allocation2 + $0x890] ss:$40 sps:$4 sm:$0xff]  }
 0x260   :  { %5644 = vmatpush1.bf16.msra.mxu1 %v8169_v38  ;;  %3853 = vmatmul.mubr.bf16.vlgmr.msra.gmra.mrb[8].mxu0 %v8964_v9  ;;  %v8187_v9 = vld [vmem:[#allocation6 + $0x150] ss:$12 sps:$4 sm:$0xff]   ;;  %v8243_v38 = vld [vmem:[#allocation6 + $0x22c] ss:$12 sps:$4 sm:$0xff]  }
 0x261   :  { %5645 = vmatprep.subr.bf16.mxu1 %v8177_v41  ;;  %3862 = vmatpush1.bf16.msra.mxu0 %v8178_v42  ;;  %v8252_v41 = vld [vmem:[#allocation2 + $0x8e4] ss:$40 sps:$4 sm:$0xff]  }
 0x262   :  { %3863 = vmatprep.subr.bf16.mxu0 %v8186_v43  ;;  %3893 = vmatprep.mubr.bf16.mxu0 %v8976_v40  ;;  %v8193_v40 = vld [vmem:[#allocation6 + $0x168] ss:$12 sps:$4 sm:$0xff]   ;;  %v8249_v43 = vld [vmem:[#allocation6 + $0x244] ss:$12 sps:$4 sm:$0xff]  }
 0x263   :  { %v8241_v42 = vld [vmem:[#allocation6 + $0x228] ss:$12 sps:$4 sm:$0xff]  }
 0x264   :  { %5646 = vmatpush1.bf16.msra.mxu1 %v8175_v44  ;;  %v8250_v44 = vld [vmem:[#allocation2 + $0x8e0] ss:$40 sps:$4 sm:$0xff]  }
 0x265   :  { %5647 = vmatprep.subr.bf16.mxu1 %v8183_v45  ;;  %3864 = vmatpush1.bf16.msra.mxu0 %v8184_v47  ;;  %v8258_v45 = vld [vmem:[#allocation2 + $0x934] ss:$40 sps:$4 sm:$0xff]  }
 0x266   :  { %3865 = vmatprep.subr.bf16.mxu0 %v8192_v60  ;;  %v8247_v47 = vld [vmem:[#allocation6 + $0x240] ss:$12 sps:$4 sm:$0xff]  }
 0x267   :  { %v8264_v60 = vld [vmem:[#allocation2 + $0x984] ss:$40 sps:$4 sm:$0xff]  }
 0x268   :  { %5648 = vmatpush1.bf16.msra.mxu1 %v8181_v48  ;;  %v8256_v48 = vld [vmem:[#allocation2 + $0x930] ss:$40 sps:$4 sm:$0xff]  }
 0x269   :  { %5649 = vmatprep.subr.bf16.mxu1 %v8189_v49  ;;  %3866 = vmatpush1.bf16.msra.mxu0 %v8190_v50  ;;  %v8253_v49 = vld [vmem:[#allocation6 + $0x258] ss:$12 sps:$4 sm:$0xff]   ;;  %v8261_v50 = vld [vmem:[#allocation6 + $0x274] ss:$12 sps:$4 sm:$0xff]  }
 0x26a   :  { %3867 = vmatprep.subr.bf16.mxu0 %v8198_v51  ;;  %v8262_v51 = vld [vmem:[#allocation2 + $0x980] ss:$40 sps:$4 sm:$0xff]  }
 0x26c   :  { %5650 = vmatpush1.bf16.msra.mxu1 %v8187_v9  ;;  %v8259_v9 = vld [vmem:[#allocation6 + $0x270] ss:$12 sps:$4 sm:$0xff]  }
 0x26d   :  { %5651 = vmatprep.subr.bf16.mxu1 %v8195_v55  ;;  %3868 = vmatpush1.bf16.msra.mxu0 %v8196_v56  ;;  %v8267_v55 = vld [vmem:[#allocation6 + $0x28c] ss:$12 sps:$4 sm:$0xff]  }
 0x26e   :  { %3869 = vmatprep.subr.bf16.mxu0 %v8204_v58  ;;  %v8268_v56 = vld [vmem:[#allocation2 + $0x9d0] ss:$40 sps:$4 sm:$0xff]   ;;  %v8276_v58 = vld [vmem:[#allocation2 + $0xa24] ss:$40 sps:$4 sm:$0xff]  }
 0x270   :  { %5652 = vmatpush1.bf16.msra.mxu1 %v8193_v40  ;;  %v8273_v40 = vld [vmem:[#allocation6 + $0x2a4] ss:$12 sps:$4 sm:$0xff]  }
 0x271   :  { %5662 = vmatprep.subr.bf16.mxu1 %v8201_v62  ;;  %3870 = vmatpush1.bf16.msra.mxu0 %v8202_v63  ;;  %v8274_v62 = vld [vmem:[#allocation2 + $0xa20] ss:$40 sps:$4 sm:$0xff]   ;;  %v8282_v63 = vld [vmem:[#allocation2 + $0xa74] ss:$40 sps:$4 sm:$0xff]  }
 0x272   :  { %3871 = vmatprep.subr.bf16.mxu0 %v8210_v4  ;;  %v8280_v4 = vld [vmem:[#allocation2 + $0xa70] ss:$40 sps:$4 sm:$0xff]  }
 0x273   :  { %5654 = vmatmul.mubr.bf16.vlgmr.msra.gmra.mrb[12].mxu1 %v9061_v6 }
 0x274   :  { %5663 = vmatpush1.bf16.msra.mxu1 %v8199_v3  ;;  %5694 = vmatprep.mubr.bf16.mxu1 %v9063_v7  ;;  %v8279_v3 = vld [vmem:[#allocation6 + $0x2bc] ss:$12 sps:$4 sm:$0xff]  }
 0x275   :  { %5664 = vmatprep.subr.bf16.mxu1 %v8207_v5  ;;  %3872 = vmatpush1.bf16.msra.mxu0 %v8208_v57  ;;  %v8288_v5 = vld [vmem:[#allocation2 + $0xac4] ss:$40 sps:$4 sm:$0xff]   ;;  %v8277_v57 = vld [vmem:[#allocation6 + $0x2b8] ss:$12 sps:$4 sm:$0xff]  }
 0x276   :  { %3873 = vmatprep.subr.bf16.mxu0 %v8216_v11  ;;  %v8285_v11 = vld [vmem:[#allocation6 + $0x2d4] ss:$12 sps:$4 sm:$0xff]  }
 0x278   :  { %5665 = vmatpush1.bf16.msra.mxu1 %v8205_v8  ;;  %v647_v8 = vrot.slane %v9030_v18, %v646_v2  ;;  %v8295_v18 = vld [vmem:[#allocation2 + $0xb60] ss:$40 sps:$4 sm:$0xff]  }
 0x279   :  { %5666 = vmatprep.subr.bf16.mxu1 %v8213_v37  ;;  %3874 = vmatpush1.bf16.msra.mxu0 %v8214_v12  ;;  %v8294_v37 = vld [vmem:[#allocation2 + $0xb14] ss:$40 sps:$4 sm:$0xff]  }
 0x27a   :  { %3875 = vmatprep.subr.bf16.mxu0 %v8222_v14  ;;  %v8283_v12 = vld [vmem:[#allocation6 + $0x2d0] ss:$12 sps:$4 sm:$0xff]   ;;  %v7404_v14 = vadd.f32 %v9051_v53, %v647_v8 }
 0x27b   :  { %v8298_v53 = vld [vmem:[#allocation2 + $0xbb0] ss:$40 sps:$4 sm:$0xff]   ;;  %v8354_v8 = vld [vmem:[#allocation2 + $0xed4] ss:$40 sps:$4 sm:$0xff]  }
 0x27c   :  { %5667 = vmatpush1.bf16.msra.mxu1 %v8211_v15  ;;  %v8291_v15 = vld [vmem:[#allocation6 + $0x2ec] ss:$12 sps:$4 sm:$0xff]  }
 0x27d   :  { %5668 = vmatprep.subr.bf16.mxu1 %v8219_v17  ;;  %3876 = vmatpush1.bf16.msra.mxu0 %v8220_v21  ;;  %v8297_v17 = vld [vmem:[#allocation2 + $0xb64] ss:$40 sps:$4 sm:$0xff]  }
 0x27e   :  { %3877 = vmatprep.subr.bf16.mxu0 %v8228_v22  ;;  %v8289_v21 = vld [vmem:[#allocation6 + $0x2e8] ss:$12 sps:$4 sm:$0xff]   ;;  %v3986_v22 = vmax.f32 %v7404_v14, 0.0 }
 0x27f   :  { %v8367_v14 = vld [vmem:[#allocation6 + $0x408] ss:$12 sps:$4 sm:$0xff]  }
 0x280   :  { %5669 = vmatpush1.bf16.msra.mxu1 %v8217_v24  ;;  %v8309_v24 = vld [vmem:[#allocation6 + $0x304] ss:$12 sps:$4 sm:$0xff]  }
 0x281   :  { %5670 = vmatprep.subr.bf16.mxu1 %v8225_v25  ;;  %3878 = vmatpush1.bf16.msra.mxu0 %v8226_v26  ;;  %v8300_v25 = vld [vmem:[#allocation2 + $0xbb4] ss:$40 sps:$4 sm:$0xff]  }
 0x282   :  { %3879 = vmatprep.subr.bf16.mxu0 %v8234_v28  ;;  %v8307_v26 = vld [vmem:[#allocation6 + $0x300] ss:$12 sps:$4 sm:$0xff]   ;;  %v9074_v28 = vpack.c.bf16 %v3986_v22, %v3986_v22  ;;  %v8378_v22 = vld [vmem:[#allocation6 + $0x43c] ss:$12 sps:$4 sm:$0xff]  }
 0x284   :  { %5671 = vmatpush1.bf16.msra.mxu1 %v8223_v29  ;;  %v8315_v29 = vld [vmem:[#allocation6 + $0x31c] ss:$12 sps:$4 sm:$0xff]  }
 0x285   :  { %5672 = vmatprep.subr.bf16.mxu1 %v8231_v31  ;;  %3880 = vmatpush1.bf16.msra.mxu0 %v8232_v32  ;;  %v8303_v31 = vld [vmem:[#allocation2 + $0xc04] ss:$40 sps:$4 sm:$0xff]   ;;  %v8313_v32 = vld [vmem:[#allocation6 + $0x318] ss:$12 sps:$4 sm:$0xff]  }
 0x286   :  { %3881 = vmatprep.subr.bf16.mxu0 %v8240_v33  ;;  %v8301_v33 = vld [vmem:[#allocation2 + $0xc00] ss:$40 sps:$4 sm:$0xff]  }
 0x288   :  { %5673 = vmatpush1.bf16.msra.mxu1 %v8229_v54  ;;  %v8321_v54 = vld [vmem:[#allocation6 + $0x334] ss:$12 sps:$4 sm:$0xff]  }
 0x289   :  { %5674 = vmatprep.subr.bf16.mxu1 %v8237_v34  ;;  %3882 = vmatpush1.bf16.msra.mxu0 %v8238_v35  ;;  %v8306_v34 = vld [vmem:[#allocation2 + $0xc54] ss:$40 sps:$4 sm:$0xff]  }
 0x28a   :  { %3883 = vmatprep.subr.bf16.mxu0 %v8246_v36  ;;  %v8319_v35 = vld [vmem:[#allocation6 + $0x330] ss:$12 sps:$4 sm:$0xff]  }
 0x28b   :  { %v8304_v36 = vld [vmem:[#allocation2 + $0xc50] ss:$40 sps:$4 sm:$0xff]  }
 0x28c   :  { %5675 = vmatpush1.bf16.msra.mxu1 %v8235_v23  ;;  %v8327_v23 = vld [vmem:[#allocation6 + $0x34c] ss:$12 sps:$4 sm:$0xff]  }
 0x28d   :  { %5676 = vmatprep.subr.bf16.mxu1 %v8243_v38  ;;  %3884 = vmatpush1.bf16.msra.mxu0 %v8244_v39  ;;  %v8312_v38 = vld [vmem:[#allocation2 + $0xca4] ss:$40 sps:$4 sm:$0xff]  }
 0x28e   :  { %3885 = vmatprep.subr.bf16.mxu0 %v8252_v41  ;;  %v8325_v39 = vld [vmem:[#allocation6 + $0x348] ss:$12 sps:$4 sm:$0xff]  }
 0x28f   :  { %v8310_v41 = vld [vmem:[#allocation2 + $0xca0] ss:$40 sps:$4 sm:$0xff]  }
 0x290   :  { %5677 = vmatpush1.bf16.msra.mxu1 %v8241_v42  ;;  %v8333_v42 = vld [vmem:[#allocation6 + $0x364] ss:$12 sps:$4 sm:$0xff]  }
 0x291   :  { %5678 = vmatprep.subr.bf16.mxu1 %v8249_v43  ;;  %3886 = vmatpush1.bf16.msra.mxu0 %v8250_v44  ;;  %v8318_v43 = vld [vmem:[#allocation2 + $0xcf4] ss:$40 sps:$4 sm:$0xff]  }
 0x292   :  { %3887 = vmatprep.subr.bf16.mxu0 %v8258_v45  ;;  %v8331_v44 = vld [vmem:[#allocation6 + $0x360] ss:$12 sps:$4 sm:$0xff]  }
 0x293   :  { %v8316_v45 = vld [vmem:[#allocation2 + $0xcf0] ss:$40 sps:$4 sm:$0xff]  }
 0x294   :  { %5679 = vmatpush1.bf16.msra.mxu1 %v8247_v47  ;;  %v8339_v47 = vld [vmem:[#allocation6 + $0x37c] ss:$12 sps:$4 sm:$0xff]  }
 0x295   :  { %5680 = vmatprep.subr.bf16.mxu1 %v8255_v59  ;;  %3888 = vmatpush1.bf16.msra.mxu0 %v8256_v48  ;;  %v8324_v59 = vld [vmem:[#allocation2 + $0xd44] ss:$40 sps:$4 sm:$0xff]   ;;  %v8337_v48 = vld [vmem:[#allocation6 + $0x378] ss:$12 sps:$4 sm:$0xff]  }
 0x296   :  { %3889 = vmatprep.subr.bf16.mxu0 %v8264_v60  ;;  %v8322_v60 = vld [vmem:[#allocation2 + $0xd40] ss:$40 sps:$4 sm:$0xff]  }
 0x298   :  { %5681 = vmatpush1.bf16.msra.mxu1 %v8253_v49  ;;  %v8345_v49 = vld [vmem:[#allocation6 + $0x394] ss:$12 sps:$4 sm:$0xff]  }
 0x299   :  { %5682 = vmatprep.subr.bf16.mxu1 %v8261_v50  ;;  %3890 = vmatpush1.bf16.msra.mxu0 %v8262_v51  ;;  %v8330_v50 = vld [vmem:[#allocation2 + $0xd94] ss:$40 sps:$4 sm:$0xff]  }
 0x29a   :  { %3891 = vmatprep.subr.bf16.mxu0 %v8270_v52  ;;  %v8343_v51 = vld [vmem:[#allocation6 + $0x390] ss:$12 sps:$4 sm:$0xff]  }
 0x29b   :  { %v8328_v52 = vld [vmem:[#allocation2 + $0xd90] ss:$40 sps:$4 sm:$0xff]  }
 0x29c   :  { %5683 = vmatpush1.bf16.msra.mxu1 %v8259_v9  ;;  %v8351_v9 = vld [vmem:[#allocation6 + $0x3ac] ss:$12 sps:$4 sm:$0xff]  }
 0x29d   :  { %5684 = vmatprep.subr.bf16.mxu1 %v8267_v55  ;;  %3892 = vmatpush1.bf16.msra.mxu0 %v8268_v56  ;;  %v8336_v55 = vld [vmem:[#allocation2 + $0xde4] ss:$40 sps:$4 sm:$0xff]  }
 0x29e   :  { %3902 = vmatprep.subr.bf16.mxu0 %v8276_v58  ;;  %v8349_v56 = vld [vmem:[#allocation6 + $0x3a8] ss:$12 sps:$4 sm:$0xff]  }
 0x29f   :  { %v8334_v58 = vld [vmem:[#allocation2 + $0xde0] ss:$40 sps:$4 sm:$0xff]  }
 0x2a0   :  { %5685 = vmatpush1.bf16.msra.mxu1 %v8265_v61  ;;  %3894 = vmatmul.mubr.bf16.vlgmr.msra.gmra.mrb[8].mxu0 %v8982_v19  ;;  %v8286_v19 = vld [vmem:[#allocation2 + $0xac0] ss:$40 sps:$4 sm:$0xff]  }
 0x2a1   :  { %5686 = vmatprep.subr.bf16.mxu1 %v8273_v40  ;;  %3903 = vmatpush1.bf16.msra.mxu0 %v8274_v62  ;;  %v8357_v61 = vld [vmem:[#allocation6 + $0x3c4] ss:$12 sps:$4 sm:$0xff]   ;;  %v8355_v62 = vld [vmem:[#allocation6 + $0x3c0] ss:$12 sps:$4 sm:$0xff]  }
 0x2a2   :  { %3904 = vmatprep.subr.bf16.mxu0 %v8282_v63  ;;  %3934 = vmatprep.mubr.bf16.mxu0 %v8993_v27  ;;  %v8292_v27 = vld [vmem:[#allocation2 + $0xb10] ss:$40 sps:$4 sm:$0xff]   ;;  %v8342_v40 = vld [vmem:[#allocation2 + $0xe34] ss:$40 sps:$4 sm:$0xff]  }
 0x2a3   :  { %v8340_v63 = vld [vmem:[#allocation2 + $0xe30] ss:$40 sps:$4 sm:$0xff]  }
 0x2a4   :  { %5687 = vmatpush1.bf16.msra.mxu1 %v8271_v1  ;;  %v8363_v1 = vld [vmem:[#allocation6 + $0x3dc] ss:$12 sps:$4 sm:$0xff]  }
 0x2a5   :  { %5688 = vmatprep.subr.bf16.mxu1 %v8279_v3  ;;  %3905 = vmatpush1.bf16.msra.mxu0 %v8280_v4  ;;  %v8348_v3 = vld [vmem:[#allocation2 + $0xe84] ss:$40 sps:$4 sm:$0xff]   ;;  %v8361_v4 = vld [vmem:[#allocation6 + $0x3d8] ss:$12 sps:$4 sm:$0xff]  }
 0x2a6   :  { %3906 = vmatprep.subr.bf16.mxu0 %v8288_v5  ;;  %v8346_v5 = vld [vmem:[#allocation2 + $0xe80] ss:$40 sps:$4 sm:$0xff]  }
 0x2a8   :  { %5689 = vmatpush1.bf16.msra.mxu1 %v8277_v57  ;;  %v8366_v57 = vld [vmem:[#allocation6 + $0x3f4] ss:$12 sps:$4 sm:$0xff]  }
 0x2a9   :  { %5690 = vmatprep.subr.bf16.mxu1 %v8285_v11  ;;  %3907 = vmatpush1.bf16.msra.mxu0 %v8286_v19  ;;  %v8364_v11 = vld [vmem:[#allocation6 + $0x3f0] ss:$12 sps:$4 sm:$0xff]  }
 0x2aa   :  { %3908 = vmatprep.subr.bf16.mxu0 %v8294_v37  ;;  %v8352_v19 = vld [vmem:[#allocation2 + $0xed0] ss:$40 sps:$4 sm:$0xff]  }
 0x2ab   :  { %v8369_v37 = vld [vmem:[#allocation6 + $0x40c] ss:$12 sps:$4 sm:$0xff]  }
 0x2ac   :  { %5691 = vmatpush1.bf16.msra.mxu1 %v8283_v12  ;;  %v8360_v12 = vld [vmem:[#allocation2 + $0xf24] ss:$40 sps:$4 sm:$0xff]  }
 0x2ad   :  { %5692 = vmatprep.subr.bf16.mxu1 %v8291_v15  ;;  %3909 = vmatpush1.bf16.msra.mxu0 %v8292_v27  ;;  %v8358_v15 = vld [vmem:[#allocation2 + $0xf20] ss:$40 sps:$4 sm:$0xff]  }
 0x2ae   :  { %3910 = vmatprep.subr.bf16.mxu0 %v8297_v17  ;;  %v8370_v27 = vld [vmem:[#allocation6 + $0xc8] ss:$12 sps:$4 sm:$0xff]   ;;  %v8373_v17 = vld [vmem:[#allocation6 + $0x424] ss:$12 sps:$4 sm:$0xff]  }
 0x2b0   :  { %5693 = vmatpush1.bf16.msra.mxu1 %v8289_v21  ;;  %v8371_v21 = vld [vmem:[#allocation6 + $0x420] ss:$12 sps:$4 sm:$0xff]  }
 0x2b1   :  { %3911 = vmatpush1.bf16.msra.mxu0 %v8295_v18  ;;  %5703 = vmatprep.subr.bf16.mxu1 %v8309_v24  ;;  %v8376_v18 = vld [vmem:[#allocation6 + $0x438] ss:$12 sps:$4 sm:$0xff]   ;;  %v8383_v24 = vld [vmem:[#allocation6 + $0x454] ss:$12 sps:$4 sm:$0xff]  }
 0x2b2   :  { %3912 = vmatprep.subr.bf16.mxu0 %v8300_v25  ;;  %v8381_v25 = vld [vmem:[#allocation6 + $0x450] ss:$12 sps:$4 sm:$0xff]  }
 0x2b3   :  { %5695 = vmatmul.mubr.bf16.vlgmr.msra.gmra.mrb[12].mxu1 %v9074_v28 }
 0x2b4   :  { %5704 = vmatpush1.bf16.msra.mxu1 %v8307_v26  ;;  %v8374_v26 = vld [vmem:[#allocation6 + $0x8] ss:$12 sps:$4 sm:$0xff]  }
 0x2b5   :  { %3913 = vmatpush1.bf16.msra.mxu0 %v8298_v53  ;;  %5705 = vmatprep.subr.bf16.mxu1 %v8315_v29  ;;  %v8375_v53 = vld [vmem:[#allocation6 + $0xe0] ss:$12 sps:$4 sm:$0xff]  }
 0x2b6   :  { %3914 = vmatprep.subr.bf16.mxu0 %v8303_v31  ;;  %v8388_v29 = vld [vmem:[#allocation6 + $0x46c] ss:$12 sps:$4 sm:$0xff]  }
 0x2b7   :  { %v8379_v31 = vld [vmem:[#allocation6 + $0x20] ss:$12 sps:$4 sm:$0xff]  }
 0x2b8   :  { %5706 = vmatpush1.bf16.msra.mxu1 %v8313_v32  ;;  %v658_v32 = vsub.s32 5, %v9023_v10 }
 0x2b9   :  { %3915 = vmatpush1.bf16.msra.mxu0 %v8301_v33  ;;  %5707 = vmatprep.subr.bf16.mxu1 %v8321_v54  ;;  %v8393_v33 = vld [vmem:[#allocation6 + $0x484] ss:$12 sps:$4 sm:$0xff]  }
 0x2ba   :  { %3916 = vmatprep.subr.bf16.mxu0 %v8306_v34  ;;  %v8380_v54 = vld [vmem:[#allocation6 + $0xf8] ss:$12 sps:$4 sm:$0xff]  }
 0x2bb   :  { %v9084_v34 = vld [vmem:[#allocation4] sm:$0xff] }
 0x2bc   :  { %5708 = vmatpush1.bf16.msra.mxu1 %v8319_v35 }
 0x2bd   :  { %3917 = vmatpush1.bf16.msra.mxu0 %v8304_v36  ;;  %5709 = vmatprep.subr.bf16.mxu1 %v8327_v23  ;;  %v659_v36 = vrot.slane %v9084_v34, %v658_v32  ;;  %v8385_v23 = vld [vmem:[#allocation6 + $0x110] ss:$12 sps:$4 sm:$0xff]   ;;  %v8430_v32 = vld [vmem:[#allocation6 + $0x2a8] ss:$12 sps:$4 sm:$0xff]  }
 0x2be   :  { %3918 = vmatprep.subr.bf16.mxu0 %v8312_v38 }
 0x2c0   :  { %5710 = vmatpush1.bf16.msra.mxu1 %v8325_v39 }
 0x2c1   :  { %3919 = vmatpush1.bf16.msra.mxu0 %v8310_v41  ;;  %5711 = vmatprep.subr.bf16.mxu1 %v8333_v42 }
 0x2c2   :  { %3920 = vmatprep.subr.bf16.mxu0 %v8318_v43  ;;  %v8389_v43 = vld [vmem:[#allocation6 + $0x50] ss:$12 sps:$4 sm:$0xff]  }
 0x2c4   :  { %5712 = vmatpush1.bf16.msra.mxu1 %v8331_v44 }
 0x2c5   :  { %3921 = vmatpush1.bf16.msra.mxu0 %v8316_v45  ;;  %5713 = vmatprep.subr.bf16.mxu1 %v8339_v47  ;;  %v8390_v47 = vld [vmem:[#allocation6 + $0x128] ss:$12 sps:$4 sm:$0xff]  }
 0x2c6   :  { %3922 = vmatprep.subr.bf16.mxu0 %v8324_v59 }
 0x2c8   :  { %5714 = vmatpush1.bf16.msra.mxu1 %v8337_v48 }
 0x2c9   :  { %3923 = vmatpush1.bf16.msra.mxu0 %v8322_v60  ;;  %5715 = vmatprep.subr.bf16.mxu1 %v8345_v49  ;;  %v8391_v60 = vld [vmem:[#allocation6 + $0x480] ss:$12 sps:$4 sm:$0xff]   ;;  %v8394_v49 = vld [vmem:[#allocation6 + $0x68] ss:$12 sps:$4 sm:$0xff]  }
 0x2ca   :  { %3924 = vmatprep.subr.bf16.mxu0 %v8330_v50 }
 0x2cc   :  { %5716 = vmatpush1.bf16.msra.mxu1 %v8343_v51  ;;  %v8395_v51 = vld [vmem:[#allocation6 + $0x140] ss:$12 sps:$4 sm:$0xff]  }
 0x2cd   :  { %3925 = vmatpush1.bf16.msra.mxu0 %v8328_v52  ;;  %5717 = vmatprep.subr.bf16.mxu1 %v8351_v9  ;;  %v8398_v52 = vld [vmem:[#allocation6 + $0x49c] ss:$12 sps:$4 sm:$0xff]   ;;  %v8396_v9 = vld [vmem:[#allocation6 + $0x498] ss:$12 sps:$4 sm:$0xff]  }
 0x2ce   :  { %3926 = vmatprep.subr.bf16.mxu0 %v8336_v55  ;;  %v8399_v55 = vld [vmem:[#allocation6 + $0x80] ss:$12 sps:$4 sm:$0xff]  }
 0x2d0   :  { %5718 = vmatpush1.bf16.msra.mxu1 %v8349_v56  ;;  %v8400_v56 = vld [vmem:[#allocation6 + $0x158] ss:$12 sps:$4 sm:$0xff]  }
 0x2d1   :  { %3927 = vmatpush1.bf16.msra.mxu0 %v8334_v58  ;;  %5719 = vmatprep.subr.bf16.mxu1 %v8357_v61  ;;  %v8403_v58 = vld [vmem:[#allocation6 + $0x4b4] ss:$12 sps:$4 sm:$0xff]   ;;  %v666_v61 = vsub.s32 7, %v9023_v10 }
 0x2d2   :  { %3928 = vmatprep.subr.bf16.mxu0 %v8342_v40  ;;  %v8401_v40 = vld [vmem:[#allocation6 + $0x4b0] ss:$12 sps:$4 sm:$0xff]  }
 0x2d4   :  { %5720 = vmatpush1.bf16.msra.mxu1 %v8355_v62  ;;  %v8404_v62 = vld [vmem:[#allocation6 + $0x98] ss:$12 sps:$4 sm:$0xff]  }
 0x2d5   :  { %3929 = vmatpush1.bf16.msra.mxu0 %v8340_v63  ;;  %5721 = vmatprep.subr.bf16.mxu1 %v8363_v1  ;;  %v8405_v63 = vld [vmem:[#allocation6 + $0x170] ss:$12 sps:$4 sm:$0xff]   ;;  %v8408_v1 = vld [vmem:[#allocation6 + $0x4cc] ss:$12 sps:$4 sm:$0xff]  }
 0x2d6   :  { %3930 = vmatprep.subr.bf16.mxu0 %v8348_v3  ;;  %v667_v3 = vrot.slane %v9084_v34, %v666_v61  ;;  %v8460_v61 = vld [vmem:[#allocation6 + $0x3f8] ss:$12 sps:$4 sm:$0xff]  }
 0x2d8   :  { %5722 = vmatpush1.bf16.msra.mxu1 %v8361_v4  ;;  %v8406_v4 = vld [vmem:[#allocation6 + $0x4c8] ss:$12 sps:$4 sm:$0xff]  }
 0x2d9   :  { %3931 = vmatpush1.bf16.msra.mxu0 %v8346_v5  ;;  %5723 = vmatprep.subr.bf16.mxu1 %v8366_v57  ;;  %v8409_v5 = vld [vmem:[#allocation6 + $0xb0] ss:$12 sps:$4 sm:$0xff]  }
 0x2da   :  { %3932 = vmatprep.subr.bf16.mxu0 %v8354_v8  ;;  %v8410_v8 = vld [vmem:[#allocation6 + $0x248] ss:$12 sps:$4 sm:$0xff]  }
 0x2dc   :  { %5724 = vmatpush1.bf16.msra.mxu1 %v8364_v11  ;;  %v8413_v11 = vld [vmem:[#allocation6 + $0x4e4] ss:$12 sps:$4 sm:$0xff]  }
 0x2dd   :  { %3933 = vmatpush1.bf16.msra.mxu0 %v8352_v19  ;;  %5725 = vmatprep.subr.bf16.mxu1 %v8369_v37 }
 0x2de   :  { %3943 = vmatprep.subr.bf16.mxu0 %v8360_v12 }
 0x2e0   :  { %3935 = vmatmul.mubr.bf16.vlgmr.msra.gmra.mrb[8].mxu0 %v9000_v30  ;;  %5726 = vmatpush1.bf16.msra.mxu1 %v8367_v14  ;;  %v654_v30 = vsub.s32 4, %v9023_v10 }
 0x2e1   :  { %3944 = vmatpush1.bf16.msra.mxu0 %v8358_v15  ;;  %3975 = vmatprep.mubr.bf16.mxu0 %v8791_v0  ;;  %v8386_v0 = vld [vmem:[#allocation6 + $0x468] ss:$12 sps:$4 sm:$0xff]  }
 0x2e2   :  { %7210 = vmatprep.subr.bf16.mxu0 %v8370_v27  ;;  %5727 = vmatprep.subr.bf16.mxu1 %v8373_v17  ;;  %v655_v35 = vrot.slane %v9084_v34, %v654_v30  ;;  %v8414_v15 = vld [vmem:[#allocation6 + $0x188] ss:$12 sps:$4 sm:$0xff]   ;;  %v8411_v17 = vld [vmem:[#allocation6 + $0x4e0] ss:$12 sps:$4 sm:$0xff]   ;;  %v8421_v30 = vld [vmem:[#allocation6 + $0x510] ss:$12 sps:$4 sm:$0xff]  }
 0x2e4   :  { %5728 = vmatpush1.bf16.msra.mxu1 %v8371_v21  ;;  %v8415_v21 = vld [vmem:[#allocation6 + $0x260] ss:$12 sps:$4 sm:$0xff]  }
 0x2e5   :  { %5729 = vmatprep.subr.bf16.mxu1 %v8378_v22  ;;  %v8418_v22 = vld [vmem:[#allocation6 + $0x4fc] ss:$12 sps:$4 sm:$0xff]  }
 0x2e8   :  { %5730 = vmatpush1.bf16.msra.mxu1 %v8376_v18 }
 0x2e9   :  { %5731 = vmatprep.subr.bf16.mxu1 %v8383_v24  ;;  %v8419_v24 = vld [vmem:[#allocation6 + $0x1a0] ss:$12 sps:$4 sm:$0xff]  }
 0x2ec   :  { %6935 = vmatmul.mubr.msk.bf16.vlgmr.msra.gmra.mrb[8].mxu0 %vm3160_vm0, %v8952_v13  ;;  %5732 = vmatpush1.bf16.msra.mxu1 %v8381_v25  ;;  %v8384_v13 = vld [vmem:[#allocation6 + $0x38] ss:$12 sps:$4 sm:$0xff]  }
 0x2ed   :  { %7211 = vmatpush3.bf16.msra.mxu0 %v8374_v26  ;;  %5858 = vmatprep.mubr.bf16.mxu0 %v9046_v46  ;;  %v8416_v25 = vld [vmem:[#allocation6 + $0x4f8] ss:$12 sps:$4 sm:$0xff]  }
 0x2ee   :  { %7212 = vmatprep.subr.bf16.mxu0 %v8375_v53  ;;  %5733 = vmatprep.subr.bf16.mxu1 %v8388_v29  ;;  %v8420_v26 = vld [vmem:[#allocation6 + $0x278] ss:$12 sps:$4 sm:$0xff]   ;;  %v8423_v53 = vld [vmem:[#allocation6 + $0x514] ss:$12 sps:$4 sm:$0xff]  }
 0x2ef   :  { %v8424_v29 = vld [vmem:[#allocation6 + $0x1b8] ss:$12 sps:$4 sm:$0xff]  }
 0x2f0   :  { %5734 = vmatpush1.bf16.msra.mxu1 %v8386_v0  ;;  %v8425_v0 = vld [vmem:[#allocation6 + $0x290] ss:$12 sps:$4 sm:$0xff]  }
 0x2f1   :  { %7213 = vmatpush3.bf16.msra.mxu0 %v8379_v31  ;;  %5744 = vmatprep.subr.bf16.mxu1 %v8393_v33  ;;  %v8429_v31 = vld [vmem:[#allocation6 + $0x1d0] ss:$12 sps:$4 sm:$0xff]  }
 0x2f2   :  { %7214 = vmatprep.subr.bf16.mxu0 %v8380_v54  ;;  %v8433_v33 = vld [vmem:[#allocation6 + $0x544] ss:$12 sps:$4 sm:$0xff]   ;;  %v8434_v54 = vld [vmem:[#allocation6 + $0x1e8] ss:$12 sps:$4 sm:$0xff]  }
 0x2f3   :  { %v3649_v46 = vpop.f32.mrb[4].mxu0 }
 0x2f4   :  { %v7406_v38 = vadd.f32 %v3649_v46, %v655_v35  ;;  %v3651_v39 = vpop.f32.mrb[5].mxu0  ;;  %v8431_v35 = vld [vmem:[#allocation6 + $0x540] ss:$12 sps:$4 sm:$0xff]   ;;  %v8436_v46 = vld [vmem:[#allocation6 + $0x558] ss:$12 sps:$4 sm:$0xff]  }
 0x2f5   :  { %7215 = vmatpush3.bf16.msra.mxu0 %v8384_v13  ;;  %v7407_v41 = vadd.f32 %v3651_v39, %v659_v36  ;;  %v3653_v42 = vpop.f32.mrb[6].mxu0  ;;  %v8435_v13 = vld [vmem:[#allocation6 + $0x2c0] ss:$12 sps:$4 sm:$0xff]   ;;  %v8438_v36 = vld [vmem:[#allocation6 + $0x55c] ss:$12 sps:$4 sm:$0xff]  }
 0x2f6   :  { %v3988_v44 = vmax.f32 %v7406_v38, 0.0  ;;  %v3654_v45 = vpop.f32.mrb[7].mxu0  ;;  %7216 = vmatprep.subr.bf16.mxu0 %v8385_v23  ;;  %v8439_v23 = vld [vmem:[#allocation6 + $0x200] ss:$12 sps:$4 sm:$0xff]   ;;  %v8440_v38 = vld [vmem:[#allocation6 + $0x2d8] ss:$12 sps:$4 sm:$0xff]  }
 0x2f7   :  { %v3989_v59 = vmax.f32 %v7407_v41, 0.0  ;;  %v8443_v39 = vld [vmem:[#allocation6 + $0x574] ss:$12 sps:$4 sm:$0xff]   ;;  %v8444_v41 = vld [vmem:[#allocation6 + $0x218] ss:$12 sps:$4 sm:$0xff]  }
 0x2f8   :  { %v9090_v50 = vpack.c.bf16 %v3988_v44, %v3988_v44  ;;  %v8441_v42 = vld [vmem:[#allocation6 + $0x570] ss:$12 sps:$4 sm:$0xff]   ;;  %v8448_v44 = vld [vmem:[#allocation6 + $0x58c] ss:$12 sps:$4 sm:$0xff]  }
 0x2f9   :  { %v9088_v48 = vpack.c.bf16 %v3989_v59, %v3989_v59  ;;  %7217 = vmatpush3.bf16.msra.mxu0 %v8389_v43  ;;  %v8445_v43 = vld [vmem:[#allocation6 + $0x2f0] ss:$12 sps:$4 sm:$0xff]   ;;  %v8450_v59 = vld [vmem:[#allocation6 + $0x3c8] ss:$12 sps:$4 sm:$0xff]  }
 0x2fa   :  { %7218 = vmatprep.subr.bf16.mxu0 %v8390_v47  ;;  %v8449_v45 = vld [vmem:[#allocation6 + $0x230] ss:$12 sps:$4 sm:$0xff]   ;;  %v8446_v47 = vld [vmem:[#allocation6 + $0x588] ss:$12 sps:$4 sm:$0xff]  }
 0x2fb   :  { %5735 = vmatprep.mubr.bf16.mxu1 %v9088_v48 }
 0x2fc   :  { %5736 = vmatmul.mubr.bf16.vlgmr.msra.gmra.mrb[12].mxu1 %v9090_v50 }
 0x2fd   :  { %7219 = vmatpush3.bf16.msra.mxu0 %v8394_v49  ;;  %5745 = vmatpush1.bf16.msra.mxu1 %v8391_v60  ;;  %v8453_v60 = vld [vmem:[#allocation6 + $0x5a4] ss:$12 sps:$4 sm:$0xff]   ;;  %v8454_v49 = vld [vmem:[#allocation6 + $0x308] ss:$12 sps:$4 sm:$0xff]  }
 0x2fe   :  { %7220 = vmatprep.subr.bf16.mxu0 %v8395_v51  ;;  %5746 = vmatprep.subr.bf16.mxu1 %v8398_v52  ;;  %v8451_v51 = vld [vmem:[#allocation6 + $0x5a0] ss:$12 sps:$4 sm:$0xff]  }
 0x2ff   :  { %v8455_v52 = vld [vmem:[#allocation6 + $0x3e0] ss:$12 sps:$4 sm:$0xff]  }
 0x301   :  { %7221 = vmatpush3.bf16.msra.mxu0 %v8399_v55  ;;  %5747 = vmatpush1.bf16.msra.mxu1 %v8396_v9  ;;  %v662_v9 = vsub.s32 6, %v9023_v10  ;;  %v8458_v55 = vld [vmem:[#allocation6 + $0x5bc] ss:$12 sps:$4 sm:$0xff]  }
 0x302   :  { %7222 = vmatprep.subr.bf16.mxu0 %v8400_v56  ;;  %5748 = vmatprep.subr.bf16.mxu1 %v8403_v58  ;;  %v8459_v56 = vld [vmem:[#allocation6 + $0x320] ss:$12 sps:$4 sm:$0xff]   ;;  %v8456_v58 = vld [vmem:[#allocation6 + $0x5b8] ss:$12 sps:$4 sm:$0xff]  }
 0x305   :  { %7223 = vmatpush3.bf16.msra.mxu0 %v8404_v62  ;;  %5749 = vmatpush1.bf16.msra.mxu1 %v8401_v40  ;;  %v663_v40 = vrot.slane %v9084_v34, %v662_v9  ;;  %v8463_v62 = vld [vmem:[#allocation6 + $0x5d4] ss:$12 sps:$4 sm:$0xff]   ;;  %v8496_v34 = vld [vmem:[#allocation6 + $0x604] ss:$12 sps:$4 sm:$0xff]  }
 0x306   :  { %v9096_v57 = vpop.f32.mrb[8].mxu1  ;;  %7224 = vmatprep.subr.bf16.mxu0 %v8405_v63  ;;  %5750 = vmatprep.subr.bf16.mxu1 %v8408_v1  ;;  %v8464_v63 = vld [vmem:[#allocation6 + $0x338] ss:$12 sps:$4 sm:$0xff]   ;;  %v8461_v1 = vld [vmem:[#allocation6 + $0x5d0] ss:$12 sps:$4 sm:$0xff]  }
 0x307   :  { %v3815_v19 = vpop.f32.mrb[9].mxu1  ;;  %v8524_v9 = vld [vmem:[#allocation6 + $0x6f0] ss:$12 sps:$4 sm:$0xff]  }
 0x308   :  { %v7409_v37 = vadd.f32 %v3815_v19, %v667_v3  ;;  %v3817_v12 = vpop.f32.mrb[10].mxu1  ;;  %v8465_v3 = vld [vmem:[#allocation6 + $0x410] ss:$12 sps:$4 sm:$0xff]   ;;  %v8471_v19 = vld [vmem:[#allocation6 + $0x368] ss:$12 sps:$4 sm:$0xff]  }
 0x309   :  { %v3818_v14 = vpop.f32.mrb[11].mxu1  ;;  %7225 = vmatpush3.bf16.msra.mxu0 %v8409_v5  ;;  %5751 = vmatpush1.bf16.msra.mxu1 %v8406_v4  ;;  %v8468_v4 = vld [vmem:[#allocation6 + $0x5ec] ss:$12 sps:$4 sm:$0xff]   ;;  %v8466_v5 = vld [vmem:[#allocation6 + $0x5e8] ss:$12 sps:$4 sm:$0xff]  }
 0x30a   :  { %v3991_v27 = vmax.f32 %v7409_v37, 0.0  ;;  %7232 = vmatprep.subr.bf16.mxu0 %v8410_v8  ;;  %5752 = vmatprep.subr.bf16.mxu1 %v8413_v11  ;;  %v8470_v8 = vld [vmem:[#allocation6 + $0x428] ss:$12 sps:$4 sm:$0xff]   ;;  %v8472_v37 = vld [vmem:[#allocation6 + $0x440] ss:$12 sps:$4 sm:$0xff]  }
 0x30b   :  { %v8494_v12 = vld [vmem:[#allocation6 + $0x600] ss:$12 sps:$4 sm:$0xff]  }
 0x30c   :  { %v9098_v18 = vpack.c.bf16 %v3991_v27, %v3991_v27  ;;  %5859 = vmatmul.mubr.bf16.vlgmr.msra.gmra.mrb[12].mxu0 %v9061_v6  ;;  %v8428_v6 = vld [vmem:[#allocation6 + $0x52c] ss:$12 sps:$4 sm:$0xff]  }
 0x30d   :  { %7233 = vmatpush3.bf16.msra.mxu0 %v8414_v15  ;;  %5898 = vmatprep.mubr.bf16.mxu0 %v9063_v7  ;;  %v8426_v7 = vld [vmem:[#allocation6 + $0x528] ss:$12 sps:$4 sm:$0xff]   ;;  %v8473_v15 = vld [vmem:[#allocation6 + $0x380] ss:$12 sps:$4 sm:$0xff]   ;;  %v8474_v27 = vld [vmem:[#allocation6 + $0x458] ss:$12 sps:$4 sm:$0xff]  }
 0x30e   :  { %5776 = vmatprep.mubr.bf16.mxu1 %v9098_v18  ;;  %5753 = vmatpush1.bf16.msra.mxu1 %v8411_v17  ;;  %v8497_v17 = vld [vmem:[#allocation6 + $0x618] ss:$12 sps:$4 sm:$0xff]  }
 0x30f   :  { %7234 = vmatprep.subr.bf16.mxu0 %v8415_v21  ;;  %5754 = vmatprep.subr.bf16.mxu1 %v8418_v22  ;;  %v8502_v21 = vld [vmem:[#allocation6 + $0x634] ss:$12 sps:$4 sm:$0xff]   ;;  %v8475_v22 = vld [vmem:[#allocation6 + $0x398] ss:$12 sps:$4 sm:$0xff]  }
 0x311   :  { %7235 = vmatpush3.bf16.msra.mxu0 %v8419_v24  ;;  %v8476_v24 = vld [vmem:[#allocation6 + $0x470] ss:$12 sps:$4 sm:$0xff]  }
 0x312   :  { %5755 = vmatpush1.bf16.msra.mxu1 %v8416_v25  ;;  %7236 = vmatprep.subr.bf16.mxu0 %v8420_v26  ;;  %v8500_v25 = vld [vmem:[#allocation6 + $0x630] ss:$12 sps:$4 sm:$0xff]   ;;  %v8505_v26 = vld [vmem:[#allocation6 + $0x64c] ss:$12 sps:$4 sm:$0xff]  }
 0x313   :  { %5756 = vmatprep.subr.bf16.mxu1 %v8423_v53  ;;  %v8477_v53 = vld [vmem:[#allocation6 + $0x3b0] ss:$12 sps:$4 sm:$0xff]  }
 0x315   :  { %7237 = vmatpush3.bf16.msra.mxu0 %v8424_v29  ;;  %v8478_v29 = vld [vmem:[#allocation6 + $0x548] ss:$12 sps:$4 sm:$0xff]  }
 0x316   :  { %5757 = vmatpush1.bf16.msra.mxu1 %v8421_v30  ;;  %7238 = vmatprep.subr.bf16.mxu0 %v8425_v0  ;;  %v8503_v30 = vld [vmem:[#allocation6 + $0x648] ss:$12 sps:$4 sm:$0xff]   ;;  %v8508_v0 = vld [vmem:[#allocation6 + $0x664] ss:$12 sps:$4 sm:$0xff]  }
 0x317   :  { %5758 = vmatprep.subr.bf16.mxu1 %v8428_v6  ;;  %v8479_v6 = vld [vmem:[#allocation6 + $0x488] ss:$12 sps:$4 sm:$0xff]  }
 0x319   :  { %7239 = vmatpush3.bf16.msra.mxu0 %v8429_v31  ;;  %v8480_v31 = vld [vmem:[#allocation6 + $0x560] ss:$12 sps:$4 sm:$0xff]  }
 0x31a   :  { %5759 = vmatpush1.bf16.msra.mxu1 %v8426_v7  ;;  %7240 = vmatprep.subr.bf16.mxu0 %v8430_v32  ;;  %v8506_v7 = vld [vmem:[#allocation6 + $0x660] ss:$12 sps:$4 sm:$0xff]   ;;  %v8511_v32 = vld [vmem:[#allocation6 + $0x67c] ss:$12 sps:$4 sm:$0xff]  }
 0x31b   :  { %5760 = vmatprep.subr.bf16.mxu1 %v8433_v33  ;;  %v8481_v33 = vld [vmem:[#allocation6 + $0x4a0] ss:$12 sps:$4 sm:$0xff]  }
 0x31d   :  { %7241 = vmatpush3.bf16.msra.mxu0 %v8434_v54  ;;  %v8482_v54 = vld [vmem:[#allocation6 + $0x578] ss:$12 sps:$4 sm:$0xff]  }
 0x31e   :  { %5761 = vmatpush1.bf16.msra.mxu1 %v8431_v35  ;;  %7242 = vmatprep.subr.bf16.mxu0 %v8435_v13  ;;  %v8509_v35 = vld [vmem:[#allocation6 + $0x678] ss:$12 sps:$4 sm:$0xff]   ;;  %v8514_v13 = vld [vmem:[#allocation6 + $0x694] ss:$12 sps:$4 sm:$0xff]  }
 0x31f   :  { %5762 = vmatprep.subr.bf16.mxu1 %v8438_v36  ;;  %v8483_v36 = vld [vmem:[#allocation6 + $0x4b8] ss:$12 sps:$4 sm:$0xff]  }
 0x321   :  { %7243 = vmatpush3.bf16.msra.mxu0 %v8439_v23  ;;  %v8484_v23 = vld [vmem:[#allocation6 + $0x590] ss:$12 sps:$4 sm:$0xff]  }
 0x322   :  { %5763 = vmatpush1.bf16.msra.mxu1 %v8436_v46  ;;  %7244 = vmatprep.subr.bf16.mxu0 %v8440_v38  ;;  %v8512_v46 = vld [vmem:[#allocation6 + $0x690] ss:$12 sps:$4 sm:$0xff]   ;;  %v8517_v38 = vld [vmem:[#allocation6 + $0x6ac] ss:$12 sps:$4 sm:$0xff]  }
 0x323   :  { %5764 = vmatprep.subr.bf16.mxu1 %v8443_v39  ;;  %v8486_v39 = vld [vmem:[#allocation6 + $0x5a8] ss:$12 sps:$4 sm:$0xff]  }
 0x325   :  { %7245 = vmatpush3.bf16.msra.mxu0 %v8444_v41  ;;  %v8520_v41 = vld [vmem:[#allocation6 + $0x6c4] ss:$12 sps:$4 sm:$0xff]  }
 0x326   :  { %5765 = vmatpush1.bf16.msra.mxu1 %v8441_v42  ;;  %7246 = vmatprep.subr.bf16.mxu0 %v8445_v43  ;;  %v8487_v42 = vld [vmem:[#allocation6 + $0x4e8] ss:$12 sps:$4 sm:$0xff]   ;;  %v8488_v43 = vld [vmem:[#allocation6 + $0x5c0] ss:$12 sps:$4 sm:$0xff]  }
 0x327   :  { %5766 = vmatprep.subr.bf16.mxu1 %v8448_v44  ;;  %v8518_v44 = vld [vmem:[#allocation6 + $0x6c0] ss:$12 sps:$4 sm:$0xff]  }
 0x329   :  { %7247 = vmatpush3.bf16.msra.mxu0 %v8449_v45  ;;  %v8523_v45 = vld [vmem:[#allocation6 + $0x6dc] ss:$12 sps:$4 sm:$0xff]  }
 0x32a   :  { %5767 = vmatpush1.bf16.msra.mxu1 %v8446_v47  ;;  %7254 = vmatprep.subr.bf16.mxu0 %v8450_v59  ;;  %v8489_v47 = vld [vmem:[#allocation6 + $0x500] ss:$12 sps:$4 sm:$0xff]   ;;  %v8490_v59 = vld [vmem:[#allocation6 + $0x5d8] ss:$12 sps:$4 sm:$0xff]  }
 0x32b   :  { %5768 = vmatprep.subr.bf16.mxu1 %v8453_v60  ;;  %v8521_v60 = vld [vmem:[#allocation6 + $0x6d8] ss:$12 sps:$4 sm:$0xff]  }
 0x32c   :  { %5899 = vmatmul.mubr.bf16.vlgmr.msra.gmra.mrb[16].mxu0 %v9074_v28  ;;  %v7408_v28 = vadd.f32 %v9096_v57, %v663_v40  ;;  %v8499_v57 = vld [vmem:[#allocation6 + $0x61c] ss:$12 sps:$4 sm:$0xff]   ;;  %v8530_v40 = vld [vmem:[#allocation6 + $0x720] ss:$12 sps:$4 sm:$0xff]  }
 0x32d   :  { %7255 = vmatpush3.bf16.msra.mxu0 %v8454_v49  ;;  %5938 = vmatprep.mubr.bf16.mxu0 %v9088_v48  ;;  %v8469_v48 = vld [vmem:[#allocation6 + $0x350] ss:$12 sps:$4 sm:$0xff]   ;;  %v8526_v49 = vld [vmem:[#allocation6 + $0x6f4] ss:$12 sps:$4 sm:$0xff]  }
 0x32e   :  { %5769 = vmatpush1.bf16.msra.mxu1 %v8451_v51  ;;  %7256 = vmatprep.subr.bf16.mxu0 %v8455_v52  ;;  %v3990_v11 = vmax.f32 %v7408_v28, 0.0  ;;  %v8491_v51 = vld [vmem:[#allocation6 + $0x518] ss:$12 sps:$4 sm:$0xff]   ;;  %v8492_v52 = vld [vmem:[#allocation6 + $0x5f0] ss:$12 sps:$4 sm:$0xff]  }
 0x32f   :  { %5770 = vmatprep.subr.bf16.mxu1 %v8458_v55  ;;  %v8529_v55 = vld [vmem:[#allocation6 + $0x70c] ss:$12 sps:$4 sm:$0xff]  }
 0x330   :  { %v9108_v14 = vpack.c.bf16 %v3990_v11, %v3990_v11  ;;  %v8541_v28 = vld [vmem:[#allocation6 + $0x76c] ss:$12 sps:$4 sm:$0xff]  }
 0x331   :  { %7257 = vmatpush3.bf16.msra.mxu0 %v8459_v56  ;;  %v8493_v56 = vld [vmem:[#allocation6 + $0x530] ss:$12 sps:$4 sm:$0xff]  }
 0x332   :  { %5771 = vmatpush1.bf16.msra.mxu1 %v8456_v58  ;;  %7258 = vmatprep.subr.bf16.mxu0 %v8460_v61  ;;  %v8527_v58 = vld [vmem:[#allocation6 + $0x708] ss:$12 sps:$4 sm:$0xff]   ;;  %v8532_v61 = vld [vmem:[#allocation6 + $0x724] ss:$12 sps:$4 sm:$0xff]  }
 0x333   :  { %5772 = vmatprep.subr.bf16.mxu1 %v8463_v62  ;;  %v8535_v62 = vld [vmem:[#allocation6 + $0x73c] ss:$12 sps:$4 sm:$0xff]  }
 0x335   :  { %7259 = vmatpush3.bf16.msra.mxu0 %v8464_v63  ;;  %v8533_v63 = vld [vmem:[#allocation6 + $0x738] ss:$12 sps:$4 sm:$0xff]  }
 0x336   :  { %5773 = vmatpush1.bf16.msra.mxu1 %v8461_v1  ;;  %7260 = vmatprep.subr.bf16.mxu0 %v8465_v3  ;;  %v8538_v1 = vld [vmem:[#allocation6 + $0x754] ss:$12 sps:$4 sm:$0xff]   ;;  %v8536_v3 = vld [vmem:[#allocation6 + $0x750] ss:$12 sps:$4 sm:$0xff]  }
 0x337   :  { %5774 = vmatprep.subr.bf16.mxu1 %v8468_v4  ;;  %v8539_v4 = vld [vmem:[#allocation6 + $0x768] ss:$12 sps:$4 sm:$0xff]  }
 0x339   :  { %7261 = vmatpush3.bf16.msra.mxu0 %v8469_v48  ;;  %v8542_v48 = vld [vmem:[#allocation6 + $0x6c8] ss:$12 sps:$4 sm:$0xff]  }
 0x33a   :  { %5775 = vmatpush1.bf16.msra.mxu1 %v8466_v5  ;;  %7262 = vmatprep.subr.bf16.mxu0 %v8470_v8  ;;  %v633_v5 = vld [vmem:[#allocation4 + $0x8] sm:$0x3] }
 0x33b   :  { %5785 = vmatprep.subr.bf16.mxu1 %v8496_v34  ;;  %v671_v8 = vrot.slane %v633_v5, %v9028_v16  ;;  %v675_v11 = vrot.slane %v633_v5, %v9033_v20  ;;  %v8572_v5 = vld [vmem:[#allocation9 + $0x78] sm:$0xff]  }
 0x33d   :  { %5777 = vmatmul.mubr.bf16.vlgmr.msra.gmra.mrb[12].mxu1 %v9108_v14  ;;  %7263 = vmatpush3.bf16.msra.mxu0 %v8471_v19 }
 0x33e   :  { %7264 = vmatprep.subr.bf16.mxu0 %v8472_v37  ;;  %5786 = vmatpush1.bf16.msra.mxu1 %v8494_v12 }
 0x33f   :  { %5787 = vmatprep.subr.bf16.mxu1 %v8499_v57 }
 0x341   :  { %7265 = vmatpush3.bf16.msra.mxu0 %v8473_v15 }
 0x342   :  { %7266 = vmatprep.subr.bf16.mxu0 %v8474_v27  ;;  %5788 = vmatpush1.bf16.msra.mxu1 %v8497_v17  ;;  %v8558_v17 = vld [vmem:[#allocation9 + $0x40] sm:$0xff]  }
 0x343   :  { %5789 = vmatprep.subr.bf16.mxu1 %v8502_v21  ;;  %v8559_v21 = vld [vmem:[#allocation9] sm:$0xff]  }
 0x345   :  { %7267 = vmatpush3.bf16.msra.mxu0 %v8475_v22  ;;  %v8560_v22 = vld [vmem:[#allocation9 + $0x48] sm:$0xff]  }
 0x346   :  { %7268 = vmatprep.subr.bf16.mxu0 %v8476_v24  ;;  %5790 = vmatpush1.bf16.msra.mxu1 %v8500_v25  ;;  %v8543_v25 = vld [vmem:[#allocation6 + $0x608] ss:$12 sps:$4 sm:$0xff]  }
 0x347   :  { %5791 = vmatprep.subr.bf16.mxu1 %v8505_v26 }
 0x349   :  { %7269 = vmatpush3.bf16.msra.mxu0 %v8477_v53  ;;  %v8544_v53 = vld [vmem:[#allocation6 + $0x6e0] ss:$12 sps:$4 sm:$0xff]  }
 0x34a   :  { %7276 = vmatprep.subr.bf16.mxu0 %v8478_v29  ;;  %5792 = vmatpush1.bf16.msra.mxu1 %v8503_v30  ;;  %v8561_v29 = vld [vmem:[#allocation9 + $0x8] sm:$0xff]   ;;  %v8562_v30 = vld [vmem:[#allocation9 + $0x50] sm:$0xff]  }
 0x34b   :  { %5793 = vmatprep.subr.bf16.mxu1 %v8508_v0  ;;  %v8545_v0 = vld [vmem:[#allocation6 + $0x620] ss:$12 sps:$4 sm:$0xff]  }
 0x34c   :  { %5939 = vmatmul.mubr.bf16.vlgmr.msra.gmra.mrb[20].mxu0 %v9090_v50  ;;  %v8485_v50 = vld [vmem:[#allocation6 + $0x4d0] ss:$12 sps:$4 sm:$0xff]  }
 0x34d   :  { %7277 = vmatpush3.bf16.msra.mxu0 %v8479_v6  ;;  %5978 = vmatprep.mubr.bf16.mxu0 %v9098_v18  ;;  %v8515_v18 = vld [vmem:[#allocation6 + $0x6a8] ss:$12 sps:$4 sm:$0xff]   ;;  %v8546_v6 = vld [vmem:[#allocation6 + $0x6f8] ss:$12 sps:$4 sm:$0xff]  }
 0x34e   :  { %7278 = vmatprep.subr.bf16.mxu0 %v8480_v31  ;;  %5794 = vmatpush1.bf16.msra.mxu1 %v8506_v7  ;;  %v8563_v31 = vld [vmem:[#allocation9 + $0x10] sm:$0xff]   ;;  %v8564_v7 = vld [vmem:[#allocation9 + $0x58] sm:$0xff]  }
 0x34f   :  { %5795 = vmatprep.subr.bf16.mxu1 %v8511_v32  ;;  %v8547_v32 = vld [vmem:[#allocation6 + $0x638] ss:$12 sps:$4 sm:$0xff]  }
 0x351   :  { %7279 = vmatpush3.bf16.msra.mxu0 %v8481_v33  ;;  %v8548_v33 = vld [vmem:[#allocation6 + $0x710] ss:$12 sps:$4 sm:$0xff]  }
 0x352   :  { %7280 = vmatprep.subr.bf16.mxu0 %v8482_v54  ;;  %5796 = vmatpush1.bf16.msra.mxu1 %v8509_v35  ;;  %v8565_v54 = vld [vmem:[#allocation9 + $0x18] sm:$0xff]   ;;  %v8566_v35 = vld [vmem:[#allocation9 + $0x60] sm:$0xff]  }
 0x353   :  { %5797 = vmatprep.subr.bf16.mxu1 %v8514_v13  ;;  %v8549_v13 = vld [vmem:[#allocation6 + $0x650] ss:$12 sps:$4 sm:$0xff]  }
 0x355   :  { %7281 = vmatpush3.bf16.msra.mxu0 %v8483_v36  ;;  %v8550_v36 = vld [vmem:[#allocation6 + $0x728] ss:$12 sps:$4 sm:$0xff]  }
 0x356   :  { %7282 = vmatprep.subr.bf16.mxu0 %v8484_v23  ;;  %5798 = vmatpush1.bf16.msra.mxu1 %v8512_v46  ;;  %v8567_v23 = vld [vmem:[#allocation9 + $0x20] sm:$0xff]   ;;  %v8568_v46 = vld [vmem:[#allocation9 + $0x68] sm:$0xff]  }
 0x357   :  { %5799 = vmatprep.subr.bf16.mxu1 %v8517_v38  ;;  %v8551_v38 = vld [vmem:[#allocation6 + $0x668] ss:$12 sps:$4 sm:$0xff]  }
 0x359   :  { %7283 = vmatpush3.bf16.msra.mxu0 %v8485_v50  ;;  %v8552_v50 = vld [vmem:[#allocation6 + $0x740] ss:$12 sps:$4 sm:$0xff]  }
 0x35a   :  { %7284 = vmatprep.subr.bf16.mxu0 %v8486_v39  ;;  %5800 = vmatpush1.bf16.msra.mxu1 %v8515_v18  ;;  %v8569_v39 = vld [vmem:[#allocation9 + $0x28] sm:$0xff]  }
 0x35b   :  { %5801 = vmatprep.subr.bf16.mxu1 %v8520_v41  ;;  %v8553_v18 = vld [vmem:[#allocation6 + $0x680] ss:$12 sps:$4 sm:$0xff]   ;;  %v8554_v41 = vld [vmem:[#allocation6 + $0x758] ss:$12 sps:$4 sm:$0xff]  }
 0x35d   :  { %7285 = vmatpush3.bf16.msra.mxu0 %v8487_v42  ;;  %v8555_v42 = vld [vmem:[#allocation6 + $0x698] ss:$12 sps:$4 sm:$0xff]  }
 0x35e   :  { %7286 = vmatprep.subr.bf16.mxu0 %v8488_v43  ;;  %5802 = vmatpush1.bf16.msra.mxu1 %v8518_v44  ;;  %v8556_v43 = vld [vmem:[#allocation6 + $0x770] ss:$12 sps:$4 sm:$0xff]  }
 0x35f   :  { %5803 = vmatprep.subr.bf16.mxu1 %v8523_v45 }
 0x361   :  { %7287 = vmatpush3.bf16.msra.mxu0 %v8489_v47 }
 0x362   :  { %7288 = vmatprep.subr.bf16.mxu0 %v8490_v59  ;;  %5804 = vmatpush1.bf16.msra.mxu1 %v8521_v60  ;;  %v8557_v60 = vld [vmem:[#allocation6 + $0x6b0] ss:$12 sps:$4 sm:$0xff]  }
 0x363   :  { %5805 = vmatprep.subr.bf16.mxu1 %v8526_v49 }
 0x365   :  { %7289 = vmatpush3.bf16.msra.mxu0 %v8491_v51  ;;  %v9116_v51 = vld [vmem:[#allocation7] sm:$0x7] }
 0x366   :  { %7290 = vmatprep.subr.bf16.mxu0 %v8492_v52  ;;  %5806 = vmatpush1.bf16.msra.mxu1 %v8524_v9  ;;  %v4337_v52 = vrot.slane %v9116_v51, %v646_v2  ;;  %v8574_v2 = vld [vmem:[#allocation9 + $0x80] sm:$0xff]  }
 0x367   :  { %5807 = vmatprep.subr.bf16.mxu1 %v8529_v55 }
 0x369   :  { %7291 = vmatpush3.bf16.msra.mxu0 %v8493_v56 }
 0x36a   :  { %5808 = vmatpush1.bf16.msra.mxu1 %v8527_v58  ;;  %7320 = vmatprep.subr.bf16.mxu0 %v8558_v17 }
 0x36b   :  { %5809 = vmatprep.subr.bf16.mxu1 %v8532_v61 }
 0x36c   :  { %5979 = vmatmul.mubr.bf16.vlgmr.msra.gmra.mrb[24].mxu0 %v9108_v14 }
 0x36d   :  { %7321 = vmatpush3.bf16.msra.mxu0 %v8559_v21 }
 0x36e   :  { %5810 = vmatpush1.bf16.msra.mxu1 %v8530_v40  ;;  %7322 = vmatprep.subr.bf16.mxu0 %v8560_v22 }
 0x36f   :  { %5811 = vmatprep.subr.bf16.mxu1 %v8535_v62 }
 0x371   :  { %7323 = vmatpush3.bf16.msra.mxu0 %v8561_v29  ;;  %v4333_v29 = vrot.slane %v9116_v51, %v9033_v20 }
 0x372   :  { %5812 = vmatpush1.bf16.msra.mxu1 %v8533_v63  ;;  %7324 = vmatprep.subr.bf16.mxu0 %v8562_v30  ;;  %v8570_v63 = vld [vmem:[#allocation9 + $0x70] sm:$0xff]  }
 0x373   :  { %5813 = vmatprep.subr.bf16.mxu1 %v8538_v1 }
 0x375   :  { %7325 = vmatpush3.bf16.msra.mxu0 %v8563_v31 }
 0x376   :  { %5814 = vmatpush1.bf16.msra.mxu1 %v8536_v3  ;;  %7326 = vmatprep.subr.bf16.mxu0 %v8564_v7  ;;  %v8571_v3 = vld [vmem:[#allocation9 + $0x30] sm:$0xff]  }
 0x377   :  { %5815 = vmatprep.subr.bf16.mxu1 %v8541_v28 }
 0x379   :  { %7327 = vmatpush3.bf16.msra.mxu0 %v8565_v54 }
 0x37a   :  { %5816 = vmatpush1.bf16.msra.mxu1 %v8539_v4  ;;  %7328 = vmatprep.subr.bf16.mxu0 %v8566_v35 }
 0x37b   :  { %7298 = vmatprep.subr.bf16.mxu1 %v8542_v48 }
 0x37d   :  { %7329 = vmatpush3.bf16.msra.mxu0 %v8567_v23 }
 0x37e   :  { %7330 = vmatprep.subr.bf16.mxu0 %v8568_v46 }
 0x381   :  { %7331 = vmatpush3.bf16.msra.mxu0 %v8569_v39 }
 0x382   :  { %7332 = vmatprep.subr.bf16.mxu0 %v8570_v63 }
 0x385   :  { %7333 = vmatpush3.bf16.msra.mxu0 %v8571_v3 }
 0x386   :  { %7334 = vmatprep.subr.bf16.mxu0 %v8572_v5 }
 0x3bf   :  { %v3977_v34 = vpop.f32.mrb[8].mxu0 }
 0x3c0   :  { %v7410_v19 = vadd.f32 %v3977_v34, %v671_v8  ;;  %v3979_v37 = vpop.f32.mrb[9].mxu0  ;;  %v8573_v8 = vld [vmem:[#allocation9 + $0x38] sm:$0xff]   ;;  %v8792_v34 = vmov 0.0  }
 0x3c1   :  { %v7411_v12 = vadd.f32 %v3979_v37, %v675_v11  ;;  %v3981_v14 = vpop.f32.mrb[10].mxu0  ;;  %7335 = vmatpush3.bf16.msra.mxu0 %v8573_v8  ;;  %v8576_v37 = vld [vmem:[#allocation9 + $0x90] sm:$0xff]  }
 0x3c2   :  { %v3992_v57 = vmax.f32 %v7410_v19, 0.0  ;;  %v3982_v15 = vpop.f32.mrb[11].mxu0  ;;  %v8575_v19 = vld [vmem:[#allocation9 + $0x88] sm:$0xff]   ;;  %7380 = vmatprep.subr.bf16.mxu0 %v8792_v34  ;;  %v8578_v14 = vld [vmem:[#allocation9 + $0xa0] sm:$0xff]  }
 0x3c3   :  { %v3993_v27 = vmax.f32 %v7411_v12, 0.0  ;;  %v8577_v12 = vld [vmem:[#allocation9 + $0x98] sm:$0xff]  }
 0x3c4   :  { %v4002_v26 = vpack.c.bf16 %v3992_v57, %v3992_v57  ;;  %v8579_v57 = vld [vmem:[#allocation9 + $0xa8] sm:$0xff]  }
 0x3c5   :  { %v4003_v24 = vpack.c.bf16 %v3993_v27, %v3993_v27  ;;  %v8580_v27 = vld [vmem:[#allocation9 + $0xb0] sm:$0xff]  }
 0x3c7   :  { %5817 = vmatprep.mubr.bf16.mxu1 %v4003_v24 }
 0x3c8   :  { %5818 = vmatmul.mubr.bf16.vlgmr.msra.gmra.mrb[12].mxu1 %v4002_v26 }
 0x3c9   :  { %7299 = vmatpush3.bf16.msra.mxu1 %v8543_v25  ;;  %6018 = vmatprep.mubr.bf16.mxu1 %v4003_v24 }
 0x3ca   :  { %7300 = vmatprep.subr.bf16.mxu1 %v8544_v53  ;;  %v4329_v53 = vrot.slane %v9116_v51, %v9028_v16 }
 0x3cd   :  { %7301 = vmatpush3.bf16.msra.mxu1 %v8545_v0 }
 0x3ce   :  { %7302 = vmatprep.subr.bf16.mxu1 %v8546_v6 }
 0x3d1   :  { %7303 = vmatpush3.bf16.msra.mxu1 %v8547_v32 }
 0x3d2   :  { %7304 = vmatprep.subr.bf16.mxu1 %v8548_v33 }
 0x3d5   :  { %7305 = vmatpush3.bf16.msra.mxu1 %v8549_v13 }
 0x3d6   :  { %7306 = vmatprep.subr.bf16.mxu1 %v8550_v36 }
 0x3d9   :  { %7307 = vmatpush3.bf16.msra.mxu1 %v8551_v38 }
 0x3da   :  { %7308 = vmatprep.subr.bf16.mxu1 %v8552_v50 }
 0x3dd   :  { %7309 = vmatpush3.bf16.msra.mxu1 %v8553_v18  ;;  %v8582_v18 = vld [vmem:[#allocation12] sm:$0xff]  }
 0x3de   :  { %7310 = vmatprep.subr.bf16.mxu1 %v8554_v41  ;;  %v8583_v41 = vld [vmem:[#allocation12 + $0x8] sm:$0xff]  }
 0x3df   :  { %v7226_v44 = vpop.f32.mrb[12].mxu0 }
 0x3e0   :  { %v7227_v45 = vpop.f32.mrb[13].mxu0 }
 0x3e1   :  { %v7228_v47 = vadd.f32 %v7227_v45, %v7226_v44  ;;  %v7229_v59 = vpop.f32.mrb[14].mxu0  ;;  %7311 = vmatpush3.bf16.msra.mxu1 %v8555_v42  ;;  %v8584_v42 = vld [vmem:[#allocation12 + $0x10] sm:$0xff]   ;;  %v8586_v44 = vld [vmem:[#allocation12 + $0x20] sm:$0xff]   ;;  %v8587_v45 = vld [vmem:[#allocation12 + $0x28] sm:$0xff]  }
 0x3e2   :  { %v7230_v49 = vpop.f32.mrb[15].mxu0  ;;  %7312 = vmatprep.subr.bf16.mxu1 %v8556_v43  ;;  %v8585_v43 = vld [vmem:[#allocation12 + $0x18] sm:$0xff]  }
 0x3e3   :  { %v5861_v56 = vadd.f32 %v7228_v47, %v4337_v52  ;;  %v8588_v47 = vld [vmem:[#allocation12 + $0x30] sm:$0xff]   ;;  %v8589_v59 = vld [vmem:[#allocation12 + $0x38] sm:$0xff]  }
 0x3e5   :  { %7313 = vmatpush3.bf16.msra.mxu1 %v8557_v60 }
 0x3e6   :  { %7360 = vmatprep.subr.bf16.mxu1 %v8792_v34 }
 0x3e8   :  { %6019 = vmatmul.mubr.bf16.vlgmr.msra.gmra.mrb[16].mxu1 %v4002_v26  ;;  %v8581_v26 = vld [vmem:[#allocation9 + $0xb8] sm:$0xff]  }
 0x3e9   :  { %7361 = vmatpush3.bf16.msra.mxu1 %v8574_v2  ;;  %7376 = vmatprep.mubr.msk.bf16.mxu1 %vm8793_vm1, %v8792_v34 }
 0x3ea   :  { %7362 = vmatprep.subr.bf16.mxu1 %v8792_v34 }
 0x3ed   :  { %7363 = vmatpush3.bf16.msra.mxu1 %v8575_v19 }
 0x3ee   :  { %7364 = vmatprep.subr.bf16.mxu1 %v8792_v34 }
 0x3f1   :  { %7365 = vmatpush3.bf16.msra.mxu1 %v8576_v37 }
 0x3f2   :  { %7366 = vmatprep.subr.bf16.mxu1 %v8792_v34 }
 0x3f5   :  { %7367 = vmatpush3.bf16.msra.mxu1 %v8577_v12 }
 0x3f6   :  { %7368 = vmatprep.subr.bf16.mxu1 %v8792_v34 }
 0x3f9   :  { %7369 = vmatpush3.bf16.msra.mxu1 %v8578_v14 }
 0x3fa   :  { %7370 = vmatprep.subr.bf16.mxu1 %v8792_v34 }
 0x3fd   :  { %7371 = vmatpush3.bf16.msra.mxu1 %v8579_v57 }
 0x3fe   :  { %7372 = vmatprep.subr.bf16.mxu1 %v8792_v34 }
 0x3ff   :  { %v7248_v9 = vpop.f32.mrb[16].mxu0 }
 0x400   :  { %v7249_v55 = vpop.f32.mrb[17].mxu0 }
 0x401   :  { %v7250_v58 = vadd.f32 %v7249_v55, %v7248_v9  ;;  %v7251_v61 = vpop.f32.mrb[18].mxu0  ;;  %7373 = vmatpush3.bf16.msra.mxu1 %v8580_v27  ;;  %v7176_v55 = vld [vmem:[#allocation10] ss:$0 sm:$0xff] }
 0x402   :  { %v7252_v40 = vpop.f32.mrb[19].mxu0  ;;  %7374 = vmatprep.subr.bf16.mxu1 %v8792_v34 }
 0x403   :  { %v5901_v62 = vadd.f32 %v7250_v58, %v5861_v56 }
 0x405   :  { %7375 = vmatpush3.bf16.msra.mxu1 %v8581_v26 }
 0x41f   :  { %v7270_v1 = vpop.f32.mrb[20].mxu0 }
 0x420   :  { %v7271_v28 = vpop.f32.mrb[21].mxu0 }
 0x421   :  { %v7272_v4 = vadd.f32 %v7271_v28, %v7270_v1  ;;  %v7273_v48 = vpop.f32.mrb[22].mxu0  ;;  %v7201_v28 = vld [vmem:[#allocation13] ss:$0 sm:$0xff] }
 0x422   :  { %v7274_v10 = vpop.f32.mrb[23].mxu0 }
 0x423   :  { %v5941_v11 = vadd.f32 %v7272_v4, %v5901_v62 }
 0x43f   :  { %v7292_v15 = vpop.f32.mrb[24].mxu0 }
 0x440   :  { %v7293_v17 = vpop.f32.mrb[25].mxu0 }
 0x441   :  { %v7294_v21 = vadd.f32 %v7293_v17, %v7292_v15  ;;  %v7295_v22 = vpop.f32.mrb[26].mxu0 }
 0x442   :  { %v7296_v24 = vpop.f32.mrb[27].mxu0 }
 0x443   :  { %v5981_v25 = vadd.f32 %v7294_v21, %v5941_v11 }
 0x49b   :  { %v5819_v30 = vpop.f32.mrb[12].mxu1 }
 0x49c   :  { %v7412_v0 = vadd.f32 %v5819_v30, %v4329_v53  ;;  %v5821_v6 = vpop.f32.mrb[13].mxu1 }
 0x49d   :  { %v7413_v31 = vadd.f32 %v5821_v6, %v4333_v29  ;;  %v5823_v7 = vpop.f32.mrb[14].mxu1 }
 0x49e   :  { %v6026_v32 = vmax.f32 %v7412_v0, 0.0  ;;  %v5824_v33 = vpop.f32.mrb[15].mxu1 }
 0x49f   :  { %v6027_v54 = vmax.f32 %v7413_v31, 0.0 }
 0x4a0   :  { %v6029_v13 = vpack.c.bf16 %v6026_v32, %v6026_v32 }
 0x4a1   :  { %v6030_v35 = vpack.c.bf16 %v6027_v54, %v6027_v54 }
 0x4a3   :  { %6263 = vmatprep.mubr.bf16.mxu0 %v6030_v35 }
 0x4a4   :  { %6264 = vmatmul.mubr.bf16.vlgmr.msra.gmra.mrb[28].mxu0 %v6029_v13 }
 0x4a5   :  { %7396 = vmatprep.mubr.msk.bf16.mxu0 %vm8793_vm1, %v8792_v34  ;;  %7381 = vmatpush3.bf16.msra.mxu0 %v8582_v18 }
 0x4a6   :  { %7382 = vmatprep.subr.bf16.mxu0 %v8792_v34 }
 0x4a9   :  { %7383 = vmatpush3.bf16.msra.mxu0 %v8583_v41 }
 0x4aa   :  { %7384 = vmatprep.subr.bf16.mxu0 %v8792_v34 }
 0x4ad   :  { %7385 = vmatpush3.bf16.msra.mxu0 %v8584_v42 }
 0x4ae   :  { %7386 = vmatprep.subr.bf16.mxu0 %v8792_v34 }
 0x4b1   :  { %7387 = vmatpush3.bf16.msra.mxu0 %v8585_v43 }
 0x4b2   :  { %7388 = vmatprep.subr.bf16.mxu0 %v8792_v34 }
 0x4b5   :  { %7389 = vmatpush3.bf16.msra.mxu0 %v8586_v44 }
 0x4b6   :  { %7390 = vmatprep.subr.bf16.mxu0 %v8792_v34 }
 0x4b9   :  { %7391 = vmatpush3.bf16.msra.mxu0 %v8587_v45 }
 0x4ba   :  { %7392 = vmatprep.subr.bf16.mxu0 %v8792_v34 }
 0x4bb   :  { %v7314_v36 = vpop.f32.mrb[16].mxu1 }
 0x4bc   :  { %v7315_v16 = vpop.f32.mrb[17].mxu1 }
 0x4bd   :  { %v7316_v23 = vadd.f32 %v7315_v16, %v7314_v36  ;;  %v7317_v46 = vpop.f32.mrb[18].mxu1  ;;  %7393 = vmatpush3.bf16.msra.mxu0 %v8588_v47 }
 0x4be   :  { %v7318_v20 = vpop.f32.mrb[19].mxu1  ;;  %7394 = vmatprep.subr.bf16.mxu0 %v8792_v34 }
 0x4bf   :  { %v6021_v38 = vadd.f32 %v7316_v23, %v5981_v25 }
 0x4c1   :  { %v6028_v50 = vmax.f32 %v6021_v38, 0.0  ;;  %7395 = vmatpush3.bf16.msra.mxu0 %v8589_v59 }
 0x4c3   :  { %v6031_v39 = vpack.c.bf16 %v6028_v50, %v6028_v50 }
 0x4c5   :  { %7377 = vmatmul.mubr.bf16.vlgmr.msra.gmra.mrb[20].mxu1 %v6031_v39 }
 0x577   :  { %v7336_v60 = vpop.f32.mrb[28].mxu0 }
 0x578   :  { %v7337_v49 = vpop.f32.mrb[29].mxu0 }
 0x579   :  { %v7338_v51 = vadd.f32 %v7337_v49, %v7336_v60  ;;  %v7339_v52 = vpop.f32.mrb[30].mxu0 }
 0x57a   :  { %v7340_v9 = vpop.f32.mrb[31].mxu0 }
 0x57b   :  { %v6266_v56 = vadd.f32 %v7338_v51, %v7176_v55 }
 0x598   :  { %v6305_v58 = vpop.f32.mrb[20].mxu1 }
 0x599   :  { %v6306_v61 = vadd.f32 %v6305_v58, %v6266_v56  ;;  %v7378_v40 = vpop.f32.mrb[21].mxu1 }
 0x59a   :  { %v6308_v62 = vpop.f32.mrb[22].mxu1 }
 0x59b   :  { %v6311_v63 = vmax.f32 %v6306_v61, 0.0  ;;  %v7379_v1 = vpop.f32.mrb[23].mxu1 }
 0x59d   :  { %v6312_v3 = vpack.c.bf16 %v6311_v63, %v6311_v63 }
 0x59f   :  { %7397 = vmatmul.mubr.bf16.vlgmr.msra.gmra.mrb[32].mxu0 %v6312_v3 }
 0x672   :  { %v6418_v4 = vpop.f32.mrb[32].mxu0 }
 0x673   :  { %v6419_v48 = vadd.f32 %v7201_v28, %v6418_v4  ;;  %v7398_v5 = vpop.f32.mrb[33].mxu0 }
 0x674   :  { %v6421_v8 = vpop.f32.mrb[34].mxu0 }
 0x675   :  { %6424 = vst [vmem:[%s9157_s9] sm:$0xff] %v6419_v48  ;;  %v7399_v10 = vpop.f32.mrb[35].mxu0 }
 0x676   :  { %6429 = vsyncpa [#allocation3], 1 }
 0x677   :  { %6430 = vsyncpa [#allocation5], 1 }
 0x678   :  { %6431 = vsyncpa [#allocation8], 1 }
 0x679   :  { %6432 = vsyncpa [#allocation11], 1 }
 0x67a   :  { %6433 = vsyncpa [#allocation14], 1 }

</bundles_post_ra>
